<compile_context>
chip_gen: v7x
topology: tpu7x:2x2x1
jax: 0.10.0
libtpu: 0.0.40
codegen_flags: <defaults>
</compile_context>

<pallas_src>
import functools

import jax
import jax.numpy as jnp
from jax.experimental import pallas as pl
from jax.experimental.pallas import tpu as pltpu


# ---------------------------------------------------------------------------
# Kernel
# ---------------------------------------------------------------------------
def _ggcn_head_kernel(x_ref, w1_ref, b1_ref, w2_ref, b2_ref, out_ref,
                      *, B, T, N, B_pad):
    j = pl.program_id(0)

    # Output block is resident across the H-tile grid axis: use it directly as
    # the logits accumulator.  Initialize with the fc_cls bias on step 0.
    @pl.when(j == 0)
    def _():
        out_ref[...] = jnp.broadcast_to(b2_ref[...], out_ref.shape)

    # fc_drop: Linear (bf16 x bf16 -> f32 accumulation on the MXU) + ReLU.
    # Dropout is identity in eval mode.
    h = jnp.dot(x_ref[...], w1_ref[...], preferred_element_type=jnp.float32)
    h = jnp.maximum(h + b1_ref[...], 0.0)                    # (M_pad, tile_h)

    # Box-max over N and frame-mean over T, computed directly on the matmul
    # value with static single-row slices (rows ordered (b, t, n)).
    # Padded rows M..M_pad hold ReLU(b1) but are never touched here.
    rows = []
    for b in range(B):
        s = None
        for t in range(T):
            base = b * T * N + t * N
            m_t = h[base:base + 1, :]
            for n in range(1, N):
                m_t = jnp.maximum(m_t, h[base + n:base + n + 1, :])
            s = m_t if s is None else s + m_t
        rows.append(s * (1.0 / T))                           # (1, tile_h)
    if B_pad > B:
        rows.append(jnp.zeros((B_pad - B, h.shape[1]), jnp.float32))
    hm = jnp.concatenate(rows, axis=0) if len(rows) > 1 else rows[0]

    # fc_cls partial product for this H tile (frame mean folded before the
    # Linear; they commute).  Full-slab, lane-dense accumulate into out_ref.
    out_ref[...] += jnp.dot(hm.astype(w2_ref.dtype), w2_ref[...],
                            preferred_element_type=jnp.float32)


# ---------------------------------------------------------------------------
# VMEM budgeting / tile selection
# ---------------------------------------------------------------------------
def _vmem_capacity_bytes():
    try:
        info = pltpu.get_tpu_info()
        cap = getattr(info, "vmem_capacity_bytes", None)
        if cap:
            return int(cap)
    except Exception:
        pass
    return 64 << 20   # conservative fallback (v7x physical VMEM per TensorCore)


def _vmem_block_bytes(tile_h, Din, M_pad, A_pad, B_pad):
    """Bytes for all (double-buffered) input blocks + the resident output."""
    return (2 * M_pad * Din * 2          # feats block (bf16)
            + 2 * Din * tile_h * 2       # W1 column tile (bf16)
            + 2 * tile_h * 4             # b1 tile (f32)
            + 2 * tile_h * A_pad * 2     # W2 row tile (bf16)
            + 2 * A_pad * 4              # b2 (f32)
            + B_pad * A_pad * 4)         # resident output (f32)


def _pick_tile_h(H, Din, M_pad, A_pad, B_pad, budget):
    # Candidates: H itself, then 128-multiples that divide H, descending.
    cands = [c for c in range(H, 0, -128)
             if H % c == 0 and (c == H or c % 128 == 0)]
    for c in cands:
        if _vmem_block_bytes(c, Din, M_pad, A_pad, B_pad) <= budget:
            return c
    # TODO(synk): even a 128-wide W1 tile overflows VMEM (huge crop sizes);
    # needs a Din (K) grid axis with a hidden accumulator.
    return cands[-1]


# ---------------------------------------------------------------------------
# Wrapper
# ---------------------------------------------------------------------------
def prepare_ggcn_head_params(w1, b1, w2, b2):
    """Cast/pad the head weights ONCE (hoisted out of the per-call path)."""
    H = w1.shape[-1]
    A = w2.shape[-1]
    A_pad = max(128, ((A + 127) // 128) * 128)
    w1_b = jnp.asarray(w1, jnp.bfloat16)                               # (Din, H)
    b1_r = jnp.asarray(b1, jnp.float32).reshape(1, H)
    w2_p = jnp.zeros((H, A_pad), jnp.bfloat16).at[:, :A].set(
        jnp.asarray(w2, jnp.bfloat16))
    b2_p = jnp.zeros((1, A_pad), jnp.float32).at[0, :A].set(
        jnp.asarray(b2, jnp.float32))
    return {"w1": w1_b, "b1": b1_r, "w2": w2_p, "b2": b2_p, "A": A}


def ggcn_head(feats, params, *, B, T, N):
    w1_b, b1_r, w2_p, b2_p = params["w1"], params["b1"], params["w2"], params["b2"]
    A = params["A"]
    M, Din = feats.shape
    H = w1_b.shape[-1]
    A_pad = w2_p.shape[-1]
    assert M == B * T * N

    M_pad = max(8, ((M + 7) // 8) * 8)
    B_pad = max(8, ((B + 7) // 8) * 8)

    cap = _vmem_capacity_bytes()
    budget = int(cap * 0.75)
    tile_h = _pick_tile_h(H, Din, M_pad, A_pad, B_pad, budget)
    grid = (H // tile_h,)

    # Per-call feature cast/pad (feats change every call; weights do not).
    feats_p = jnp.zeros((M_pad, Din), jnp.bfloat16).at[:M].set(
        feats.astype(jnp.bfloat16))

    need = _vmem_block_bytes(tile_h, Din, M_pad, A_pad, B_pad) + (2 << 20)
    vmem_limit = int(min(max(need, 16 << 20), cap * 0.9))

    cost = pl.CostEstimate(
        flops=2 * M * Din * H + 2 * B_pad * H * A_pad,
        transcendentals=0,
        bytes_accessed=(M_pad * Din * 2 + Din * H * 2 + H * 4
                        + H * A_pad * 2 + A_pad * 4 + B_pad * A_pad * 4))

    kernel = functools.partial(_ggcn_head_kernel, B=B, T=T, N=N, B_pad=B_pad)

    out_pad = pl.pallas_call(
        kernel,
        out_shape=jax.ShapeDtypeStruct((B_pad, A_pad), jnp.float32),
        grid_spec=pltpu.PrefetchScalarGridSpec(
            num_scalar_prefetch=0,
            grid=grid,
            in_specs=[
                pl.BlockSpec((M_pad, Din), lambda j: (0, 0)),     # feats (resident)
                pl.BlockSpec((Din, tile_h), lambda j: (0, j)),    # W1 column tiles
                pl.BlockSpec((1, tile_h), lambda j: (0, j)),      # b1 tile
                pl.BlockSpec((tile_h, A_pad), lambda j: (j, 0)),  # W2 row tiles
                pl.BlockSpec((1, A_pad), lambda j: (0, 0)),       # b2 (resident)
            ],
            out_specs=pl.BlockSpec((B_pad, A_pad), lambda j: (0, 0)),
        ),
        compiler_params=pltpu.CompilerParams(
            # H-tile axis reduces into the resident output block.
            dimension_semantics=("arbitrary",),
            vmem_limit_bytes=vmem_limit),
        cost_estimate=cost,
    )(feats_p, w1_b, b1_r, w2_p, b2_p)
    return out_pad[:B, :A]


# ---------------------------------------------------------------------------
# Pure-JAX reference
# ---------------------------------------------------------------------------
def ggcn_head_ref(feats, w1, b1, w2, b2, *, B, T, N):
    """Mirrors the PyTorch forward (roi_align branch).

    Uses the same bf16-input / f32-accumulation matmul path as the kernel so
    the comparison isolates the Pallas lowering.  The frame mean is folded
    before fc_cls (mean over frames and a Linear commute)."""
    H = w1.shape[-1]
    h = jnp.dot(feats.astype(jnp.bfloat16), w1.astype(jnp.bfloat16),
                preferred_element_type=jnp.float32) + b1
    h = jnp.maximum(h, 0.0)                     # fc_drop (dropout = id in eval)
    h = h.reshape(B, T, N, H)
    h = jnp.max(h, axis=2)                      # (B, T, H) box max
    hm = jnp.mean(h, axis=1)                    # (B, H) frame mean
    return jnp.dot(hm.astype(jnp.bfloat16), w2.astype(jnp.bfloat16),
                   preferred_element_type=jnp.float32) + b2


# ---------------------------------------------------------------------------
# Self-test
# ---------------------------------------------------------------------------
if __name__ == "__main__":
    # Shapes implied by the module's __init__:
    #   crop_size=(1,1) -> Din = 2048*1*1, hidden = 1024 (hard-coded in fc_drop),
    #   num_frames=2, num_boxes=4, num_activities=8.
    crop_h, crop_w = 1, 1
    Din = 2048 * crop_h * crop_w
    H = 1024
    A = 8

    key = jax.random.PRNGKey(0)
    k_feat, k_w1, k_b1, k_w2, k_b2 = jax.random.split(key, 5)

    # Deterministic parameter init (Linear weights stored as (in, out)).
    w1 = jax.random.normal(k_w1, (Din, H), dtype=jnp.float32) * (1.0 / jnp.sqrt(Din))
    b1 = jax.random.normal(k_b1, (H,), dtype=jnp.float32) * 0.01
    w2 = jax.random.normal(k_w2, (H, A), dtype=jnp.float32) * (1.0 / jnp.sqrt(H))
    b2 = jax.random.normal(k_b2, (A,), dtype=jnp.float32) * 0.01

    # Weights prepared once, reused across calls.
    params = prepare_ggcn_head_params(w1, b1, w2, b2)

    # Exercise both batch=1 and batch=2 (multi-batch box-max / padding path).
    for (B, T, N) in [(1, 2, 4), (2, 2, 4)]:
        kf = jax.random.fold_in(k_feat, B)
        # ROI-aligned backbone features (stand-in for the P3D199 output).
        feats = jax.random.normal(kf, (B * T * N, Din), dtype=jnp.float32) * 0.1

        out = jax.block_until_ready(ggcn_head(feats, params, B=B, T=T, N=N))
        ref = ggcn_head_ref(feats, w1, b1, w2, b2, B=B, T=T, N=N)

        assert out.shape == (B, A)
        err = jnp.max(jnp.abs(out - ref))
        assert jnp.allclose(out, ref, atol=2e-3, rtol=2e-3), (
            f"B={B}: max abs err = {err}")

    print("KERNEL_OK")
</pallas_src>

<mosaic_0001>
module attributes {stable_mosaic.version = 11 : i64} {
  func.func @_ggcn_head_kernel(%arg0: i32, %arg1: memref<8x2048xbf16, #tpu.memory_space<vmem>>, %arg2: memref<2048x1024xbf16, #tpu.memory_space<vmem>>, %arg3: memref<1x1024xf32, #tpu.memory_space<vmem>>, %arg4: memref<1024x128xbf16, #tpu.memory_space<vmem>>, %arg5: memref<1x128xf32, #tpu.memory_space<vmem>>, %arg6: memref<8x128xf32, #tpu.memory_space<vmem>>) attributes {dimension_semantics = [#tpu.dimension_semantics<arbitrary>], iteration_bounds = array<i64: 1>, scalar_prefetch = 0 : i64, scratch_operands = 0 : i64, tpu.core_type = #tpu.core_type<tc>, window_params = [{pipeline_mode = #tpu.pipeline_mode<synchronous>, transform_indices = @transform_0, window_bounds = array<i64: 8, 2048>}, {transform_indices = @transform_1, window_bounds = array<i64: 2048, 1024>}, {transform_indices = @transform_2, window_bounds = array<i64: 1, 1024>}, {transform_indices = @transform_3, window_bounds = array<i64: 1024, 128>}, {pipeline_mode = #tpu.pipeline_mode<synchronous>, transform_indices = @transform_4, window_bounds = array<i64: 1, 128>}, {pipeline_mode = #tpu.pipeline_mode<synchronous>, transform_indices = @transform_5, window_bounds = array<i64: 8, 128>}]} {
    %c0_i32 = arith.constant 0 : i32
    %0 = arith.cmpi eq, %arg0, %c0_i32 : i32
    %1 = arith.extui %0 : i1 to i32
    %c0_i32_0 = arith.constant 0 : i32
    %2 = arith.cmpi ne, %1, %c0_i32_0 : i32
    scf.if %2 {
      %c0_16 = arith.constant 0 : index
      %c0_17 = arith.constant 0 : index
      %36 = vector.load %arg5[%c0_16, %c0_17] : memref<1x128xf32, #tpu.memory_space<vmem>>, vector<1x128xf32>
      %37 = vector.shape_cast %36 : vector<1x128xf32> to vector<1x128xf32>
      %38 = vector.broadcast %37 : vector<1x128xf32> to vector<8x128xf32>
      %c0_18 = arith.constant 0 : index
      %c0_19 = arith.constant 0 : index
      %39 = vector.load %arg6[%c0_18, %c0_19] : memref<8x128xf32, #tpu.memory_space<vmem>>, vector<8x128xf32>
      tpu.vector_store %arg6[%c0_18, %c0_19], %38 {strides = array<i32>} : memref<8x128xf32, #tpu.memory_space<vmem>>, vector<8x128xf32>,
    } else {
    }
    %c0 = arith.constant 0 : index
    %c0_1 = arith.constant 0 : index
    %3 = vector.load %arg1[%c0, %c0_1] : memref<8x2048xbf16, #tpu.memory_space<vmem>>, vector<8x2048xbf16>
    %c0_2 = arith.constant 0 : index
    %c0_3 = arith.constant 0 : index
    %4 = vector.load %arg2[%c0_2, %c0_3] : memref<2048x1024xbf16, #tpu.memory_space<vmem>>, vector<2048x1024xbf16>
    %cst = arith.constant dense<0.000000e+00> : vector<8x1024xf32>
    %5 = tpu.matmul %3, %4, %cst {dimension_numbers = #tpu.dot_dimension_numbers<[1], [0], [0], [1], [0, 0, 1, 1], [], []>} : vector<8x2048xbf16>, vector<2048x1024xbf16>, vector<8x1024xf32> -> vector<8x1024xf32>
    %c0_4 = arith.constant 0 : index
    %c0_5 = arith.constant 0 : index
    %6 = vector.load %arg3[%c0_4, %c0_5] : memref<1x1024xf32, #tpu.memory_space<vmem>>, vector<1x1024xf32>
    %7 = vector.broadcast %6 : vector<1x1024xf32> to vector<8x1024xf32>
    %8 = arith.addf %5, %7 : vector<8x1024xf32>
    %cst_6 = arith.constant 0.000000e+00 : f32
    %9 = vector.broadcast %cst_6 : f32 to vector<8x1024xf32>
    %10 = arith.maximumf %8, %9 : vector<8x1024xf32>
    %11 = vector.extract_strided_slice %10 {offsets = [0, 0], sizes = [1, 1024], strides = [1, 1]} : vector<8x1024xf32> to vector<1x1024xf32>
    %12 = vector.extract_strided_slice %10 {offsets = [1, 0], sizes = [1, 1024], strides = [1, 1]} : vector<8x1024xf32> to vector<1x1024xf32>
    %13 = arith.maximumf %11, %12 : vector<1x1024xf32>
    %14 = vector.extract_strided_slice %10 {offsets = [2, 0], sizes = [1, 1024], strides = [1, 1]} : vector<8x1024xf32> to vector<1x1024xf32>
    %15 = arith.maximumf %13, %14 : vector<1x1024xf32>
    %16 = vector.extract_strided_slice %10 {offsets = [3, 0], sizes = [1, 1024], strides = [1, 1]} : vector<8x1024xf32> to vector<1x1024xf32>
    %17 = arith.maximumf %15, %16 : vector<1x1024xf32>
    %18 = vector.extract_strided_slice %10 {offsets = [4, 0], sizes = [1, 1024], strides = [1, 1]} : vector<8x1024xf32> to vector<1x1024xf32>
    %19 = vector.extract_strided_slice %10 {offsets = [5, 0], sizes = [1, 1024], strides = [1, 1]} : vector<8x1024xf32> to vector<1x1024xf32>
    %20 = arith.maximumf %18, %19 : vector<1x1024xf32>
    %21 = vector.extract_strided_slice %10 {offsets = [6, 0], sizes = [1, 1024], strides = [1, 1]} : vector<8x1024xf32> to vector<1x1024xf32>
    %22 = arith.maximumf %20, %21 : vector<1x1024xf32>
    %23 = vector.extract_strided_slice %10 {offsets = [7, 0], sizes = [1, 1024], strides = [1, 1]} : vector<8x1024xf32> to vector<1x1024xf32>
    %24 = arith.maximumf %22, %23 : vector<1x1024xf32>
    %25 = arith.addf %17, %24 : vector<1x1024xf32>
    %cst_7 = arith.constant 5.000000e-01 : f32
    %26 = vector.broadcast %cst_7 : f32 to vector<1x1024xf32>
    %27 = arith.mulf %25, %26 : vector<1x1024xf32>
    %cst_8 = arith.constant 0.000000e+00 : f32
    %28 = vector.broadcast %cst_8 : f32 to vector<7x1024xf32>
    %29 = tpu.concatenate %27, %28 in 0 : vector<1x1024xf32>, vector<7x1024xf32> -> vector<8x1024xf32>
    %c0_9 = arith.constant 0 : index
    %c0_10 = arith.constant 0 : index
    %30 = vector.load %arg6[%c0_9, %c0_10] : memref<8x128xf32, #tpu.memory_space<vmem>>, vector<8x128xf32>
    %31 = arith.truncf %29 : vector<8x1024xf32> to vector<8x1024xbf16>
    %c0_11 = arith.constant 0 : index
    %c0_12 = arith.constant 0 : index
    %32 = vector.load %arg4[%c0_11, %c0_12] : memref<1024x128xbf16, #tpu.memory_space<vmem>>, vector<1024x128xbf16>
    %cst_13 = arith.constant dense<0.000000e+00> : vector<8x128xf32>
    %33 = tpu.matmul %31, %32, %cst_13 {dimension_numbers = #tpu.dot_dimension_numbers<[1], [0], [0], [1], [0, 0, 1, 1], [], []>} : vector<8x1024xbf16>, vector<1024x128xbf16>, vector<8x128xf32> -> vector<8x128xf32>
    %34 = arith.addf %30, %33 : vector<8x128xf32>
    %c0_14 = arith.constant 0 : index
    %c0_15 = arith.constant 0 : index
    %35 = vector.load %arg6[%c0_14, %c0_15] : memref<8x128xf32, #tpu.memory_space<vmem>>, vector<8x128xf32>
    tpu.vector_store %arg6[%c0_14, %c0_15], %34 {strides = array<i32>} : memref<8x128xf32, #tpu.memory_space<vmem>>, vector<8x128xf32>,
    return
  }
  func.func @transform_0(%arg0: i32) -> (i32, i32) {
    %c0_i32 = arith.constant 0 : i32
    %c0_i32_0 = arith.constant 0 : i32
    %c0_i32_1 = arith.constant 0 : i32
    return %c0_i32, %c0_i32_0 : i32, i32
  }
  func.func @transform_1(%arg0: i32) -> (i32, i32) {
    %c0_i32 = arith.constant 0 : i32
    %c0_i32_0 = arith.constant 0 : i32
    return %c0_i32, %arg0 : i32, i32
  }
  func.func @transform_2(%arg0: i32) -> (i32, i32) {
    %c0_i32 = arith.constant 0 : i32
    %c0_i32_0 = arith.constant 0 : i32
    return %c0_i32, %arg0 : i32, i32
  }
  func.func @transform_3(%arg0: i32) -> (i32, i32) {
    %c0_i32 = arith.constant 0 : i32
    %c0_i32_0 = arith.constant 0 : i32
    return %arg0, %c0_i32 : i32, i32
  }
  func.func @transform_4(%arg0: i32) -> (i32, i32) {
    %c0_i32 = arith.constant 0 : i32
    %c0_i32_0 = arith.constant 0 : i32
    %c0_i32_1 = arith.constant 0 : i32
    return %c0_i32, %c0_i32_0 : i32, i32
  }
  func.func @transform_5(%arg0: i32) -> (i32, i32) {
    %c0_i32 = arith.constant 0 : i32
    %c0_i32_0 = arith.constant 0 : i32
    %c0_i32_1 = arith.constant 0 : i32
    return %c0_i32, %c0_i32_0 : i32, i32
  }
}

</mosaic_0001>

<bundles_post_ra>
// kernel: tpu_custom_call.1
= control target key start
LH: loop header
LB: loop body
LE: loop exit
PB: predicated region body
PF: predicated region fallthrough
CT: control target
= control target key end

     0   :  { %10 = vsyncpa [#allocation3], 0  ;;  %s10382_s0 = inlined_call_operand.hbm [shape: bf16[8,2048], index: 0, kind: input, shape index: {}]   ;;  %s10383_s1 = inlined_call_operand.hbm [shape: bf16[2048,1024], index: 1, kind: input, shape index: {}]   ;;  %s10384_s2 = inlined_call_operand.hbm [shape: f32[1,1024], index: 2, kind: input, shape index: {}]   ;;  %s10385_s3 = inlined_call_operand.hbm [shape: bf16[1024,128], index: 3, kind: input, shape index: {}]   ;;  %s10386_s4 = inlined_call_operand.hbm [shape: f32[1,128], index: 4, kind: input, shape index: {}]   ;;  %s10387_s5 = inlined_call_operand.hbm [shape: f32[8,128], index: 5, kind: output, shape index: {}]  }
   0x1   :  { %11 = vsyncpa [#allocation6], 0 }
   0x2   :  { %12 = vsyncpa [#allocation9], 0 }
   0x3   :  { %13 = vsyncpa [#allocation4], 0  ;;  %s10062_s18 = smov [#allocation5]   ;;  %s9922_s22 = scalar_lea.hbm %s10383_s1, 131072 }
   0x4   :  { %s29_s19 = sshll.u32 %s10062_s18, 4  ;;  %p9923_p0 = scmp.ne.s32.totalorder %s10383_s1, %s9922_s22  ;;  %s30_s19 = int_to_ptr.vmem [resolvable:$true] %s29_s19 }
   0x5   :  { %p9926_p1 = scmp.lt.u32.totalorder %s9922_s22, %s10383_s1 }
   0x7   :  { %p9928_p2 = pnand %p9926_p1, %p9923_p0 }
   0x9   :  { %9931 = shalt.err (!%p9928_p2)
}
   0xa   :  { %s9932_s27 = scalar_lea.vmem %s30_s19, 131072  ;;  %p9937_p4 = scmp.lt.s32.totalorder %s30_s19, %s30_s19 }
   0xb   :  { %p9933_p3 = scmp.ne.s32.totalorder %s30_s19, %s9932_s27  ;;  %p9938_p5 = scmp.lt.s32.totalorder %s9932_s27, %s9932_s27 }
   0xd   :  { %p9939_p6 = por %p9938_p5, %p9937_p4 }
   0xf   :  { %p9940_p7 = pnand %p9939_p6, %p9933_p3 }
  0x11   :  { %9943 = shalt.err (!%p9940_p7)
}
  0x12   :  { %s10063_s28 = smov 512   ;;  %s10064_s29 = smov 32  }
  0x13   :  { %35 = dma.hbm_to_vmem [thread:$0]  %s10383_s1, 131072, %s30_s19, [#allocation6], %s10063_s28, %s10063_s28, %s10064_s29  }
  0x14   :  { %s10065_s7 = smov [#allocation8]   ;;  %s9944_s11 = scalar_lea.hbm %s10385_s3, 8192 }
  0x15   :  { %s51_s8 = sshll.u32 %s10065_s7, 4  ;;  %p9945_p8 = scmp.ne.s32.totalorder %s10385_s3, %s9944_s11  ;;  %s52_s8 = int_to_ptr.vmem [resolvable:$true] %s51_s8 }
  0x16   :  { %p9948_p9 = scmp.lt.u32.totalorder %s9944_s11, %s10385_s3 }
  0x18   :  { %p9950_p10 = pnand %p9948_p9, %p9945_p8 }
  0x1a   :  { %9953 = shalt.err (!%p9950_p10)
}
  0x1b   :  { %s9954_s16 = scalar_lea.vmem %s52_s8, 8192  ;;  %p9959_p12 = scmp.lt.s32.totalorder %s52_s8, %s52_s8 }
  0x1c   :  { %p9955_p11 = scmp.ne.s32.totalorder %s52_s8, %s9954_s16  ;;  %p9960_p13 = scmp.lt.s32.totalorder %s9954_s16, %s9954_s16 }
  0x1e   :  { %p9961_p0 = por %p9960_p13, %p9959_p12 }
  0x20   :  { %p9962_p1 = pnand %p9961_p0, %p9955_p11 }
  0x22   :  { %9965 = shalt.err (!%p9962_p1)
}
  0x23   :  { %s10066_s1 = smov 64   ;;  %s10067_s17 = smov 4  }
  0x24   :  { %57 = dma.hbm_to_vmem [thread:$0]  %s10385_s3, 8192, %s52_s8, [#allocation9], %s10066_s1, %s10066_s1, %s10067_s17  }
  0x25   :  { %s10068_s20 = smov [#allocation2]   ;;  %s10069_s22 = smov [#allocation7]  }
  0x26   :  { %s20_s21 = sshll.u32 %s10068_s20, 4  ;;  %s42_s23 = sshll.u32 %s10069_s22, 4  ;;  %s21_s21 = int_to_ptr.vmem [resolvable:$true] %s20_s21  ;;  %s43_s23 = int_to_ptr.vmem [resolvable:$true] %s42_s23 }
  0x27   :  { %s9966_s26 = scalar_lea.hbm %s10382_s0, 1024 }
  0x28   :  { %p9967_p2 = scmp.ne.s32.totalorder %s10382_s0, %s9966_s26  ;;  %p9970_p3 = scmp.lt.u32.totalorder %s9966_s26, %s10382_s0 }
  0x2a   :  { %p9972_p4 = pnand %p9970_p3, %p9967_p2 }
  0x2c   :  { %9975 = shalt.err (!%p9972_p4)
}
  0x2d   :  { %s9976_s3 = scalar_lea.vmem %s21_s21, 1024  ;;  %p9981_p6 = scmp.lt.s32.totalorder %s21_s21, %s21_s21 }
  0x2e   :  { %p9977_p5 = scmp.ne.s32.totalorder %s21_s21, %s9976_s3  ;;  %p9982_p7 = scmp.lt.s32.totalorder %s9976_s3, %s9976_s3 }
  0x30   :  { %p9983_p8 = por %p9982_p7, %p9981_p6 }
  0x32   :  { %p9984_p9 = pnand %p9983_p8, %p9977_p5 }
  0x34   :  { %9987 = shalt.err (!%p9984_p9)
}
  0x35   :  { %23 = dma.hbm_to_vmem [thread:$0]  %s10382_s0, 1024, %s21_s21, [#allocation3]  }
  0x36   :  { %s9988_s10 = scalar_lea.hbm %s10384_s2, 128 }
  0x37   :  { %p9989_p10 = scmp.ne.s32.totalorder %s10384_s2, %s9988_s10  ;;  %p9992_p11 = scmp.lt.u32.totalorder %s9988_s10, %s10384_s2 }
  0x39   :  { %p9994_p12 = pnand %p9992_p11, %p9989_p10 }
  0x3b   :  { %9997 = shalt.err (!%p9994_p12)
}
  0x3c   :  { %s9998_s15 = scalar_lea.vmem %s43_s23, 128  ;;  %p10003_p0 = scmp.lt.s32.totalorder %s43_s23, %s43_s23 }
  0x3d   :  { %p9999_p13 = scmp.ne.s32.totalorder %s43_s23, %s9998_s15  ;;  %p10004_p1 = scmp.lt.s32.totalorder %s9998_s15, %s9998_s15 }
  0x3f   :  { %p10005_p2 = por %p10004_p1, %p10003_p0 }
  0x41   :  { %p10006_p3 = pnand %p10005_p2, %p9999_p13 }
  0x43   :  { %10009 = shalt.err (!%p10006_p3)
}
  0x44   :  { %45 = dma.hbm_to_vmem [thread:$0]  %s10384_s2, 128, %s43_s23, [#allocation6]  }
  0x45   :  { %s10070_s1 = smov [#allocation10]   ;;  %s10010_s20 = scalar_lea.hbm %s10386_s4, 16 }
  0x46   :  { %s64_s17 = sshll.u32 %s10070_s1, 4  ;;  %p10011_p4 = scmp.ne.s32.totalorder %s10386_s4, %s10010_s20  ;;  %s65_s17 = int_to_ptr.vmem [resolvable:$true] %s64_s17 }
  0x47   :  { %p10014_p5 = scmp.lt.u32.totalorder %s10010_s20, %s10386_s4 }
  0x49   :  { %p10016_p6 = pnand %p10014_p5, %p10011_p4 }
  0x4b   :  { %10019 = shalt.err (!%p10016_p6)
}
  0x4c   :  { %s10020_s26 = scalar_lea.vmem %s65_s17, 16  ;;  %s10024_s2 = scalar_lea.vmem %s65_s17, 32 }
  0x4d   :  { %p10021_p7 = scmp.ne.s32.totalorder %s65_s17, %s10020_s26  ;;  %p10025_p8 = scmp.lt.s32.totalorder %s65_s17, %s65_s17 }
  0x4e   :  { %p10026_p9 = scmp.lt.s32.totalorder %s10024_s2, %s10020_s26 }
  0x50   :  { %p10027_p10 = por %p10026_p9, %p10025_p8 }
  0x52   :  { %p10028_p11 = pnand %p10027_p10, %p10021_p7 }
  0x54   :  { %10031 = shalt.err (!%p10028_p11)
}
  0x55   :  { %67 = dma.hbm_to_vmem [thread:$0]  %s10386_s4, 16, %s65_s17, [#allocation9]  }
  0x56   :  { %10054 = dma.done.wait [#allocation3], 1024  }
  0x57   :  { %10055 = vsyncadd [#allocation3], 4294966272 }
  0x58   :  { %10056 = dma.done.wait [#allocation6], 131200  }
  0x59   :  { %10057 = vsyncadd [#allocation6], 4294836096 }
  0x5a   :  { %10058 = dma.done.wait [#allocation9], 8208  }
  0x5b   :  { %10059 = vsyncadd [#allocation9], 4294959088  ;;  %v104_v0 = vld [vmem:[#allocation5] sm:$0xff]  ;;  %v105_v2 = vld [vmem:[#allocation5 + $0x8] sm:$0xff]  ;;  %vm7786_vm0 = vcmask 1040384   ;;  %s10071_s4 = smov [#allocation11]  }
  0x5c   :  { %v108_v1 = vld [vmem:[#allocation5 + $0x20] sm:$0xff]  ;;  %v109_v4 = vld [vmem:[#allocation5 + $0x28] sm:$0xff]  ;;  %vm10340_vm1 = vmpackc.low %vm7786_vm0, %vm7786_vm0  ;;  %s8484_s28 = sshll.u32 %s10071_s4, 4  ;;  %s8485_s28 = int_to_ptr.vmem [resolvable:$true] %s8484_s28 }
  0x5d   :  { %v8513_v3 = vcombine.high %v104_v0, %v108_v1  ;;  %v8512_v5 = vcombine.low %v104_v0, %v108_v1  ;;  %v112_v6 = vld [vmem:[#allocation5 + $0x40] sm:$0xff]  ;;  %v8515_v8 = vcombine.high %v105_v2, %v109_v4  ;;  %v8514_v9 = vcombine.low %v105_v2, %v109_v4  ;;  %v113_v11 = vld [vmem:[#allocation5 + $0x48] sm:$0xff]  ;;  %s10032_s29 = scalar_lea.vmem %s8485_s28, 128  ;;  %p10037_p13 = scmp.lt.s32.totalorder %s8485_s28, %s8485_s28 }
  0x5e   :  { %v116_v7 = vld [vmem:[#allocation5 + $0x60] sm:$0xff]  ;;  %v117_v12 = vld [vmem:[#allocation5 + $0x68] sm:$0xff]  ;;  %p10033_p12 = scmp.ne.s32.totalorder %s8485_s28, %s10032_s29  ;;  %p10038_p0 = scmp.lt.s32.totalorder %s10032_s29, %s10032_s29 }
  0x5f   :  { %v8521_v10 = vcombine.high %v112_v6, %v116_v7  ;;  %v120_v13 = vld [vmem:[#allocation5 + $0x80] sm:$0xff]  ;;  %6346 = vmatprep.subr.bf16.mxu0 %v8513_v3  ;;  %v8523_v14 = vcombine.high %v113_v11, %v117_v12  ;;  %v121_v16 = vld [vmem:[#allocation5 + $0x88] sm:$0xff]  ;;  %6674 = vmatprep.subr.bf16.mxu1 %v8515_v8  ;;  %v8520_v18 = vcombine.low %v112_v6, %v116_v7 }
  0x60   :  { %v124_v15 = vld [vmem:[#allocation5 + $0xa0] sm:$0xff]  ;;  %v125_v17 = vld [vmem:[#allocation5 + $0xa8] sm:$0xff]  ;;  %6347 = vmatpush1.bf16.msra.mxu0 %v8512_v5  ;;  %6675 = vmatpush1.bf16.msra.mxu1 %v8514_v9  ;;  %v8522_v19 = vcombine.low %v113_v11, %v117_v12  ;;  %p10039_p1 = por %p10038_p0, %p10037_p13 }
  0x61   :  { %6348 = vmatprep.subr.bf16.mxu0 %v8521_v10  ;;  %v8529_v20 = vcombine.high %v120_v13, %v124_v15  ;;  %6676 = vmatprep.subr.bf16.mxu1 %v8523_v14  ;;  %v8531_v21 = vcombine.high %v121_v16, %v125_v17  ;;  %v128_v22 = vld [vmem:[#allocation5 + $0xc0] sm:$0xff]  ;;  %v129_v24 = vld [vmem:[#allocation5 + $0xc8] sm:$0xff]  ;;  %v8528_v26 = vcombine.low %v120_v13, %v124_v15 }
  0x62   :  { %v132_v23 = vld [vmem:[#allocation5 + $0xe0] sm:$0xff]  ;;  %v133_v25 = vld [vmem:[#allocation5 + $0xe8] sm:$0xff]  ;;  %v8530_v27 = vcombine.low %v121_v16, %v125_v17  ;;  %p10040_p2 = pnand %p10039_p1, %p10033_p12 }
  0x63   :  { %v8537_v28 = vcombine.high %v128_v22, %v132_v23  ;;  %v8539_v29 = vcombine.high %v129_v24, %v133_v25  ;;  %v136_v30 = vld [vmem:[#allocation5 + $0x100] sm:$0xff]  ;;  %v137_v32 = vld [vmem:[#allocation5 + $0x108] sm:$0xff]  ;;  %v8536_v34 = vcombine.low %v128_v22, %v132_v23  ;;  %v8538_v35 = vcombine.low %v129_v24, %v133_v25 }
  0x64   :  { %6349 = vmatpush1.bf16.msra.mxu0 %v8520_v18  ;;  %6677 = vmatpush1.bf16.msra.mxu1 %v8522_v19  ;;  %v140_v31 = vld [vmem:[#allocation5 + $0x120] sm:$0xff]  ;;  %v141_v33 = vld [vmem:[#allocation5 + $0x128] sm:$0xff] }
  0x65   :  { %6350 = vmatprep.subr.bf16.mxu0 %v8529_v20  ;;  %6678 = vmatprep.subr.bf16.mxu1 %v8531_v21  ;;  %v8545_v36 = vcombine.high %v136_v30, %v140_v31  ;;  %v8547_v37 = vcombine.high %v137_v32, %v141_v33  ;;  %v144_v38 = vld [vmem:[#allocation5 + $0x140] sm:$0xff]  ;;  %v145_v40 = vld [vmem:[#allocation5 + $0x148] sm:$0xff]  ;;  %v8544_v42 = vcombine.low %v136_v30, %v140_v31 }
  0x66   :  { %v148_v39 = vld [vmem:[#allocation5 + $0x160] sm:$0xff]  ;;  %v149_v41 = vld [vmem:[#allocation5 + $0x168] sm:$0xff]  ;;  %v8546_v43 = vcombine.low %v137_v32, %v141_v33 }
  0x67   :  { %v8553_v44 = vcombine.high %v144_v38, %v148_v39  ;;  %v8555_v45 = vcombine.high %v145_v40, %v149_v41  ;;  %v152_v46 = vld [vmem:[#allocation5 + $0x180] sm:$0xff]  ;;  %v153_v48 = vld [vmem:[#allocation5 + $0x188] sm:$0xff]  ;;  %v8552_v50 = vcombine.low %v144_v38, %v148_v39  ;;  %v8554_v51 = vcombine.low %v145_v40, %v149_v41 }
  0x68   :  { %6351 = vmatpush1.bf16.msra.mxu0 %v8528_v26  ;;  %6679 = vmatpush1.bf16.msra.mxu1 %v8530_v27  ;;  %v156_v47 = vld [vmem:[#allocation5 + $0x1a0] sm:$0xff]  ;;  %v157_v49 = vld [vmem:[#allocation5 + $0x1a8] sm:$0xff] }
  0x69   :  { %6352 = vmatprep.subr.bf16.mxu0 %v8537_v28  ;;  %6680 = vmatprep.subr.bf16.mxu1 %v8539_v29  ;;  %v8561_v52 = vcombine.high %v152_v46, %v156_v47  ;;  %v10162_v53 = vld [vmem:[#allocation2] sm:$0xff]  ;;  %v8563_v54 = vcombine.high %v153_v48, %v157_v49  ;;  %v161_v58 = vld [vmem:[#allocation5 + $0x1c8] sm:$0xff]  ;;  %v8560_v60 = vcombine.low %v152_v46, %v156_v47 }
  0x6a   :  { %v160_v55 = vld [vmem:[#allocation5 + $0x1c0] sm:$0xff]  ;;  %v10166_v57 = vcombine.high %v10162_v53, %v10162_v53  ;;  %v165_v59 = vld [vmem:[#allocation5 + $0x1e8] sm:$0xff]  ;;  %v8562_v61 = vcombine.low %v153_v48, %v157_v49 }
  0x6b   :  { %v164_v56 = vld [vmem:[#allocation5 + $0x1e0] sm:$0xff]  ;;  %v8571_v63 = vcombine.high %v161_v58, %v165_v59  ;;  %v169_v2 = vld [vmem:[#allocation5 + $0x208] sm:$0xff]  ;;  %v8570_v5 = vcombine.low %v161_v58, %v165_v59 }
  0x6c   :  { %6353 = vmatpush1.bf16.msra.mxu0 %v8536_v34  ;;  %6681 = vmatpush1.bf16.msra.mxu1 %v8538_v35  ;;  %v8569_v62 = vcombine.high %v160_v55, %v164_v56  ;;  %v168_v0 = vld [vmem:[#allocation5 + $0x200] sm:$0xff]  ;;  %v173_v3 = vld [vmem:[#allocation5 + $0x228] sm:$0xff]  ;;  %v8568_v4 = vcombine.low %v160_v55, %v164_v56 }
  0x6d   :  { %6354 = vmatprep.subr.bf16.mxu0 %v8545_v36  ;;  %6682 = vmatprep.subr.bf16.mxu1 %v8547_v37  ;;  %v172_v1 = vld [vmem:[#allocation5 + $0x220] sm:$0xff]  ;;  %v8579_v7 = vcombine.high %v169_v2, %v173_v3  ;;  %v177_v10 = vld [vmem:[#allocation5 + $0x248] sm:$0xff]  ;;  %v8578_v13 = vcombine.low %v169_v2, %v173_v3 }
  0x6e   :  { %6378 = vmatprep.mubr.bf16.mxu0 %v10166_v57  ;;  %6706 = vmatprep.mubr.bf16.mxu1 %v10166_v57  ;;  %v8577_v6 = vcombine.high %v168_v0, %v172_v1  ;;  %v176_v8 = vld [vmem:[#allocation5 + $0x240] sm:$0xff]  ;;  %v181_v11 = vld [vmem:[#allocation5 + $0x268] sm:$0xff]  ;;  %v8576_v12 = vcombine.low %v168_v0, %v172_v1 }
  0x6f   :  { %v180_v9 = vld [vmem:[#allocation5 + $0x260] sm:$0xff]  ;;  %v8587_v15 = vcombine.high %v177_v10, %v181_v11  ;;  %v185_v18 = vld [vmem:[#allocation5 + $0x288] sm:$0xff]  ;;  %v8586_v21 = vcombine.low %v177_v10, %v181_v11 }
  0x70   :  { %6355 = vmatpush1.bf16.msra.mxu0 %v8544_v42  ;;  %6683 = vmatpush1.bf16.msra.mxu1 %v8546_v43  ;;  %v8585_v14 = vcombine.high %v176_v8, %v180_v9  ;;  %v184_v16 = vld [vmem:[#allocation5 + $0x280] sm:$0xff]  ;;  %v189_v19 = vld [vmem:[#allocation5 + $0x2a8] sm:$0xff]  ;;  %v8584_v20 = vcombine.low %v176_v8, %v180_v9 }
  0x71   :  { %6356 = vmatprep.subr.bf16.mxu0 %v8553_v44  ;;  %6684 = vmatprep.subr.bf16.mxu1 %v8555_v45  ;;  %v188_v17 = vld [vmem:[#allocation5 + $0x2a0] sm:$0xff]  ;;  %v8595_v23 = vcombine.high %v185_v18, %v189_v19  ;;  %v193_v26 = vld [vmem:[#allocation5 + $0x2c8] sm:$0xff]  ;;  %v8594_v29 = vcombine.low %v185_v18, %v189_v19 }
  0x72   :  { %v8593_v22 = vcombine.high %v184_v16, %v188_v17  ;;  %v192_v24 = vld [vmem:[#allocation5 + $0x2c0] sm:$0xff]  ;;  %v197_v27 = vld [vmem:[#allocation5 + $0x2e8] sm:$0xff]  ;;  %v8592_v28 = vcombine.low %v184_v16, %v188_v17 }
  0x73   :  { %v196_v25 = vld [vmem:[#allocation5 + $0x2e0] sm:$0xff]  ;;  %v8603_v31 = vcombine.high %v193_v26, %v197_v27  ;;  %v201_v34 = vld [vmem:[#allocation5 + $0x308] sm:$0xff]  ;;  %v8602_v37 = vcombine.low %v193_v26, %v197_v27 }
  0x74   :  { %6357 = vmatpush1.bf16.msra.mxu0 %v8552_v50  ;;  %6685 = vmatpush1.bf16.msra.mxu1 %v8554_v51  ;;  %v8601_v30 = vcombine.high %v192_v24, %v196_v25  ;;  %v200_v32 = vld [vmem:[#allocation5 + $0x300] sm:$0xff]  ;;  %v205_v35 = vld [vmem:[#allocation5 + $0x328] sm:$0xff]  ;;  %v8600_v36 = vcombine.low %v192_v24, %v196_v25 }
  0x75   :  { %6358 = vmatprep.subr.bf16.mxu0 %v8561_v52  ;;  %6686 = vmatprep.subr.bf16.mxu1 %v8563_v54  ;;  %v204_v33 = vld [vmem:[#allocation5 + $0x320] sm:$0xff]  ;;  %v8611_v39 = vcombine.high %v201_v34, %v205_v35  ;;  %v209_v42 = vld [vmem:[#allocation5 + $0x348] sm:$0xff]  ;;  %v8610_v45 = vcombine.low %v201_v34, %v205_v35 }
  0x76   :  { %v8609_v38 = vcombine.high %v200_v32, %v204_v33  ;;  %v208_v40 = vld [vmem:[#allocation5 + $0x340] sm:$0xff]  ;;  %v213_v43 = vld [vmem:[#allocation5 + $0x368] sm:$0xff]  ;;  %v8608_v44 = vcombine.low %v200_v32, %v204_v33 }
  0x77   :  { %v212_v41 = vld [vmem:[#allocation5 + $0x360] sm:$0xff]  ;;  %v8619_v47 = vcombine.high %v209_v42, %v213_v43  ;;  %v217_v50 = vld [vmem:[#allocation5 + $0x388] sm:$0xff]  ;;  %v8618_v54 = vcombine.low %v209_v42, %v213_v43 }
  0x78   :  { %6359 = vmatpush1.bf16.msra.mxu0 %v8560_v60  ;;  %6687 = vmatpush1.bf16.msra.mxu1 %v8562_v61  ;;  %v8617_v46 = vcombine.high %v208_v40, %v212_v41  ;;  %v216_v48 = vld [vmem:[#allocation5 + $0x380] sm:$0xff]  ;;  %v221_v51 = vld [vmem:[#allocation5 + $0x3a8] sm:$0xff]  ;;  %v8616_v52 = vcombine.low %v208_v40, %v212_v41 }
  0x79   :  { %6360 = vmatprep.subr.bf16.mxu0 %v8569_v62  ;;  %6688 = vmatprep.subr.bf16.mxu1 %v8571_v63  ;;  %v220_v49 = vld [vmem:[#allocation5 + $0x3a0] sm:$0xff]  ;;  %v8627_v56 = vcombine.high %v217_v50, %v221_v51  ;;  %v225_v60 = vld [vmem:[#allocation5 + $0x3c8] sm:$0xff]  ;;  %v8626_v63 = vcombine.low %v217_v50, %v221_v51 }
  0x7a   :  { %v8625_v55 = vcombine.high %v216_v48, %v220_v49  ;;  %v224_v58 = vld [vmem:[#allocation5 + $0x3c0] sm:$0xff]  ;;  %v229_v61 = vld [vmem:[#allocation5 + $0x3e8] sm:$0xff]  ;;  %v8624_v62 = vcombine.low %v216_v48, %v220_v49 }
  0x7b   :  { %v228_v59 = vld [vmem:[#allocation5 + $0x3e0] sm:$0xff]  ;;  %v8635_v1 = vcombine.high %v225_v60, %v229_v61 }
  0x7c   :  { %6361 = vmatpush1.bf16.msra.mxu0 %v8568_v4  ;;  %6689 = vmatpush1.bf16.msra.mxu1 %v8570_v5  ;;  %v8633_v0 = vcombine.high %v224_v58, %v228_v59  ;;  %v232_v2 = vld [vmem:[#allocation5 + $0x400] sm:$0xff]  ;;  %v233_v4 = vld [vmem:[#allocation5 + $0x408] sm:$0xff] }
  0x7d   :  { %6362 = vmatprep.subr.bf16.mxu0 %v8577_v6  ;;  %6690 = vmatprep.subr.bf16.mxu1 %v8579_v7  ;;  %v236_v3 = vld [vmem:[#allocation5 + $0x420] sm:$0xff]  ;;  %v237_v5 = vld [vmem:[#allocation5 + $0x428] sm:$0xff]  ;;  %v8632_v6 = vcombine.low %v224_v58, %v228_v59  ;;  %v8634_v7 = vcombine.low %v225_v60, %v229_v61 }
  0x7e   :  { %v8641_v8 = vcombine.high %v232_v2, %v236_v3  ;;  %v8643_v9 = vcombine.high %v233_v4, %v237_v5  ;;  %v240_v10 = vld [vmem:[#allocation5 + $0x440] sm:$0xff]  ;;  %v8640_v16 = vcombine.low %v232_v2, %v236_v3  ;;  %v8642_v17 = vcombine.low %v233_v4, %v237_v5 }
  0x7f   :  { %v244_v11 = vld [vmem:[#allocation5 + $0x460] sm:$0xff] }
  0x80   :  { %6363 = vmatpush1.bf16.msra.mxu0 %v8576_v12  ;;  %6691 = vmatpush1.bf16.msra.mxu1 %v8578_v13  ;;  %v10172_v12 = vcombine.low %v10162_v53, %v10162_v53  ;;  %v241_v13 = vld [vmem:[#allocation5 + $0x448] sm:$0xff]  ;;  %v8649_v18 = vcombine.high %v240_v10, %v244_v11  ;;  %v248_v19 = vld [vmem:[#allocation5 + $0x480] sm:$0xff]  ;;  %v8648_v24 = vcombine.low %v240_v10, %v244_v11 }
  0x81   :  { %6364 = vmatprep.subr.bf16.mxu0 %v8585_v14  ;;  %6692 = vmatprep.subr.bf16.mxu1 %v8587_v15  ;;  %v245_v14 = vld [vmem:[#allocation5 + $0x468] sm:$0xff]  ;;  %v256_v27 = vld [vmem:[#allocation5 + $0x4c0] sm:$0xff] }
  0x82   :  { %v10174_v15 = vld [vmem:[#allocation2 + $0x8] sm:$0xff]  ;;  %v8650_v25 = vcombine.low %v241_v13, %v245_v14  ;;  %v264_v35 = vld [vmem:[#allocation5 + $0x500] sm:$0xff] }
  0x83   :  { %v10178_v53 = vcombine.high %v10174_v15, %v10174_v15  ;;  %v272_v43 = vld [vmem:[#allocation5 + $0x540] sm:$0xff] }
  0x84   :  { %6365 = vmatpush1.bf16.msra.mxu0 %v8584_v20  ;;  %6693 = vmatpush1.bf16.msra.mxu1 %v8586_v21  ;;  %v252_v20 = vld [vmem:[#allocation5 + $0x4a0] sm:$0xff]  ;;  %v8651_v21 = vcombine.high %v241_v13, %v245_v14 }
  0x85   :  { %6366 = vmatprep.subr.bf16.mxu0 %v8593_v22  ;;  %6694 = vmatprep.subr.bf16.mxu1 %v8595_v23  ;;  %v249_v22 = vld [vmem:[#allocation5 + $0x488] sm:$0xff]  ;;  %v8657_v26 = vcombine.high %v248_v19, %v252_v20  ;;  %v8656_v32 = vcombine.low %v248_v19, %v252_v20  ;;  %v280_v51 = vld [vmem:[#allocation5 + $0x580] sm:$0xff] }
  0x86   :  { %v253_v23 = vld [vmem:[#allocation5 + $0x4a8] sm:$0xff]  ;;  %v288_v61 = vld [vmem:[#allocation5 + $0x5c0] sm:$0xff] }
  0x87   :  { %v8658_v33 = vcombine.low %v249_v22, %v253_v23  ;;  %v296_v5 = vld [vmem:[#allocation5 + $0x600] sm:$0xff]  ;;  %v309_v19 = vld [vmem:[#allocation5 + $0x668] sm:$0xff] }
  0x88   :  { %6367 = vmatpush1.bf16.msra.mxu0 %v8592_v28  ;;  %6695 = vmatpush1.bf16.msra.mxu1 %v8594_v29  ;;  %v260_v28 = vld [vmem:[#allocation5 + $0x4e0] sm:$0xff]  ;;  %v257_v29 = vld [vmem:[#allocation5 + $0x4c8] sm:$0xff] }
  0x89   :  { %6368 = vmatprep.subr.bf16.mxu0 %v8601_v30  ;;  %6696 = vmatprep.subr.bf16.mxu1 %v8603_v31  ;;  %v8659_v30 = vcombine.high %v249_v22, %v253_v23  ;;  %v261_v31 = vld [vmem:[#allocation5 + $0x4e8] sm:$0xff]  ;;  %v8665_v34 = vcombine.high %v256_v27, %v260_v28  ;;  %v8664_v40 = vcombine.low %v256_v27, %v260_v28  ;;  %v304_v14 = vld [vmem:[#allocation5 + $0x640] sm:$0xff] }
  0x8a   :  { %v8666_v41 = vcombine.low %v257_v29, %v261_v31  ;;  %v312_v23 = vld [vmem:[#allocation5 + $0x680] sm:$0xff]  ;;  %v317_v27 = vld [vmem:[#allocation5 + $0x6a8] sm:$0xff] }
  0x8c   :  { %6369 = vmatpush1.bf16.msra.mxu0 %v8600_v36  ;;  %6697 = vmatpush1.bf16.msra.mxu1 %v8602_v37  ;;  %v268_v36 = vld [vmem:[#allocation5 + $0x520] sm:$0xff]  ;;  %v265_v37 = vld [vmem:[#allocation5 + $0x508] sm:$0xff] }
  0x8d   :  { %6370 = vmatprep.subr.bf16.mxu0 %v8609_v38  ;;  %6698 = vmatprep.subr.bf16.mxu1 %v8611_v39  ;;  %v8667_v38 = vcombine.high %v257_v29, %v261_v31  ;;  %v269_v39 = vld [vmem:[#allocation5 + $0x528] sm:$0xff]  ;;  %v8673_v42 = vcombine.high %v264_v35, %v268_v36  ;;  %v8672_v48 = vcombine.low %v264_v35, %v268_v36  ;;  %v320_v31 = vld [vmem:[#allocation5 + $0x6c0] sm:$0xff] }
  0x8e   :  { %v8674_v49 = vcombine.low %v265_v37, %v269_v39  ;;  %v325_v35 = vld [vmem:[#allocation5 + $0x6e8] sm:$0xff] }
  0x90   :  { %6371 = vmatpush1.bf16.msra.mxu0 %v8608_v44  ;;  %6699 = vmatpush1.bf16.msra.mxu1 %v8610_v45  ;;  %v276_v44 = vld [vmem:[#allocation5 + $0x560] sm:$0xff]  ;;  %v273_v45 = vld [vmem:[#allocation5 + $0x548] sm:$0xff] }
  0x91   :  { %6372 = vmatprep.subr.bf16.mxu0 %v8617_v46  ;;  %6700 = vmatprep.subr.bf16.mxu1 %v8619_v47  ;;  %v8675_v46 = vcombine.high %v265_v37, %v269_v39  ;;  %v277_v47 = vld [vmem:[#allocation5 + $0x568] sm:$0xff]  ;;  %v8681_v50 = vcombine.high %v272_v43, %v276_v44  ;;  %v8680_v58 = vcombine.low %v272_v43, %v276_v44  ;;  %v328_v39 = vld [vmem:[#allocation5 + $0x700] sm:$0xff] }
  0x92   :  { %v8682_v59 = vcombine.low %v273_v45, %v277_v47  ;;  %v333_v43 = vld [vmem:[#allocation5 + $0x728] sm:$0xff] }
  0x94   :  { %6373 = vmatpush1.bf16.msra.mxu0 %v8616_v52  ;;  %6701 = vmatpush1.bf16.msra.mxu1 %v8618_v54  ;;  %v284_v52 = vld [vmem:[#allocation5 + $0x5a0] sm:$0xff]  ;;  %v281_v54 = vld [vmem:[#allocation5 + $0x588] sm:$0xff] }
  0x95   :  { %6374 = vmatprep.subr.bf16.mxu0 %v8625_v55  ;;  %6702 = vmatprep.subr.bf16.mxu1 %v8627_v56  ;;  %v8683_v55 = vcombine.high %v273_v45, %v277_v47  ;;  %v285_v56 = vld [vmem:[#allocation5 + $0x5a8] sm:$0xff]  ;;  %v8689_v60 = vcombine.high %v280_v51, %v284_v52  ;;  %v8688_v2 = vcombine.low %v280_v51, %v284_v52  ;;  %v336_v47 = vld [vmem:[#allocation5 + $0x740] sm:$0xff] }
  0x96   :  { %v8690_v3 = vcombine.low %v281_v54, %v285_v56  ;;  %v341_v51 = vld [vmem:[#allocation5 + $0x768] sm:$0xff] }
  0x98   :  { %6375 = vmatpush1.bf16.msra.mxu0 %v8624_v62  ;;  %6703 = vmatpush1.bf16.msra.mxu1 %v8626_v63  ;;  %v292_v62 = vld [vmem:[#allocation5 + $0x5e0] sm:$0xff]  ;;  %v289_v63 = vld [vmem:[#allocation5 + $0x5c8] sm:$0xff] }
  0x99   :  { %6376 = vmatprep.subr.bf16.mxu0 %v8633_v0  ;;  %6704 = vmatprep.subr.bf16.mxu1 %v8635_v1  ;;  %v8691_v0 = vcombine.high %v281_v54, %v285_v56  ;;  %v293_v1 = vld [vmem:[#allocation5 + $0x5e8] sm:$0xff]  ;;  %v8697_v4 = vcombine.high %v288_v61, %v292_v62  ;;  %v8696_v10 = vcombine.low %v288_v61, %v292_v62  ;;  %v344_v56 = vld [vmem:[#allocation5 + $0x780] sm:$0xff] }
  0x9a   :  { %v8698_v11 = vcombine.low %v289_v63, %v293_v1  ;;  %v349_v61 = vld [vmem:[#allocation5 + $0x7a8] sm:$0xff] }
  0x9c   :  { %6377 = vmatpush1.bf16.msra.mxu0 %v8632_v6  ;;  %6705 = vmatpush1.bf16.msra.mxu1 %v8634_v7  ;;  %v300_v6 = vld [vmem:[#allocation5 + $0x620] sm:$0xff]  ;;  %v297_v7 = vld [vmem:[#allocation5 + $0x608] sm:$0xff] }
  0x9d   :  { %6387 = vmatprep.subr.bf16.mxu0 %v8641_v8  ;;  %6715 = vmatprep.subr.bf16.mxu1 %v8643_v9  ;;  %v8699_v8 = vcombine.high %v289_v63, %v293_v1  ;;  %v301_v9 = vld [vmem:[#allocation5 + $0x628] sm:$0xff]  ;;  %v8705_v13 = vcombine.high %v296_v5, %v300_v6  ;;  %v8704_v20 = vcombine.low %v296_v5, %v300_v6  ;;  %v352_v1 = vld [vmem:[#allocation5 + $0x7c0] sm:$0xff] }
  0x9e   :  { %v357_v5 = vld [vmem:[#allocation5 + $0x7e8] sm:$0xff] }
  0x9f   :  { %6379 = vmatmul.mubr.bf16.vlgmr.msra.gmra.mrb[0].mxu0 %v10172_v12  ;;  %6707 = vmatmul.mubr.bf16.vlgmr.msra.gmra.mrb[0].mxu1 %v10172_v12 }
  0xa0   :  { %6388 = vmatpush1.bf16.msra.mxu0 %v8640_v16  ;;  %6716 = vmatpush1.bf16.msra.mxu1 %v8642_v17  ;;  %v308_v16 = vld [vmem:[#allocation5 + $0x660] sm:$0xff]  ;;  %v305_v17 = vld [vmem:[#allocation5 + $0x648] sm:$0xff] }
  0xa1   :  { %6389 = vmatprep.subr.bf16.mxu0 %v8649_v18  ;;  %6717 = vmatprep.subr.bf16.mxu1 %v8651_v21  ;;  %v8707_v18 = vcombine.high %v297_v7, %v301_v9  ;;  %v8706_v21 = vcombine.low %v297_v7, %v301_v9  ;;  %v8713_v22 = vcombine.high %v304_v14, %v308_v16  ;;  %v360_v9 = vld [vmem:[#allocation5 + $0x800] sm:$0xff] }
  0xa2   :  { %6419 = vmatprep.mubr.bf16.mxu0 %v10178_v53  ;;  %6747 = vmatprep.mubr.bf16.mxu1 %v10178_v53  ;;  %v8712_v28 = vcombine.low %v304_v14, %v308_v16  ;;  %v8714_v29 = vcombine.low %v305_v17, %v309_v19  ;;  %v365_v14 = vld [vmem:[#allocation5 + $0x828] sm:$0xff] }
  0xa4   :  { %6390 = vmatpush1.bf16.msra.mxu0 %v8648_v24  ;;  %6718 = vmatpush1.bf16.msra.mxu1 %v8650_v25  ;;  %v316_v24 = vld [vmem:[#allocation5 + $0x6a0] sm:$0xff]  ;;  %v313_v25 = vld [vmem:[#allocation5 + $0x688] sm:$0xff] }
  0xa5   :  { %6391 = vmatprep.subr.bf16.mxu0 %v8657_v26  ;;  %6719 = vmatprep.subr.bf16.mxu1 %v8659_v30  ;;  %v8715_v26 = vcombine.high %v305_v17, %v309_v19  ;;  %v8721_v30 = vcombine.high %v312_v23, %v316_v24  ;;  %v8720_v36 = vcombine.low %v312_v23, %v316_v24  ;;  %v368_v17 = vld [vmem:[#allocation5 + $0x840] sm:$0xff]  ;;  %v10184_v24 = vld [vmem:[#allocation2 + $0x10] sm:$0xff] }
  0xa6   :  { %v8722_v37 = vcombine.low %v313_v25, %v317_v27 }
  0xa8   :  { %6392 = vmatpush1.bf16.msra.mxu0 %v8656_v32  ;;  %6720 = vmatpush1.bf16.msra.mxu1 %v8658_v33  ;;  %v324_v32 = vld [vmem:[#allocation5 + $0x6e0] sm:$0xff]  ;;  %v321_v33 = vld [vmem:[#allocation5 + $0x6c8] sm:$0xff] }
  0xa9   :  { %6393 = vmatprep.subr.bf16.mxu0 %v8665_v34  ;;  %6721 = vmatprep.subr.bf16.mxu1 %v8667_v38  ;;  %v8723_v34 = vcombine.high %v313_v25, %v317_v27  ;;  %v8729_v38 = vcombine.high %v320_v31, %v324_v32  ;;  %v8728_v44 = vcombine.low %v320_v31, %v324_v32  ;;  %v380_v31 = vld [vmem:[#allocation5 + $0x8a0] sm:$0xff] }
  0xaa   :  { %v8730_v45 = vcombine.low %v321_v33, %v325_v35  ;;  %v10188_v25 = vcombine.low %v10174_v15, %v10174_v15  ;;  %v10192_v32 = vcombine.high %v10184_v24, %v10184_v24 }
  0xac   :  { %6394 = vmatpush1.bf16.msra.mxu0 %v8664_v40  ;;  %6722 = vmatpush1.bf16.msra.mxu1 %v8666_v41  ;;  %v332_v40 = vld [vmem:[#allocation5 + $0x720] sm:$0xff]  ;;  %v329_v41 = vld [vmem:[#allocation5 + $0x708] sm:$0xff] }
  0xad   :  { %6395 = vmatprep.subr.bf16.mxu0 %v8673_v42  ;;  %6723 = vmatprep.subr.bf16.mxu1 %v8675_v46  ;;  %v8731_v42 = vcombine.high %v321_v33, %v325_v35  ;;  %v8737_v46 = vcombine.high %v328_v39, %v332_v40  ;;  %v8736_v52 = vcombine.low %v328_v39, %v332_v40  ;;  %v377_v33 = vld [vmem:[#allocation5 + $0x888] sm:$0xff]  ;;  %v388_v39 = vld [vmem:[#allocation5 + $0x8e0] sm:$0xff] }
  0xae   :  { %v8738_v54 = vcombine.low %v329_v41, %v333_v43  ;;  %v385_v40 = vld [vmem:[#allocation5 + $0x8c8] sm:$0xff] }
  0xb0   :  { %6396 = vmatpush1.bf16.msra.mxu0 %v8672_v48  ;;  %6724 = vmatpush1.bf16.msra.mxu1 %v8674_v49  ;;  %v340_v48 = vld [vmem:[#allocation5 + $0x760] sm:$0xff]  ;;  %v337_v49 = vld [vmem:[#allocation5 + $0x748] sm:$0xff] }
  0xb1   :  { %6397 = vmatprep.subr.bf16.mxu0 %v8681_v50  ;;  %6725 = vmatprep.subr.bf16.mxu1 %v8683_v55  ;;  %v8739_v50 = vcombine.high %v329_v41, %v333_v43  ;;  %v8745_v55 = vcombine.high %v336_v47, %v340_v48  ;;  %v8744_v62 = vcombine.low %v336_v47, %v340_v48  ;;  %v389_v41 = vld [vmem:[#allocation5 + $0x8e8] sm:$0xff]  ;;  %v396_v47 = vld [vmem:[#allocation5 + $0x920] sm:$0xff] }
  0xb2   :  { %v8746_v63 = vcombine.low %v337_v49, %v341_v51  ;;  %v393_v48 = vld [vmem:[#allocation5 + $0x908] sm:$0xff] }
  0xb4   :  { %6398 = vmatpush1.bf16.msra.mxu0 %v8680_v58  ;;  %6726 = vmatpush1.bf16.msra.mxu1 %v8682_v59  ;;  %v348_v58 = vld [vmem:[#allocation5 + $0x7a0] sm:$0xff]  ;;  %v345_v59 = vld [vmem:[#allocation5 + $0x788] sm:$0xff] }
  0xb5   :  { %6399 = vmatprep.subr.bf16.mxu0 %v8689_v60  ;;  %6727 = vmatprep.subr.bf16.mxu1 %v8691_v0  ;;  %v8747_v60 = vcombine.high %v337_v49, %v341_v51  ;;  %v8753_v0 = vcombine.high %v344_v56, %v348_v58  ;;  %v8752_v6 = vcombine.low %v344_v56, %v348_v58  ;;  %v397_v49 = vld [vmem:[#allocation5 + $0x928] sm:$0xff]  ;;  %v404_v56 = vld [vmem:[#allocation5 + $0x960] sm:$0xff] }
  0xb6   :  { %v8754_v7 = vcombine.low %v345_v59, %v349_v61  ;;  %v8794_v51 = vcombine.low %v385_v40, %v389_v41  ;;  %v401_v58 = vld [vmem:[#allocation5 + $0x948] sm:$0xff] }
  0xb8   :  { %6400 = vmatpush1.bf16.msra.mxu0 %v8688_v2  ;;  %6728 = vmatpush1.bf16.msra.mxu1 %v8690_v3  ;;  %v356_v2 = vld [vmem:[#allocation5 + $0x7e0] sm:$0xff]  ;;  %v353_v3 = vld [vmem:[#allocation5 + $0x7c8] sm:$0xff] }
  0xb9   :  { %6401 = vmatprep.subr.bf16.mxu0 %v8697_v4  ;;  %6729 = vmatprep.subr.bf16.mxu1 %v8699_v8  ;;  %v8755_v4 = vcombine.high %v345_v59, %v349_v61  ;;  %v8761_v8 = vcombine.high %v352_v1, %v356_v2  ;;  %v8760_v16 = vcombine.low %v352_v1, %v356_v2  ;;  %v405_v59 = vld [vmem:[#allocation5 + $0x968] sm:$0xff]  ;;  %v412_v1 = vld [vmem:[#allocation5 + $0x9a0] sm:$0xff] }
  0xba   :  { %v8802_v61 = vcombine.low %v393_v48, %v397_v49  ;;  %v409_v2 = vld [vmem:[#allocation5 + $0x988] sm:$0xff] }
  0xbc   :  { %6402 = vmatpush1.bf16.msra.mxu0 %v8696_v10  ;;  %6730 = vmatpush1.bf16.msra.mxu1 %v8698_v11  ;;  %v364_v10 = vld [vmem:[#allocation5 + $0x820] sm:$0xff]  ;;  %v361_v11 = vld [vmem:[#allocation5 + $0x808] sm:$0xff] }
  0xbd   :  { %6403 = vmatprep.subr.bf16.mxu0 %v8705_v13  ;;  %6731 = vmatprep.subr.bf16.mxu1 %v8707_v18  ;;  %v8763_v13 = vcombine.high %v353_v3, %v357_v5  ;;  %v8762_v18 = vcombine.low %v353_v3, %v357_v5  ;;  %v8769_v19 = vcombine.high %v360_v9, %v364_v10  ;;  %v413_v3 = vld [vmem:[#allocation5 + $0x9a8] sm:$0xff] }
  0xbe   :  { %v8771_v23 = vcombine.high %v361_v11, %v365_v14  ;;  %v8770_v27 = vcombine.low %v361_v11, %v365_v14  ;;  %v8810_v5 = vcombine.low %v401_v58, %v405_v59  ;;  %v421_v11 = vld [vmem:[#allocation5 + $0x9e8] sm:$0xff]  ;;  %v8818_v14 = vcombine.low %v409_v2, %v413_v3 }
  0xc0   :  { %6404 = vmatpush1.bf16.msra.mxu0 %v8704_v20  ;;  %6732 = vmatpush1.bf16.msra.mxu1 %v8706_v21  ;;  %v372_v20 = vld [vmem:[#allocation5 + $0x860] sm:$0xff]  ;;  %v369_v21 = vld [vmem:[#allocation5 + $0x848] sm:$0xff] }
  0xc1   :  { %6405 = vmatprep.subr.bf16.mxu0 %v8713_v22  ;;  %6733 = vmatprep.subr.bf16.mxu1 %v8715_v26  ;;  %v373_v22 = vld [vmem:[#allocation5 + $0x868] sm:$0xff]  ;;  %v8768_v26 = vcombine.low %v360_v9, %v364_v10  ;;  %v8776_v15 = vcombine.low %v368_v17, %v372_v20  ;;  %v420_v9 = vld [vmem:[#allocation5 + $0x9e0] sm:$0xff] }
  0xc2   :  { %v8778_v35 = vcombine.low %v369_v21, %v373_v22  ;;  %v417_v10 = vld [vmem:[#allocation5 + $0x9c8] sm:$0xff] }
  0xc4   :  { %6406 = vmatpush1.bf16.msra.mxu0 %v8712_v28  ;;  %6734 = vmatpush1.bf16.msra.mxu1 %v8714_v29  ;;  %v8777_v28 = vcombine.high %v368_v17, %v372_v20  ;;  %v8779_v29 = vcombine.high %v369_v21, %v373_v22  ;;  %v8827_v17 = vcombine.high %v417_v10, %v421_v11  ;;  %v425_v20 = vld [vmem:[#allocation5 + $0xa08] sm:$0xff] }
  0xc5   :  { %6407 = vmatprep.subr.bf16.mxu0 %v8721_v30  ;;  %6735 = vmatprep.subr.bf16.mxu1 %v8723_v34  ;;  %v376_v30 = vld [vmem:[#allocation5 + $0x880] sm:$0xff]  ;;  %v381_v34 = vld [vmem:[#allocation5 + $0x8a8] sm:$0xff] }
  0xc6   :  { %v8786_v43 = vcombine.low %v377_v33, %v381_v34  ;;  %v429_v21 = vld [vmem:[#allocation5 + $0xa28] sm:$0xff] }
  0xc8   :  { %6408 = vmatpush1.bf16.msra.mxu0 %v8720_v36  ;;  %6736 = vmatpush1.bf16.msra.mxu1 %v8722_v37  ;;  %v8785_v36 = vcombine.high %v376_v30, %v380_v31  ;;  %v8787_v37 = vcombine.high %v377_v33, %v381_v34  ;;  %v8834_v34 = vcombine.low %v425_v20, %v429_v21 }
  0xc9   :  { %6409 = vmatprep.subr.bf16.mxu0 %v8729_v38  ;;  %6737 = vmatprep.subr.bf16.mxu1 %v8731_v42  ;;  %v384_v38 = vld [vmem:[#allocation5 + $0x8c0] sm:$0xff]  ;;  %v8784_v42 = vcombine.low %v376_v30, %v380_v31  ;;  %v433_v30 = vld [vmem:[#allocation5 + $0xa48] sm:$0xff] }
  0xca   :  { %v437_v31 = vld [vmem:[#allocation5 + $0xa68] sm:$0xff] }
  0xcc   :  { %6410 = vmatpush1.bf16.msra.mxu0 %v8728_v44  ;;  %6738 = vmatpush1.bf16.msra.mxu1 %v8730_v45  ;;  %v8793_v44 = vcombine.high %v384_v38, %v388_v39  ;;  %v8795_v45 = vcombine.high %v385_v40, %v389_v41  ;;  %v8842_v41 = vcombine.low %v433_v30, %v437_v31 }
  0xcd   :  { %6411 = vmatprep.subr.bf16.mxu0 %v8737_v46  ;;  %6739 = vmatprep.subr.bf16.mxu1 %v8739_v50  ;;  %v392_v46 = vld [vmem:[#allocation5 + $0x900] sm:$0xff]  ;;  %v8792_v50 = vcombine.low %v384_v38, %v388_v39  ;;  %v441_v38 = vld [vmem:[#allocation5 + $0xa88] sm:$0xff] }
  0xce   :  { %v445_v39 = vld [vmem:[#allocation5 + $0xaa8] sm:$0xff] }
  0xd0   :  { %6412 = vmatpush1.bf16.msra.mxu0 %v8736_v52  ;;  %6740 = vmatpush1.bf16.msra.mxu1 %v8738_v54  ;;  %v8801_v52 = vcombine.high %v392_v46, %v396_v47  ;;  %v8803_v54 = vcombine.high %v393_v48, %v397_v49  ;;  %v8850_v49 = vcombine.low %v441_v38, %v445_v39 }
  0xd1   :  { %6413 = vmatprep.subr.bf16.mxu0 %v8745_v55  ;;  %6741 = vmatprep.subr.bf16.mxu1 %v8747_v60  ;;  %v400_v55 = vld [vmem:[#allocation5 + $0x940] sm:$0xff]  ;;  %v8800_v60 = vcombine.low %v392_v46, %v396_v47  ;;  %v449_v46 = vld [vmem:[#allocation5 + $0xac8] sm:$0xff] }
  0xd2   :  { %v453_v47 = vld [vmem:[#allocation5 + $0xae8] sm:$0xff] }
  0xd4   :  { %6414 = vmatpush1.bf16.msra.mxu0 %v8744_v62  ;;  %6742 = vmatpush1.bf16.msra.mxu1 %v8746_v63  ;;  %v8809_v62 = vcombine.high %v400_v55, %v404_v56  ;;  %v8811_v63 = vcombine.high %v401_v58, %v405_v59  ;;  %v8858_v59 = vcombine.low %v449_v46, %v453_v47 }
  0xd5   :  { %6415 = vmatprep.subr.bf16.mxu0 %v8753_v0  ;;  %6743 = vmatprep.subr.bf16.mxu1 %v8755_v4  ;;  %v408_v0 = vld [vmem:[#allocation5 + $0x980] sm:$0xff]  ;;  %v8808_v4 = vcombine.low %v400_v55, %v404_v56  ;;  %v457_v55 = vld [vmem:[#allocation5 + $0xb08] sm:$0xff] }
  0xd6   :  { %v461_v56 = vld [vmem:[#allocation5 + $0xb28] sm:$0xff] }
  0xd8   :  { %6416 = vmatpush1.bf16.msra.mxu0 %v8752_v6  ;;  %6744 = vmatpush1.bf16.msra.mxu1 %v8754_v7  ;;  %v8817_v6 = vcombine.high %v408_v0, %v412_v1  ;;  %v8819_v7 = vcombine.high %v409_v2, %v413_v3  ;;  %v8866_v3 = vcombine.low %v457_v55, %v461_v56 }
  0xd9   :  { %6417 = vmatprep.subr.bf16.mxu0 %v8761_v8  ;;  %6745 = vmatprep.subr.bf16.mxu1 %v8763_v13  ;;  %v416_v8 = vld [vmem:[#allocation5 + $0x9c0] sm:$0xff]  ;;  %v8816_v13 = vcombine.low %v408_v0, %v412_v1  ;;  %v465_v0 = vld [vmem:[#allocation5 + $0xb48] sm:$0xff] }
  0xda   :  { %v8824_v22 = vcombine.low %v416_v8, %v420_v9  ;;  %v469_v1 = vld [vmem:[#allocation5 + $0xb68] sm:$0xff] }
  0xdc   :  { %6418 = vmatpush1.bf16.msra.mxu0 %v8760_v16  ;;  %6746 = vmatpush1.bf16.msra.mxu1 %v8762_v18  ;;  %v8825_v16 = vcombine.high %v416_v8, %v420_v9  ;;  %v424_v18 = vld [vmem:[#allocation5 + $0xa00] sm:$0xff]  ;;  %v473_v8 = vld [vmem:[#allocation5 + $0xb88] sm:$0xff] }
  0xdd   :  { %6428 = vmatprep.subr.bf16.mxu0 %v8769_v19  ;;  %6756 = vmatprep.subr.bf16.mxu1 %v8771_v23  ;;  %v428_v19 = vld [vmem:[#allocation5 + $0xa20] sm:$0xff]  ;;  %v8826_v23 = vcombine.low %v417_v10, %v421_v11  ;;  %v477_v9 = vld [vmem:[#allocation5 + $0xba8] sm:$0xff]  ;;  %v8874_v11 = vcombine.low %v465_v0, %v469_v1 }
  0xde   :  { %v8832_v33 = vcombine.low %v424_v18, %v428_v19 }
  0xdf   :  { %6420 = vmatmul.mubr.bf16.vlgmr.msra.gmra.mrb[0].mxu0 %v10188_v25  ;;  %6748 = vmatmul.mubr.bf16.vlgmr.msra.gmra.mrb[0].mxu1 %v10188_v25 }
  0xe0   :  { %6429 = vmatpush1.bf16.msra.mxu0 %v8768_v26  ;;  %6757 = vmatpush1.bf16.msra.mxu1 %v8770_v27  ;;  %v8833_v26 = vcombine.high %v424_v18, %v428_v19  ;;  %v8835_v27 = vcombine.high %v425_v20, %v429_v21  ;;  %v481_v18 = vld [vmem:[#allocation5 + $0xbc8] sm:$0xff]  ;;  %v8882_v21 = vcombine.low %v473_v8, %v477_v9 }
  0xe1   :  { %6430 = vmatprep.subr.bf16.mxu0 %v8777_v28  ;;  %6758 = vmatprep.subr.bf16.mxu1 %v8779_v29  ;;  %v432_v28 = vld [vmem:[#allocation5 + $0xa40] sm:$0xff]  ;;  %v485_v19 = vld [vmem:[#allocation5 + $0xbe8] sm:$0xff] }
  0xe2   :  { %6460 = vmatprep.mubr.bf16.mxu0 %v10192_v32  ;;  %6788 = vmatprep.mubr.bf16.mxu1 %v10192_v32  ;;  %v436_v29 = vld [vmem:[#allocation5 + $0xa60] sm:$0xff] }
  0xe3   :  { %v8840_v40 = vcombine.low %v432_v28, %v436_v29 }
  0xe4   :  { %6431 = vmatpush1.bf16.msra.mxu0 %v8776_v15  ;;  %6759 = vmatpush1.bf16.msra.mxu1 %v8778_v35  ;;  %v8841_v15 = vcombine.high %v432_v28, %v436_v29  ;;  %v8843_v35 = vcombine.high %v433_v30, %v437_v31  ;;  %v489_v28 = vld [vmem:[#allocation5 + $0xc08] sm:$0xff]  ;;  %v8890_v31 = vcombine.low %v481_v18, %v485_v19 }
  0xe5   :  { %6432 = vmatprep.subr.bf16.mxu0 %v8785_v36  ;;  %6760 = vmatprep.subr.bf16.mxu1 %v8787_v37  ;;  %v440_v36 = vld [vmem:[#allocation5 + $0xa80] sm:$0xff]  ;;  %v493_v29 = vld [vmem:[#allocation5 + $0xc28] sm:$0xff] }
  0xe6   :  { %v444_v37 = vld [vmem:[#allocation5 + $0xaa0] sm:$0xff] }
  0xe7   :  { %v8848_v48 = vcombine.low %v440_v36, %v444_v37 }
  0xe8   :  { %6433 = vmatpush1.bf16.msra.mxu0 %v8784_v42  ;;  %6761 = vmatpush1.bf16.msra.mxu1 %v8786_v43  ;;  %v8849_v42 = vcombine.high %v440_v36, %v444_v37  ;;  %v8851_v43 = vcombine.high %v441_v38, %v445_v39  ;;  %v10200_v36 = vcombine.low %v10184_v24, %v10184_v24  ;;  %v497_v37 = vld [vmem:[#allocation5 + $0xc48] sm:$0xff]  ;;  %v10202_v39 = vld [vmem:[#allocation2 + $0x18] sm:$0xff] }
  0xe9   :  { %6434 = vmatprep.subr.bf16.mxu0 %v8793_v44  ;;  %6762 = vmatprep.subr.bf16.mxu1 %v8795_v45  ;;  %v448_v44 = vld [vmem:[#allocation5 + $0xac0] sm:$0xff]  ;;  %v501_v38 = vld [vmem:[#allocation5 + $0xc68] sm:$0xff] }
  0xea   :  { %v452_v45 = vld [vmem:[#allocation5 + $0xae0] sm:$0xff]  ;;  %v505_v24 = vld [vmem:[#allocation5 + $0xc88] sm:$0xff] }
  0xeb   :  { %v8856_v58 = vcombine.low %v448_v44, %v452_v45 }
  0xec   :  { %6435 = vmatpush1.bf16.msra.mxu0 %v8792_v50  ;;  %6763 = vmatpush1.bf16.msra.mxu1 %v8794_v51  ;;  %v8857_v50 = vcombine.high %v448_v44, %v452_v45  ;;  %v8859_v51 = vcombine.high %v449_v46, %v453_v47  ;;  %v504_v44 = vld [vmem:[#allocation5 + $0xc80] sm:$0xff]  ;;  %v10206_v46 = vcombine.high %v10202_v39, %v10202_v39  ;;  %v509_v47 = vld [vmem:[#allocation5 + $0xca8] sm:$0xff] }
  0xed   :  { %6436 = vmatprep.subr.bf16.mxu0 %v8801_v52  ;;  %6764 = vmatprep.subr.bf16.mxu1 %v8803_v54  ;;  %v456_v52 = vld [vmem:[#allocation5 + $0xb00] sm:$0xff] }
  0xee   :  { %v460_v54 = vld [vmem:[#allocation5 + $0xb20] sm:$0xff] }
  0xef   :  { %v8864_v2 = vcombine.low %v456_v52, %v460_v54  ;;  %v508_v45 = vld [vmem:[#allocation5 + $0xca0] sm:$0xff] }
  0xf0   :  { %6437 = vmatpush1.bf16.msra.mxu0 %v8800_v60  ;;  %6765 = vmatpush1.bf16.msra.mxu1 %v8802_v61  ;;  %v8865_v60 = vcombine.high %v456_v52, %v460_v54  ;;  %v8867_v61 = vcombine.high %v457_v55, %v461_v56  ;;  %v512_v52 = vld [vmem:[#allocation5 + $0xcc0] sm:$0xff]  ;;  %v513_v55 = vld [vmem:[#allocation5 + $0xcc8] sm:$0xff] }
  0xf1   :  { %6438 = vmatprep.subr.bf16.mxu0 %v8809_v62  ;;  %6766 = vmatprep.subr.bf16.mxu1 %v8811_v63  ;;  %v464_v62 = vld [vmem:[#allocation5 + $0xb40] sm:$0xff]  ;;  %v517_v56 = vld [vmem:[#allocation5 + $0xce8] sm:$0xff] }
  0xf2   :  { %v468_v63 = vld [vmem:[#allocation5 + $0xb60] sm:$0xff] }
  0xf3   :  { %v8872_v10 = vcombine.low %v464_v62, %v468_v63  ;;  %v516_v54 = vld [vmem:[#allocation5 + $0xce0] sm:$0xff] }
  0xf4   :  { %6439 = vmatpush1.bf16.msra.mxu0 %v8808_v4  ;;  %6767 = vmatpush1.bf16.msra.mxu1 %v8810_v5  ;;  %v8873_v4 = vcombine.high %v464_v62, %v468_v63  ;;  %v8875_v5 = vcombine.high %v465_v0, %v469_v1  ;;  %v520_v62 = vld [vmem:[#allocation5 + $0xd00] sm:$0xff]  ;;  %v521_v0 = vld [vmem:[#allocation5 + $0xd08] sm:$0xff] }
  0xf5   :  { %6440 = vmatprep.subr.bf16.mxu0 %v8817_v6  ;;  %6768 = vmatprep.subr.bf16.mxu1 %v8819_v7  ;;  %v472_v6 = vld [vmem:[#allocation5 + $0xb80] sm:$0xff]  ;;  %v525_v1 = vld [vmem:[#allocation5 + $0xd28] sm:$0xff] }
  0xf6   :  { %v476_v7 = vld [vmem:[#allocation5 + $0xba0] sm:$0xff] }
  0xf7   :  { %v8880_v20 = vcombine.low %v472_v6, %v476_v7  ;;  %v524_v63 = vld [vmem:[#allocation5 + $0xd20] sm:$0xff] }
  0xf8   :  { %6441 = vmatpush1.bf16.msra.mxu0 %v8816_v13  ;;  %6769 = vmatpush1.bf16.msra.mxu1 %v8818_v14  ;;  %v8881_v13 = vcombine.high %v472_v6, %v476_v7  ;;  %v8883_v14 = vcombine.high %v473_v8, %v477_v9  ;;  %v528_v6 = vld [vmem:[#allocation5 + $0xd40] sm:$0xff]  ;;  %v529_v8 = vld [vmem:[#allocation5 + $0xd48] sm:$0xff] }
  0xf9   :  { %6442 = vmatprep.subr.bf16.mxu0 %v8825_v16  ;;  %6770 = vmatprep.subr.bf16.mxu1 %v8827_v17  ;;  %v480_v16 = vld [vmem:[#allocation5 + $0xbc0] sm:$0xff]  ;;  %v533_v9 = vld [vmem:[#allocation5 + $0xd68] sm:$0xff] }
  0xfa   :  { %v484_v17 = vld [vmem:[#allocation5 + $0xbe0] sm:$0xff] }
  0xfb   :  { %v8888_v30 = vcombine.low %v480_v16, %v484_v17  ;;  %v532_v7 = vld [vmem:[#allocation5 + $0xd60] sm:$0xff] }
  0xfc   :  { %6443 = vmatpush1.bf16.msra.mxu0 %v8824_v22  ;;  %6771 = vmatpush1.bf16.msra.mxu1 %v8826_v23  ;;  %v8889_v22 = vcombine.high %v480_v16, %v484_v17  ;;  %v8891_v23 = vcombine.high %v481_v18, %v485_v19  ;;  %v536_v16 = vld [vmem:[#allocation5 + $0xd80] sm:$0xff]  ;;  %v537_v18 = vld [vmem:[#allocation5 + $0xd88] sm:$0xff] }
  0xfd   :  { %6444 = vmatprep.subr.bf16.mxu0 %v8833_v26  ;;  %6772 = vmatprep.subr.bf16.mxu1 %v8835_v27  ;;  %v488_v26 = vld [vmem:[#allocation5 + $0xc00] sm:$0xff]  ;;  %v541_v19 = vld [vmem:[#allocation5 + $0xda8] sm:$0xff] }
  0xfe   :  { %v492_v27 = vld [vmem:[#allocation5 + $0xc20] sm:$0xff] }
  0xff   :  { %v540_v17 = vld [vmem:[#allocation5 + $0xda0] sm:$0xff] }
 0x100   :  { %6445 = vmatpush1.bf16.msra.mxu0 %v8832_v33  ;;  %6773 = vmatpush1.bf16.msra.mxu1 %v8834_v34  ;;  %v8897_v33 = vcombine.high %v488_v26, %v492_v27  ;;  %v8899_v34 = vcombine.high %v489_v28, %v493_v29 }
 0x101   :  { %6446 = vmatprep.subr.bf16.mxu0 %v8841_v15  ;;  %6774 = vmatprep.subr.bf16.mxu1 %v8843_v35  ;;  %v496_v15 = vld [vmem:[#allocation5 + $0xc40] sm:$0xff] }
 0x102   :  { %v500_v35 = vld [vmem:[#allocation5 + $0xc60] sm:$0xff] }
 0x104   :  { %6447 = vmatpush1.bf16.msra.mxu0 %v8840_v40  ;;  %6775 = vmatpush1.bf16.msra.mxu1 %v8842_v41  ;;  %v8896_v40 = vcombine.low %v488_v26, %v492_v27  ;;  %v8898_v41 = vcombine.low %v489_v28, %v493_v29  ;;  %v544_v26 = vld [vmem:[#allocation5 + $0xdc0] sm:$0xff]  ;;  %v545_v28 = vld [vmem:[#allocation5 + $0xdc8] sm:$0xff] }
 0x105   :  { %6448 = vmatprep.subr.bf16.mxu0 %v8849_v42  ;;  %6776 = vmatprep.subr.bf16.mxu1 %v8851_v43  ;;  %v8905_v42 = vcombine.high %v496_v15, %v500_v35  ;;  %v8907_v43 = vcombine.high %v497_v37, %v501_v38  ;;  %v548_v27 = vld [vmem:[#allocation5 + $0xde0] sm:$0xff]  ;;  %v549_v29 = vld [vmem:[#allocation5 + $0xde8] sm:$0xff] }
 0x108   :  { %6449 = vmatpush1.bf16.msra.mxu0 %v8848_v48  ;;  %6777 = vmatpush1.bf16.msra.mxu1 %v8850_v49  ;;  %v8904_v48 = vcombine.low %v496_v15, %v500_v35  ;;  %v8906_v49 = vcombine.low %v497_v37, %v501_v38  ;;  %v552_v15 = vld [vmem:[#allocation5 + $0xe00] sm:$0xff]  ;;  %v553_v37 = vld [vmem:[#allocation5 + $0xe08] sm:$0xff] }
 0x109   :  { %6450 = vmatprep.subr.bf16.mxu0 %v8857_v50  ;;  %6778 = vmatprep.subr.bf16.mxu1 %v8859_v51  ;;  %v8913_v50 = vcombine.high %v504_v44, %v508_v45  ;;  %v8915_v51 = vcombine.high %v505_v24, %v509_v47  ;;  %v556_v35 = vld [vmem:[#allocation5 + $0xe20] sm:$0xff]  ;;  %v557_v38 = vld [vmem:[#allocation5 + $0xe28] sm:$0xff] }
 0x10c   :  { %6451 = vmatpush1.bf16.msra.mxu0 %v8856_v58  ;;  %6779 = vmatpush1.bf16.msra.mxu1 %v8858_v59  ;;  %v8912_v58 = vcombine.low %v504_v44, %v508_v45  ;;  %v8914_v59 = vcombine.low %v505_v24, %v509_v47  ;;  %v560_v44 = vld [vmem:[#allocation5 + $0xe40] sm:$0xff]  ;;  %v561_v24 = vld [vmem:[#allocation5 + $0xe48] sm:$0xff] }
 0x10d   :  { %6452 = vmatprep.subr.bf16.mxu0 %v8865_v60  ;;  %6780 = vmatprep.subr.bf16.mxu1 %v8867_v61  ;;  %v8921_v60 = vcombine.high %v512_v52, %v516_v54  ;;  %v8923_v61 = vcombine.high %v513_v55, %v517_v56  ;;  %v564_v45 = vld [vmem:[#allocation5 + $0xe60] sm:$0xff]  ;;  %v565_v47 = vld [vmem:[#allocation5 + $0xe68] sm:$0xff] }
 0x110   :  { %6453 = vmatpush1.bf16.msra.mxu0 %v8864_v2  ;;  %6781 = vmatpush1.bf16.msra.mxu1 %v8866_v3  ;;  %v8920_v2 = vcombine.low %v512_v52, %v516_v54  ;;  %v8922_v3 = vcombine.low %v513_v55, %v517_v56  ;;  %v568_v52 = vld [vmem:[#allocation5 + $0xe80] sm:$0xff]  ;;  %v569_v55 = vld [vmem:[#allocation5 + $0xe88] sm:$0xff] }
 0x111   :  { %6454 = vmatprep.subr.bf16.mxu0 %v8873_v4  ;;  %6782 = vmatprep.subr.bf16.mxu1 %v8875_v5  ;;  %v8929_v4 = vcombine.high %v520_v62, %v524_v63  ;;  %v8931_v5 = vcombine.high %v521_v0, %v525_v1  ;;  %v572_v54 = vld [vmem:[#allocation5 + $0xea0] sm:$0xff]  ;;  %v573_v56 = vld [vmem:[#allocation5 + $0xea8] sm:$0xff] }
 0x114   :  { %6455 = vmatpush1.bf16.msra.mxu0 %v8872_v10  ;;  %6783 = vmatpush1.bf16.msra.mxu1 %v8874_v11  ;;  %v8928_v10 = vcombine.low %v520_v62, %v524_v63  ;;  %v8930_v11 = vcombine.low %v521_v0, %v525_v1  ;;  %v576_v62 = vld [vmem:[#allocation5 + $0xec0] sm:$0xff]  ;;  %v577_v0 = vld [vmem:[#allocation5 + $0xec8] sm:$0xff] }
 0x115   :  { %6456 = vmatprep.subr.bf16.mxu0 %v8881_v13  ;;  %6784 = vmatprep.subr.bf16.mxu1 %v8883_v14  ;;  %v8937_v13 = vcombine.high %v528_v6, %v532_v7  ;;  %v8939_v14 = vcombine.high %v529_v8, %v533_v9  ;;  %v580_v63 = vld [vmem:[#allocation5 + $0xee0] sm:$0xff]  ;;  %v581_v1 = vld [vmem:[#allocation5 + $0xee8] sm:$0xff] }
 0x118   :  { %6457 = vmatpush1.bf16.msra.mxu0 %v8880_v20  ;;  %6785 = vmatpush1.bf16.msra.mxu1 %v8882_v21  ;;  %v8936_v20 = vcombine.low %v528_v6, %v532_v7  ;;  %v8938_v21 = vcombine.low %v529_v8, %v533_v9  ;;  %v584_v6 = vld [vmem:[#allocation5 + $0xf00] sm:$0xff]  ;;  %v585_v8 = vld [vmem:[#allocation5 + $0xf08] sm:$0xff] }
 0x119   :  { %6458 = vmatprep.subr.bf16.mxu0 %v8889_v22  ;;  %6786 = vmatprep.subr.bf16.mxu1 %v8891_v23  ;;  %v8945_v22 = vcombine.high %v536_v16, %v540_v17  ;;  %v8947_v23 = vcombine.high %v537_v18, %v541_v19  ;;  %v588_v7 = vld [vmem:[#allocation5 + $0xf20] sm:$0xff]  ;;  %v589_v9 = vld [vmem:[#allocation5 + $0xf28] sm:$0xff] }
 0x11c   :  { %6459 = vmatpush1.bf16.msra.mxu0 %v8888_v30  ;;  %6787 = vmatpush1.bf16.msra.mxu1 %v8890_v31  ;;  %v8944_v30 = vcombine.low %v536_v16, %v540_v17  ;;  %v8946_v31 = vcombine.low %v537_v18, %v541_v19  ;;  %v592_v16 = vld [vmem:[#allocation5 + $0xf40] sm:$0xff]  ;;  %v593_v18 = vld [vmem:[#allocation5 + $0xf48] sm:$0xff] }
 0x11d   :  { %6469 = vmatprep.subr.bf16.mxu0 %v8897_v33  ;;  %6797 = vmatprep.subr.bf16.mxu1 %v8899_v34  ;;  %v8953_v33 = vcombine.high %v544_v26, %v548_v27  ;;  %v8955_v34 = vcombine.high %v545_v28, %v549_v29  ;;  %v596_v17 = vld [vmem:[#allocation5 + $0xf60] sm:$0xff]  ;;  %v597_v19 = vld [vmem:[#allocation5 + $0xf68] sm:$0xff] }
 0x11f   :  { %6461 = vmatmul.mubr.bf16.vlgmr.msra.gmra.mrb[0].mxu0 %v10200_v36  ;;  %6789 = vmatmul.mubr.bf16.vlgmr.msra.gmra.mrb[0].mxu1 %v10200_v36 }
 0x120   :  { %6470 = vmatpush1.bf16.msra.mxu0 %v8896_v40  ;;  %6798 = vmatpush1.bf16.msra.mxu1 %v8898_v41  ;;  %v8952_v40 = vcombine.low %v544_v26, %v548_v27  ;;  %v8954_v41 = vcombine.low %v545_v28, %v549_v29  ;;  %v600_v26 = vld [vmem:[#allocation5 + $0xf80] sm:$0xff]  ;;  %v601_v28 = vld [vmem:[#allocation5 + $0xf88] sm:$0xff] }
 0x121   :  { %6471 = vmatprep.subr.bf16.mxu0 %v8905_v42  ;;  %6799 = vmatprep.subr.bf16.mxu1 %v8907_v43  ;;  %v8961_v42 = vcombine.high %v552_v15, %v556_v35  ;;  %v8963_v43 = vcombine.high %v553_v37, %v557_v38  ;;  %v604_v27 = vld [vmem:[#allocation5 + $0xfa0] sm:$0xff]  ;;  %v605_v29 = vld [vmem:[#allocation5 + $0xfa8] sm:$0xff] }
 0x122   :  { %6501 = vmatprep.mubr.bf16.mxu0 %v10206_v46  ;;  %6829 = vmatprep.mubr.bf16.mxu1 %v10206_v46 }
 0x124   :  { %6472 = vmatpush1.bf16.msra.mxu0 %v8904_v48  ;;  %6800 = vmatpush1.bf16.msra.mxu1 %v8906_v49  ;;  %v8960_v48 = vcombine.low %v552_v15, %v556_v35  ;;  %v8962_v49 = vcombine.low %v553_v37, %v557_v38  ;;  %v608_v15 = vld [vmem:[#allocation5 + $0xfc0] sm:$0xff]  ;;  %v609_v37 = vld [vmem:[#allocation5 + $0xfc8] sm:$0xff] }
 0x125   :  { %6473 = vmatprep.subr.bf16.mxu0 %v8913_v50  ;;  %6801 = vmatprep.subr.bf16.mxu1 %v8915_v51  ;;  %v8969_v50 = vcombine.high %v560_v44, %v564_v45  ;;  %v8971_v51 = vcombine.high %v561_v24, %v565_v47  ;;  %v612_v35 = vld [vmem:[#allocation5 + $0xfe0] sm:$0xff]  ;;  %v613_v38 = vld [vmem:[#allocation5 + $0xfe8] sm:$0xff] }
 0x128   :  { %6474 = vmatpush1.bf16.msra.mxu0 %v8912_v58  ;;  %6802 = vmatpush1.bf16.msra.mxu1 %v8914_v59  ;;  %v8968_v58 = vcombine.low %v560_v44, %v564_v45  ;;  %v8970_v59 = vcombine.low %v561_v24, %v565_v47  ;;  %v616_v44 = vld [vmem:[#allocation5 + $0x1000] sm:$0xff]  ;;  %v617_v24 = vld [vmem:[#allocation5 + $0x1008] sm:$0xff] }
 0x129   :  { %6475 = vmatprep.subr.bf16.mxu0 %v8921_v60  ;;  %6803 = vmatprep.subr.bf16.mxu1 %v8923_v61  ;;  %v8977_v60 = vcombine.high %v568_v52, %v572_v54  ;;  %v8979_v61 = vcombine.high %v569_v55, %v573_v56  ;;  %v620_v45 = vld [vmem:[#allocation5 + $0x1020] sm:$0xff]  ;;  %v621_v47 = vld [vmem:[#allocation5 + $0x1028] sm:$0xff] }
 0x12c   :  { %6476 = vmatpush1.bf16.msra.mxu0 %v8920_v2  ;;  %6804 = vmatpush1.bf16.msra.mxu1 %v8922_v3  ;;  %v8976_v2 = vcombine.low %v568_v52, %v572_v54  ;;  %v8978_v3 = vcombine.low %v569_v55, %v573_v56  ;;  %v624_v52 = vld [vmem:[#allocation5 + $0x1040] sm:$0xff]  ;;  %v10214_v55 = vcombine.low %v10202_v39, %v10202_v39  ;;  %v625_v56 = vld [vmem:[#allocation5 + $0x1048] sm:$0xff] }
 0x12d   :  { %6477 = vmatprep.subr.bf16.mxu0 %v8929_v4  ;;  %6805 = vmatprep.subr.bf16.mxu1 %v8931_v5  ;;  %v8985_v4 = vcombine.high %v576_v62, %v580_v63  ;;  %v8987_v5 = vcombine.high %v577_v0, %v581_v1  ;;  %v628_v54 = vld [vmem:[#allocation5 + $0x1060] sm:$0xff]  ;;  %v633_v39 = vld [vmem:[#allocation5 + $0x1088] sm:$0xff] }
 0x130   :  { %6478 = vmatpush1.bf16.msra.mxu0 %v8928_v10  ;;  %6806 = vmatpush1.bf16.msra.mxu1 %v8930_v11  ;;  %v8984_v10 = vcombine.low %v576_v62, %v580_v63  ;;  %v8986_v11 = vcombine.low %v577_v0, %v581_v1  ;;  %v9033_v62 = vcombine.high %v624_v52, %v628_v54  ;;  %v632_v0 = vld [vmem:[#allocation5 + $0x1080] sm:$0xff] }
 0x131   :  { %6479 = vmatprep.subr.bf16.mxu0 %v8937_v13  ;;  %6807 = vmatprep.subr.bf16.mxu1 %v8939_v14  ;;  %v8993_v13 = vcombine.high %v584_v6, %v588_v7  ;;  %v8995_v14 = vcombine.high %v585_v8, %v589_v9  ;;  %v636_v1 = vld [vmem:[#allocation5 + $0x10a0] sm:$0xff] }
 0x134   :  { %6480 = vmatpush1.bf16.msra.mxu0 %v8936_v20  ;;  %6808 = vmatpush1.bf16.msra.mxu1 %v8938_v21  ;;  %v8992_v20 = vcombine.low %v584_v6, %v588_v7  ;;  %v8994_v21 = vcombine.low %v585_v8, %v589_v9  ;;  %v9041_v6 = vcombine.high %v632_v0, %v636_v1  ;;  %v640_v8 = vld [vmem:[#allocation5 + $0x10c0] sm:$0xff] }
 0x135   :  { %6481 = vmatprep.subr.bf16.mxu0 %v8945_v22  ;;  %6809 = vmatprep.subr.bf16.mxu1 %v8947_v23  ;;  %v9001_v22 = vcombine.high %v592_v16, %v596_v17  ;;  %v9003_v23 = vcombine.high %v593_v18, %v597_v19  ;;  %v644_v9 = vld [vmem:[#allocation5 + $0x10e0] sm:$0xff] }
 0x138   :  { %6482 = vmatpush1.bf16.msra.mxu0 %v8944_v30  ;;  %6810 = vmatpush1.bf16.msra.mxu1 %v8946_v31  ;;  %v9000_v30 = vcombine.low %v592_v16, %v596_v17  ;;  %v9002_v31 = vcombine.low %v593_v18, %v597_v19  ;;  %v9049_v16 = vcombine.high %v640_v8, %v644_v9  ;;  %v648_v18 = vld [vmem:[#allocation5 + $0x1100] sm:$0xff] }
 0x139   :  { %6483 = vmatprep.subr.bf16.mxu0 %v8953_v33  ;;  %6811 = vmatprep.subr.bf16.mxu1 %v8955_v34  ;;  %v9009_v33 = vcombine.high %v600_v26, %v604_v27  ;;  %v9011_v34 = vcombine.high %v601_v28, %v605_v29  ;;  %v652_v19 = vld [vmem:[#allocation5 + $0x1120] sm:$0xff] }
 0x13c   :  { %6484 = vmatpush1.bf16.msra.mxu0 %v8952_v40  ;;  %6812 = vmatpush1.bf16.msra.mxu1 %v8954_v41  ;;  %v9008_v40 = vcombine.low %v600_v26, %v604_v27  ;;  %v9010_v41 = vcombine.low %v601_v28, %v605_v29  ;;  %v9057_v26 = vcombine.high %v648_v18, %v652_v19  ;;  %v656_v28 = vld [vmem:[#allocation5 + $0x1140] sm:$0xff] }
 0x13d   :  { %6485 = vmatprep.subr.bf16.mxu0 %v8961_v42  ;;  %6813 = vmatprep.subr.bf16.mxu1 %v8963_v43  ;;  %v9017_v42 = vcombine.high %v608_v15, %v612_v35  ;;  %v9019_v43 = vcombine.high %v609_v37, %v613_v38  ;;  %v660_v29 = vld [vmem:[#allocation5 + $0x1160] sm:$0xff] }
 0x140   :  { %6486 = vmatpush1.bf16.msra.mxu0 %v8960_v48  ;;  %6814 = vmatpush1.bf16.msra.mxu1 %v8962_v49  ;;  %v9016_v48 = vcombine.low %v608_v15, %v612_v35  ;;  %v9018_v49 = vcombine.low %v609_v37, %v613_v38  ;;  %v9065_v15 = vcombine.high %v656_v28, %v660_v29  ;;  %v664_v37 = vld [vmem:[#allocation5 + $0x1180] sm:$0xff] }
 0x141   :  { %6487 = vmatprep.subr.bf16.mxu0 %v8969_v50  ;;  %6815 = vmatprep.subr.bf16.mxu1 %v8971_v51  ;;  %v9025_v50 = vcombine.high %v616_v44, %v620_v45  ;;  %v9027_v51 = vcombine.high %v617_v24, %v621_v47  ;;  %v668_v38 = vld [vmem:[#allocation5 + $0x11a0] sm:$0xff] }
 0x144   :  { %6488 = vmatpush1.bf16.msra.mxu0 %v8968_v58  ;;  %6816 = vmatpush1.bf16.msra.mxu1 %v8970_v59  ;;  %v629_v58 = vld [vmem:[#allocation5 + $0x1068] sm:$0xff]  ;;  %v10216_v59 = vld [vmem:[#allocation2 + $0x20] sm:$0xff] }
 0x145   :  { %6489 = vmatprep.subr.bf16.mxu0 %v8977_v60  ;;  %6817 = vmatprep.subr.bf16.mxu1 %v8979_v61  ;;  %v9024_v60 = vcombine.low %v616_v44, %v620_v45  ;;  %v9026_v61 = vcombine.low %v617_v24, %v621_v47  ;;  %v9035_v63 = vcombine.high %v625_v56, %v629_v58  ;;  %v672_v24 = vld [vmem:[#allocation5 + $0x11c0] sm:$0xff] }
 0x146   :  { %v9073_v44 = vcombine.high %v664_v37, %v668_v38  ;;  %v676_v47 = vld [vmem:[#allocation5 + $0x11e0] sm:$0xff] }
 0x148   :  { %6490 = vmatpush1.bf16.msra.mxu0 %v8976_v2  ;;  %6818 = vmatpush1.bf16.msra.mxu1 %v8978_v3  ;;  %v10220_v2 = vcombine.high %v10216_v59, %v10216_v59  ;;  %v637_v3 = vld [vmem:[#allocation5 + $0x10a8] sm:$0xff] }
 0x149   :  { %6491 = vmatprep.subr.bf16.mxu0 %v8985_v4  ;;  %6819 = vmatprep.subr.bf16.mxu1 %v8987_v5  ;;  %v9032_v4 = vcombine.low %v624_v52, %v628_v54  ;;  %v9034_v5 = vcombine.low %v625_v56, %v629_v58  ;;  %v9043_v7 = vcombine.high %v633_v39, %v637_v3  ;;  %v680_v56 = vld [vmem:[#allocation5 + $0x1200] sm:$0xff] }
 0x14a   :  { %v9081_v52 = vcombine.high %v672_v24, %v676_v47  ;;  %v684_v58 = vld [vmem:[#allocation5 + $0x1220] sm:$0xff] }
 0x14c   :  { %6492 = vmatpush1.bf16.msra.mxu0 %v8984_v10  ;;  %6820 = vmatpush1.bf16.msra.mxu1 %v8986_v11  ;;  %v641_v10 = vld [vmem:[#allocation5 + $0x10c8] sm:$0xff] }
 0x14d   :  { %6493 = vmatprep.subr.bf16.mxu0 %v8993_v13  ;;  %6821 = vmatprep.subr.bf16.mxu1 %v8995_v14  ;;  %v645_v11 = vld [vmem:[#allocation5 + $0x10e8] sm:$0xff]  ;;  %v9040_v13 = vcombine.low %v632_v0, %v636_v1  ;;  %v9042_v14 = vcombine.low %v633_v39, %v637_v3  ;;  %v9089_v0 = vcombine.high %v680_v56, %v684_v58  ;;  %v688_v39 = vld [vmem:[#allocation5 + $0x1240] sm:$0xff] }
 0x14e   :  { %v9051_v17 = vcombine.high %v641_v10, %v645_v11  ;;  %v692_v3 = vld [vmem:[#allocation5 + $0x1260] sm:$0xff] }
 0x150   :  { %6494 = vmatpush1.bf16.msra.mxu0 %v8992_v20  ;;  %6822 = vmatpush1.bf16.msra.mxu1 %v8994_v21  ;;  %v649_v20 = vld [vmem:[#allocation5 + $0x1108] sm:$0xff] }
 0x151   :  { %6495 = vmatprep.subr.bf16.mxu0 %v9001_v22  ;;  %6823 = vmatprep.subr.bf16.mxu1 %v9003_v23  ;;  %v653_v21 = vld [vmem:[#allocation5 + $0x1128] sm:$0xff]  ;;  %v9048_v22 = vcombine.low %v640_v8, %v644_v9  ;;  %v9050_v23 = vcombine.low %v641_v10, %v645_v11  ;;  %v9097_v8 = vcombine.high %v688_v39, %v692_v3  ;;  %v696_v10 = vld [vmem:[#allocation5 + $0x1280] sm:$0xff] }
 0x152   :  { %v9059_v27 = vcombine.high %v649_v20, %v653_v21  ;;  %v700_v11 = vld [vmem:[#allocation5 + $0x12a0] sm:$0xff] }
 0x154   :  { %6496 = vmatpush1.bf16.msra.mxu0 %v9000_v30  ;;  %6824 = vmatpush1.bf16.msra.mxu1 %v9002_v31  ;;  %v657_v30 = vld [vmem:[#allocation5 + $0x1148] sm:$0xff] }
 0x155   :  { %6497 = vmatprep.subr.bf16.mxu0 %v9009_v33  ;;  %6825 = vmatprep.subr.bf16.mxu1 %v9011_v34  ;;  %v661_v31 = vld [vmem:[#allocation5 + $0x1168] sm:$0xff]  ;;  %v9056_v33 = vcombine.low %v648_v18, %v652_v19  ;;  %v9058_v34 = vcombine.low %v649_v20, %v653_v21  ;;  %v9105_v18 = vcombine.high %v696_v10, %v700_v11  ;;  %v704_v20 = vld [vmem:[#allocation5 + $0x12c0] sm:$0xff] }
 0x156   :  { %v9067_v35 = vcombine.high %v657_v30, %v661_v31  ;;  %v708_v21 = vld [vmem:[#allocation5 + $0x12e0] sm:$0xff] }
 0x158   :  { %6498 = vmatpush1.bf16.msra.mxu0 %v9008_v40  ;;  %6826 = vmatpush1.bf16.msra.mxu1 %v9010_v41  ;;  %v665_v40 = vld [vmem:[#allocation5 + $0x1188] sm:$0xff] }
 0x159   :  { %6499 = vmatprep.subr.bf16.mxu0 %v9017_v42  ;;  %6827 = vmatprep.subr.bf16.mxu1 %v9019_v43  ;;  %v669_v41 = vld [vmem:[#allocation5 + $0x11a8] sm:$0xff]  ;;  %v9064_v42 = vcombine.low %v656_v28, %v660_v29  ;;  %v9066_v43 = vcombine.low %v657_v30, %v661_v31  ;;  %v9113_v28 = vcombine.high %v704_v20, %v708_v21  ;;  %v712_v30 = vld [vmem:[#allocation5 + $0x1300] sm:$0xff] }
 0x15a   :  { %v9075_v45 = vcombine.high %v665_v40, %v669_v41  ;;  %v716_v31 = vld [vmem:[#allocation5 + $0x1320] sm:$0xff] }
 0x15c   :  { %6500 = vmatpush1.bf16.msra.mxu0 %v9016_v48  ;;  %6828 = vmatpush1.bf16.msra.mxu1 %v9018_v49  ;;  %v673_v48 = vld [vmem:[#allocation5 + $0x11c8] sm:$0xff] }
 0x15d   :  { %6510 = vmatprep.subr.bf16.mxu0 %v9025_v50  ;;  %6838 = vmatprep.subr.bf16.mxu1 %v9027_v51  ;;  %v677_v49 = vld [vmem:[#allocation5 + $0x11e8] sm:$0xff]  ;;  %v9072_v50 = vcombine.low %v664_v37, %v668_v38  ;;  %v9074_v51 = vcombine.low %v665_v40, %v669_v41  ;;  %v9121_v37 = vcombine.high %v712_v30, %v716_v31  ;;  %v720_v40 = vld [vmem:[#allocation5 + $0x1340] sm:$0xff] }
 0x15e   :  { %v9083_v54 = vcombine.high %v673_v48, %v677_v49  ;;  %v724_v41 = vld [vmem:[#allocation5 + $0x1360] sm:$0xff] }
 0x15f   :  { %6502 = vmatmul.mubr.bf16.vlgmr.msra.gmra.mrb[0].mxu0 %v10214_v55  ;;  %6830 = vmatmul.mubr.bf16.vlgmr.msra.gmra.mrb[0].mxu1 %v10214_v55 }
 0x160   :  { %6511 = vmatpush1.bf16.msra.mxu0 %v9024_v60  ;;  %6839 = vmatpush1.bf16.msra.mxu1 %v9026_v61  ;;  %v681_v60 = vld [vmem:[#allocation5 + $0x1208] sm:$0xff] }
 0x161   :  { %6512 = vmatprep.subr.bf16.mxu0 %v9033_v62  ;;  %6840 = vmatprep.subr.bf16.mxu1 %v9035_v63  ;;  %v685_v61 = vld [vmem:[#allocation5 + $0x1228] sm:$0xff]  ;;  %v9080_v62 = vcombine.low %v672_v24, %v676_v47  ;;  %v9082_v63 = vcombine.low %v673_v48, %v677_v49  ;;  %v9129_v24 = vcombine.high %v720_v40, %v724_v41  ;;  %v728_v48 = vld [vmem:[#allocation5 + $0x1380] sm:$0xff] }
 0x162   :  { %6542 = vmatprep.mubr.bf16.mxu0 %v10220_v2  ;;  %6870 = vmatprep.mubr.bf16.mxu1 %v10220_v2  ;;  %v9091_v1 = vcombine.high %v681_v60, %v685_v61  ;;  %v732_v49 = vld [vmem:[#allocation5 + $0x13a0] sm:$0xff] }
 0x164   :  { %6513 = vmatpush1.bf16.msra.mxu0 %v9032_v4  ;;  %6841 = vmatpush1.bf16.msra.mxu1 %v9034_v5  ;;  %v689_v4 = vld [vmem:[#allocation5 + $0x1248] sm:$0xff] }
 0x165   :  { %6514 = vmatprep.subr.bf16.mxu0 %v9041_v6  ;;  %6842 = vmatprep.subr.bf16.mxu1 %v9043_v7  ;;  %v693_v5 = vld [vmem:[#allocation5 + $0x1268] sm:$0xff]  ;;  %v9088_v6 = vcombine.low %v680_v56, %v684_v58  ;;  %v9090_v7 = vcombine.low %v681_v60, %v685_v61  ;;  %v9137_v56 = vcombine.high %v728_v48, %v732_v49  ;;  %v736_v60 = vld [vmem:[#allocation5 + $0x13c0] sm:$0xff] }
 0x166   :  { %v9099_v9 = vcombine.high %v689_v4, %v693_v5  ;;  %v740_v61 = vld [vmem:[#allocation5 + $0x13e0] sm:$0xff] }
 0x168   :  { %6515 = vmatpush1.bf16.msra.mxu0 %v9040_v13  ;;  %6843 = vmatpush1.bf16.msra.mxu1 %v9042_v14  ;;  %v697_v13 = vld [vmem:[#allocation5 + $0x1288] sm:$0xff] }
 0x169   :  { %6516 = vmatprep.subr.bf16.mxu0 %v9049_v16  ;;  %6844 = vmatprep.subr.bf16.mxu1 %v9051_v17  ;;  %v701_v14 = vld [vmem:[#allocation5 + $0x12a8] sm:$0xff]  ;;  %v9096_v16 = vcombine.low %v688_v39, %v692_v3  ;;  %v9098_v17 = vcombine.low %v689_v4, %v693_v5  ;;  %v9145_v39 = vcombine.high %v736_v60, %v740_v61  ;;  %v744_v4 = vld [vmem:[#allocation5 + $0x1400] sm:$0xff] }
 0x16a   :  { %v9107_v19 = vcombine.high %v697_v13, %v701_v14  ;;  %v748_v5 = vld [vmem:[#allocation5 + $0x1420] sm:$0xff] }
 0x16c   :  { %6517 = vmatpush1.bf16.msra.mxu0 %v9048_v22  ;;  %6845 = vmatpush1.bf16.msra.mxu1 %v9050_v23  ;;  %v705_v22 = vld [vmem:[#allocation5 + $0x12c8] sm:$0xff] }
 0x16d   :  { %6518 = vmatprep.subr.bf16.mxu0 %v9057_v26  ;;  %6846 = vmatprep.subr.bf16.mxu1 %v9059_v27  ;;  %v709_v23 = vld [vmem:[#allocation5 + $0x12e8] sm:$0xff]  ;;  %v9104_v26 = vcombine.low %v696_v10, %v700_v11  ;;  %v9106_v27 = vcombine.low %v697_v13, %v701_v14  ;;  %v9153_v10 = vcombine.high %v744_v4, %v748_v5  ;;  %v752_v13 = vld [vmem:[#allocation5 + $0x1440] sm:$0xff] }
 0x16e   :  { %v9115_v29 = vcombine.high %v705_v22, %v709_v23  ;;  %v756_v14 = vld [vmem:[#allocation5 + $0x1460] sm:$0xff] }
 0x170   :  { %6519 = vmatpush1.bf16.msra.mxu0 %v9056_v33  ;;  %6847 = vmatpush1.bf16.msra.mxu1 %v9058_v34  ;;  %v713_v33 = vld [vmem:[#allocation5 + $0x1308] sm:$0xff] }
 0x171   :  { %6520 = vmatprep.subr.bf16.mxu0 %v9065_v15  ;;  %6848 = vmatprep.subr.bf16.mxu1 %v9067_v35  ;;  %v717_v34 = vld [vmem:[#allocation5 + $0x1328] sm:$0xff]  ;;  %v9112_v15 = vcombine.low %v704_v20, %v708_v21  ;;  %v9114_v35 = vcombine.low %v705_v22, %v709_v23  ;;  %v9152_v20 = vcombine.low %v744_v4, %v748_v5 }
 0x172   :  { %v9123_v38 = vcombine.high %v713_v33, %v717_v34  ;;  %v9161_v22 = vcombine.high %v752_v13, %v756_v14 }
 0x174   :  { %6521 = vmatpush1.bf16.msra.mxu0 %v9064_v42  ;;  %6849 = vmatpush1.bf16.msra.mxu1 %v9066_v43  ;;  %v721_v42 = vld [vmem:[#allocation5 + $0x1348] sm:$0xff] }
 0x175   :  { %6522 = vmatprep.subr.bf16.mxu0 %v9073_v44  ;;  %6850 = vmatprep.subr.bf16.mxu1 %v9075_v45  ;;  %v725_v43 = vld [vmem:[#allocation5 + $0x1368] sm:$0xff]  ;;  %v9120_v44 = vcombine.low %v712_v30, %v716_v31  ;;  %v9122_v45 = vcombine.low %v713_v33, %v717_v34  ;;  %v9160_v30 = vcombine.low %v752_v13, %v756_v14 }
 0x176   :  { %v9131_v47 = vcombine.high %v721_v42, %v725_v43 }
 0x178   :  { %6523 = vmatpush1.bf16.msra.mxu0 %v9072_v50  ;;  %6851 = vmatpush1.bf16.msra.mxu1 %v9074_v51  ;;  %v729_v50 = vld [vmem:[#allocation5 + $0x1388] sm:$0xff] }
 0x179   :  { %6524 = vmatprep.subr.bf16.mxu0 %v9081_v52  ;;  %6852 = vmatprep.subr.bf16.mxu1 %v9083_v54  ;;  %v733_v51 = vld [vmem:[#allocation5 + $0x13a8] sm:$0xff]  ;;  %v9128_v52 = vcombine.low %v720_v40, %v724_v41  ;;  %v9130_v54 = vcombine.low %v721_v42, %v725_v43 }
 0x17a   :  { %v9139_v58 = vcombine.high %v729_v50, %v733_v51 }
 0x17c   :  { %6525 = vmatpush1.bf16.msra.mxu0 %v9080_v62  ;;  %6853 = vmatpush1.bf16.msra.mxu1 %v9082_v63  ;;  %v737_v62 = vld [vmem:[#allocation5 + $0x13c8] sm:$0xff] }
 0x17d   :  { %6526 = vmatprep.subr.bf16.mxu0 %v9089_v0  ;;  %6854 = vmatprep.subr.bf16.mxu1 %v9091_v1  ;;  %v741_v63 = vld [vmem:[#allocation5 + $0x13e8] sm:$0xff]  ;;  %v9136_v0 = vcombine.low %v728_v48, %v732_v49  ;;  %v9138_v1 = vcombine.low %v729_v50, %v733_v51 }
 0x17e   :  { %v9147_v3 = vcombine.high %v737_v62, %v741_v63 }
 0x180   :  { %6527 = vmatpush1.bf16.msra.mxu0 %v9088_v6  ;;  %6855 = vmatpush1.bf16.msra.mxu1 %v9090_v7  ;;  %v745_v6 = vld [vmem:[#allocation5 + $0x1408] sm:$0xff] }
 0x181   :  { %6528 = vmatprep.subr.bf16.mxu0 %v9097_v8  ;;  %6856 = vmatprep.subr.bf16.mxu1 %v9099_v9  ;;  %v749_v7 = vld [vmem:[#allocation5 + $0x1428] sm:$0xff]  ;;  %v9144_v8 = vcombine.low %v736_v60, %v740_v61  ;;  %v9146_v9 = vcombine.low %v737_v62, %v741_v63 }
 0x182   :  { %v9155_v11 = vcombine.high %v745_v6, %v749_v7  ;;  %v9154_v21 = vcombine.low %v745_v6, %v749_v7 }
 0x184   :  { %6529 = vmatpush1.bf16.msra.mxu0 %v9096_v16  ;;  %6857 = vmatpush1.bf16.msra.mxu1 %v9098_v17  ;;  %v10228_v16 = vcombine.low %v10216_v59, %v10216_v59  ;;  %v753_v17 = vld [vmem:[#allocation5 + $0x1448] sm:$0xff] }
 0x185   :  { %6530 = vmatprep.subr.bf16.mxu0 %v9105_v18  ;;  %6858 = vmatprep.subr.bf16.mxu1 %v9107_v19  ;;  %v757_v18 = vld [vmem:[#allocation5 + $0x1468] sm:$0xff] }
 0x186   :  { %v10230_v19 = vld [vmem:[#allocation2 + $0x28] sm:$0xff]  ;;  %v9163_v23 = vcombine.high %v753_v17, %v757_v18  ;;  %v9162_v31 = vcombine.low %v753_v17, %v757_v18 }
 0x187   :  { %v761_v59 = vld [vmem:[#allocation5 + $0x1488] sm:$0xff] }
 0x188   :  { %6531 = vmatpush1.bf16.msra.mxu0 %v9104_v26  ;;  %6859 = vmatpush1.bf16.msra.mxu1 %v9106_v27  ;;  %v760_v26 = vld [vmem:[#allocation5 + $0x1480] sm:$0xff] }
 0x189   :  { %6532 = vmatprep.subr.bf16.mxu0 %v9113_v28  ;;  %6860 = vmatprep.subr.bf16.mxu1 %v9115_v29  ;;  %v764_v27 = vld [vmem:[#allocation5 + $0x14a0] sm:$0xff]  ;;  %v10234_v28 = vcombine.high %v10230_v19, %v10230_v19  ;;  %v765_v29 = vld [vmem:[#allocation5 + $0x14a8] sm:$0xff] }
 0x18a   :  { %v9169_v33 = vcombine.high %v760_v26, %v764_v27  ;;  %v9171_v34 = vcombine.high %v761_v59, %v765_v29  ;;  %v9168_v40 = vcombine.low %v760_v26, %v764_v27  ;;  %v9170_v41 = vcombine.low %v761_v59, %v765_v29 }
 0x18c   :  { %6533 = vmatpush1.bf16.msra.mxu0 %v9112_v15  ;;  %6861 = vmatpush1.bf16.msra.mxu1 %v9114_v35  ;;  %v768_v15 = vld [vmem:[#allocation5 + $0x14c0] sm:$0xff] }
 0x18d   :  { %6534 = vmatprep.subr.bf16.mxu0 %v9121_v37  ;;  %6862 = vmatprep.subr.bf16.mxu1 %v9123_v38  ;;  %v772_v35 = vld [vmem:[#allocation5 + $0x14e0] sm:$0xff]  ;;  %v769_v37 = vld [vmem:[#allocation5 + $0x14c8] sm:$0xff] }
 0x18e   :  { %v773_v38 = vld [vmem:[#allocation5 + $0x14e8] sm:$0xff]  ;;  %v9177_v42 = vcombine.high %v768_v15, %v772_v35  ;;  %v9176_v48 = vcombine.low %v768_v15, %v772_v35 }
 0x18f   :  { %v9179_v43 = vcombine.high %v769_v37, %v773_v38  ;;  %v9178_v49 = vcombine.low %v769_v37, %v773_v38 }
 0x190   :  { %6535 = vmatpush1.bf16.msra.mxu0 %v9120_v44  ;;  %6863 = vmatpush1.bf16.msra.mxu1 %v9122_v45  ;;  %v776_v44 = vld [vmem:[#allocation5 + $0x1500] sm:$0xff] }
 0x191   :  { %6536 = vmatprep.subr.bf16.mxu0 %v9129_v24  ;;  %6864 = vmatprep.subr.bf16.mxu1 %v9131_v47  ;;  %v780_v45 = vld [vmem:[#allocation5 + $0x1520] sm:$0xff]  ;;  %v777_v24 = vld [vmem:[#allocation5 + $0x1508] sm:$0xff] }
 0x192   :  { %v781_v47 = vld [vmem:[#allocation5 + $0x1528] sm:$0xff]  ;;  %v9185_v50 = vcombine.high %v776_v44, %v780_v45  ;;  %v9184_v60 = vcombine.low %v776_v44, %v780_v45 }
 0x193   :  { %v9187_v51 = vcombine.high %v777_v24, %v781_v47  ;;  %v9186_v61 = vcombine.low %v777_v24, %v781_v47 }
 0x194   :  { %6537 = vmatpush1.bf16.msra.mxu0 %v9128_v52  ;;  %6865 = vmatpush1.bf16.msra.mxu1 %v9130_v54  ;;  %v784_v52 = vld [vmem:[#allocation5 + $0x1540] sm:$0xff] }
 0x195   :  { %6538 = vmatprep.subr.bf16.mxu0 %v9137_v56  ;;  %6866 = vmatprep.subr.bf16.mxu1 %v9139_v58  ;;  %v788_v54 = vld [vmem:[#allocation5 + $0x1560] sm:$0xff]  ;;  %v785_v56 = vld [vmem:[#allocation5 + $0x1548] sm:$0xff] }
 0x196   :  { %v789_v58 = vld [vmem:[#allocation5 + $0x1568] sm:$0xff]  ;;  %v9193_v62 = vcombine.high %v784_v52, %v788_v54  ;;  %v9192_v4 = vcombine.low %v784_v52, %v788_v54 }
 0x197   :  { %v9195_v63 = vcombine.high %v785_v56, %v789_v58  ;;  %v9194_v5 = vcombine.low %v785_v56, %v789_v58 }
 0x198   :  { %6539 = vmatpush1.bf16.msra.mxu0 %v9136_v0  ;;  %6867 = vmatpush1.bf16.msra.mxu1 %v9138_v1  ;;  %v792_v0 = vld [vmem:[#allocation5 + $0x1580] sm:$0xff] }
 0x199   :  { %6540 = vmatprep.subr.bf16.mxu0 %v9145_v39  ;;  %6868 = vmatprep.subr.bf16.mxu1 %v9147_v3  ;;  %v796_v1 = vld [vmem:[#allocation5 + $0x15a0] sm:$0xff]  ;;  %v793_v39 = vld [vmem:[#allocation5 + $0x1588] sm:$0xff] }
 0x19a   :  { %v797_v3 = vld [vmem:[#allocation5 + $0x15a8] sm:$0xff]  ;;  %v9201_v6 = vcombine.high %v792_v0, %v796_v1  ;;  %v9200_v13 = vcombine.low %v792_v0, %v796_v1 }
 0x19b   :  { %v9203_v7 = vcombine.high %v793_v39, %v797_v3  ;;  %v9202_v14 = vcombine.low %v793_v39, %v797_v3 }
 0x19c   :  { %6541 = vmatpush1.bf16.msra.mxu0 %v9144_v8  ;;  %6869 = vmatpush1.bf16.msra.mxu1 %v9146_v9  ;;  %v800_v8 = vld [vmem:[#allocation5 + $0x15c0] sm:$0xff] }
 0x19d   :  { %6551 = vmatprep.subr.bf16.mxu0 %v9153_v10  ;;  %6879 = vmatprep.subr.bf16.mxu1 %v9155_v11  ;;  %v804_v9 = vld [vmem:[#allocation5 + $0x15e0] sm:$0xff]  ;;  %v801_v10 = vld [vmem:[#allocation5 + $0x15c8] sm:$0xff] }
 0x19e   :  { %v805_v11 = vld [vmem:[#allocation5 + $0x15e8] sm:$0xff]  ;;  %v9209_v17 = vcombine.high %v800_v8, %v804_v9  ;;  %v9208_v26 = vcombine.low %v800_v8, %v804_v9 }
 0x19f   :  { %6543 = vmatmul.mubr.bf16.vlgmr.msra.gmra.mrb[0].mxu0 %v10228_v16  ;;  %6871 = vmatmul.mubr.bf16.vlgmr.msra.gmra.mrb[0].mxu1 %v10228_v16  ;;  %v9211_v18 = vcombine.high %v801_v10, %v805_v11  ;;  %v9210_v27 = vcombine.low %v801_v10, %v805_v11 }
 0x1a0   :  { %6552 = vmatpush1.bf16.msra.mxu0 %v9152_v20  ;;  %6880 = vmatpush1.bf16.msra.mxu1 %v9154_v21  ;;  %v808_v20 = vld [vmem:[#allocation5 + $0x1600] sm:$0xff] }
 0x1a1   :  { %6553 = vmatprep.subr.bf16.mxu0 %v9161_v22  ;;  %6881 = vmatprep.subr.bf16.mxu1 %v9163_v23  ;;  %v812_v21 = vld [vmem:[#allocation5 + $0x1620] sm:$0xff]  ;;  %v809_v22 = vld [vmem:[#allocation5 + $0x1608] sm:$0xff] }
 0x1a2   :  { %6583 = vmatprep.mubr.bf16.mxu0 %v10234_v28  ;;  %6911 = vmatprep.mubr.bf16.mxu1 %v10234_v28  ;;  %v813_v23 = vld [vmem:[#allocation5 + $0x1628] sm:$0xff]  ;;  %v9217_v59 = vcombine.high %v808_v20, %v812_v21  ;;  %v9216_v15 = vcombine.low %v808_v20, %v812_v21 }
 0x1a3   :  { %v9219_v29 = vcombine.high %v809_v22, %v813_v23  ;;  %v9218_v35 = vcombine.low %v809_v22, %v813_v23 }
 0x1a4   :  { %6554 = vmatpush1.bf16.msra.mxu0 %v9160_v30  ;;  %6882 = vmatpush1.bf16.msra.mxu1 %v9162_v31  ;;  %v816_v30 = vld [vmem:[#allocation5 + $0x1640] sm:$0xff] }
 0x1a5   :  { %6555 = vmatprep.subr.bf16.mxu0 %v9169_v33  ;;  %6883 = vmatprep.subr.bf16.mxu1 %v9171_v34  ;;  %v820_v31 = vld [vmem:[#allocation5 + $0x1660] sm:$0xff]  ;;  %v817_v33 = vld [vmem:[#allocation5 + $0x1648] sm:$0xff] }
 0x1a6   :  { %v821_v34 = vld [vmem:[#allocation5 + $0x1668] sm:$0xff]  ;;  %v9225_v37 = vcombine.high %v816_v30, %v820_v31  ;;  %v9224_v44 = vcombine.low %v816_v30, %v820_v31 }
 0x1a7   :  { %v9227_v38 = vcombine.high %v817_v33, %v821_v34  ;;  %v9226_v45 = vcombine.low %v817_v33, %v821_v34 }
 0x1a8   :  { %6556 = vmatpush1.bf16.msra.mxu0 %v9168_v40  ;;  %6884 = vmatpush1.bf16.msra.mxu1 %v9170_v41  ;;  %v824_v40 = vld [vmem:[#allocation5 + $0x1680] sm:$0xff] }
 0x1a9   :  { %6557 = vmatprep.subr.bf16.mxu0 %v9177_v42  ;;  %6885 = vmatprep.subr.bf16.mxu1 %v9179_v43  ;;  %v828_v41 = vld [vmem:[#allocation5 + $0x16a0] sm:$0xff]  ;;  %v825_v42 = vld [vmem:[#allocation5 + $0x1688] sm:$0xff] }
 0x1aa   :  { %v829_v43 = vld [vmem:[#allocation5 + $0x16a8] sm:$0xff]  ;;  %v9233_v24 = vcombine.high %v824_v40, %v828_v41  ;;  %v9232_v52 = vcombine.low %v824_v40, %v828_v41 }
 0x1ab   :  { %v9235_v47 = vcombine.high %v825_v42, %v829_v43  ;;  %v9234_v54 = vcombine.low %v825_v42, %v829_v43 }
 0x1ac   :  { %6558 = vmatpush1.bf16.msra.mxu0 %v9176_v48  ;;  %6886 = vmatpush1.bf16.msra.mxu1 %v9178_v49  ;;  %v832_v48 = vld [vmem:[#allocation5 + $0x16c0] sm:$0xff] }
 0x1ad   :  { %6559 = vmatprep.subr.bf16.mxu0 %v9185_v50  ;;  %6887 = vmatprep.subr.bf16.mxu1 %v9187_v51  ;;  %v836_v49 = vld [vmem:[#allocation5 + $0x16e0] sm:$0xff]  ;;  %v833_v50 = vld [vmem:[#allocation5 + $0x16c8] sm:$0xff] }
 0x1ae   :  { %v837_v51 = vld [vmem:[#allocation5 + $0x16e8] sm:$0xff]  ;;  %v9241_v56 = vcombine.high %v832_v48, %v836_v49  ;;  %v9240_v0 = vcombine.low %v832_v48, %v836_v49  ;;  %v10244_v49 = vld [vmem:[#allocation2 + $0x30] sm:$0xff] }
 0x1af   :  { %v9243_v58 = vcombine.high %v833_v50, %v837_v51  ;;  %v9242_v1 = vcombine.low %v833_v50, %v837_v51  ;;  %v885_v48 = vld [vmem:[#allocation5 + $0x1868] sm:$0xff] }
 0x1b0   :  { %6560 = vmatpush1.bf16.msra.mxu0 %v9184_v60  ;;  %6888 = vmatpush1.bf16.msra.mxu1 %v9186_v61  ;;  %v840_v60 = vld [vmem:[#allocation5 + $0x1700] sm:$0xff] }
 0x1b1   :  { %6561 = vmatprep.subr.bf16.mxu0 %v9193_v62  ;;  %6889 = vmatprep.subr.bf16.mxu1 %v9195_v63  ;;  %v844_v61 = vld [vmem:[#allocation5 + $0x1720] sm:$0xff]  ;;  %v841_v62 = vld [vmem:[#allocation5 + $0x1708] sm:$0xff] }
 0x1b2   :  { %v845_v63 = vld [vmem:[#allocation5 + $0x1728] sm:$0xff]  ;;  %v9249_v39 = vcombine.high %v840_v60, %v844_v61  ;;  %v9248_v8 = vcombine.low %v840_v60, %v844_v61  ;;  %v10248_v60 = vcombine.high %v10244_v49, %v10244_v49 }
 0x1b3   :  { %v9251_v3 = vcombine.high %v841_v62, %v845_v63  ;;  %v9250_v9 = vcombine.low %v841_v62, %v845_v63  ;;  %v893_v61 = vld [vmem:[#allocation5 + $0x18a8] sm:$0xff] }
 0x1b4   :  { %6562 = vmatpush1.bf16.msra.mxu0 %v9192_v4  ;;  %6890 = vmatpush1.bf16.msra.mxu1 %v9194_v5  ;;  %v848_v4 = vld [vmem:[#allocation5 + $0x1740] sm:$0xff] }
 0x1b5   :  { %6563 = vmatprep.subr.bf16.mxu0 %v9201_v6  ;;  %6891 = vmatprep.subr.bf16.mxu1 %v9203_v7  ;;  %v852_v5 = vld [vmem:[#allocation5 + $0x1760] sm:$0xff]  ;;  %v849_v6 = vld [vmem:[#allocation5 + $0x1748] sm:$0xff] }
 0x1b6   :  { %v853_v7 = vld [vmem:[#allocation5 + $0x1768] sm:$0xff]  ;;  %v9257_v10 = vcombine.high %v848_v4, %v852_v5  ;;  %v9256_v20 = vcombine.low %v848_v4, %v852_v5 }
 0x1b7   :  { %v9259_v11 = vcombine.high %v849_v6, %v853_v7  ;;  %v9258_v21 = vcombine.low %v849_v6, %v853_v7  ;;  %v897_v4 = vld [vmem:[#allocation5 + $0x18c8] sm:$0xff] }
 0x1b8   :  { %6564 = vmatpush1.bf16.msra.mxu0 %v9200_v13  ;;  %6892 = vmatpush1.bf16.msra.mxu1 %v9202_v14  ;;  %v856_v13 = vld [vmem:[#allocation5 + $0x1780] sm:$0xff]  ;;  %v901_v5 = vld [vmem:[#allocation5 + $0x18e8] sm:$0xff] }
 0x1b9   :  { %6565 = vmatprep.subr.bf16.mxu0 %v9209_v17  ;;  %6893 = vmatprep.subr.bf16.mxu1 %v9211_v18  ;;  %v860_v14 = vld [vmem:[#allocation5 + $0x17a0] sm:$0xff]  ;;  %v857_v17 = vld [vmem:[#allocation5 + $0x1788] sm:$0xff] }
 0x1ba   :  { %v861_v18 = vld [vmem:[#allocation5 + $0x17a8] sm:$0xff]  ;;  %v9265_v22 = vcombine.high %v856_v13, %v860_v14  ;;  %v9264_v30 = vcombine.low %v856_v13, %v860_v14 }
 0x1bb   :  { %v9267_v23 = vcombine.high %v857_v17, %v861_v18  ;;  %v9266_v31 = vcombine.low %v857_v17, %v861_v18  ;;  %v905_v13 = vld [vmem:[#allocation5 + $0x1908] sm:$0xff]  ;;  %v9306_v18 = vcombine.low %v897_v4, %v901_v5 }
 0x1bc   :  { %6566 = vmatpush1.bf16.msra.mxu0 %v9208_v26  ;;  %6894 = vmatpush1.bf16.msra.mxu1 %v9210_v27  ;;  %v864_v26 = vld [vmem:[#allocation5 + $0x17c0] sm:$0xff]  ;;  %v909_v14 = vld [vmem:[#allocation5 + $0x1928] sm:$0xff] }
 0x1bd   :  { %6567 = vmatprep.subr.bf16.mxu0 %v9217_v59  ;;  %6895 = vmatprep.subr.bf16.mxu1 %v9219_v29  ;;  %v868_v27 = vld [vmem:[#allocation5 + $0x17e0] sm:$0xff]  ;;  %v865_v59 = vld [vmem:[#allocation5 + $0x17c8] sm:$0xff] }
 0x1be   :  { %v869_v29 = vld [vmem:[#allocation5 + $0x17e8] sm:$0xff]  ;;  %v9273_v33 = vcombine.high %v864_v26, %v868_v27  ;;  %v9272_v40 = vcombine.low %v864_v26, %v868_v27 }
 0x1bf   :  { %v9275_v34 = vcombine.high %v865_v59, %v869_v29  ;;  %v9274_v41 = vcombine.low %v865_v59, %v869_v29  ;;  %v913_v26 = vld [vmem:[#allocation5 + $0x1948] sm:$0xff]  ;;  %v9314_v29 = vcombine.low %v905_v13, %v909_v14 }
 0x1c0   :  { %6568 = vmatpush1.bf16.msra.mxu0 %v9216_v15  ;;  %6896 = vmatpush1.bf16.msra.mxu1 %v9218_v35  ;;  %v872_v15 = vld [vmem:[#allocation5 + $0x1800] sm:$0xff]  ;;  %v917_v27 = vld [vmem:[#allocation5 + $0x1968] sm:$0xff] }
 0x1c1   :  { %6569 = vmatprep.subr.bf16.mxu0 %v9225_v37  ;;  %6897 = vmatprep.subr.bf16.mxu1 %v9227_v38  ;;  %v876_v35 = vld [vmem:[#allocation5 + $0x1820] sm:$0xff]  ;;  %v873_v37 = vld [vmem:[#allocation5 + $0x1808] sm:$0xff] }
 0x1c2   :  { %v877_v38 = vld [vmem:[#allocation5 + $0x1828] sm:$0xff]  ;;  %v9281_v42 = vcombine.high %v872_v15, %v876_v35  ;;  %v9280_v50 = vcombine.low %v872_v15, %v876_v35 }
 0x1c3   :  { %v9283_v43 = vcombine.high %v873_v37, %v877_v38  ;;  %v9282_v51 = vcombine.low %v873_v37, %v877_v38  ;;  %v921_v15 = vld [vmem:[#allocation5 + $0x1988] sm:$0xff]  ;;  %v9322_v38 = vcombine.low %v913_v26, %v917_v27 }
 0x1c4   :  { %6570 = vmatpush1.bf16.msra.mxu0 %v9224_v44  ;;  %6898 = vmatpush1.bf16.msra.mxu1 %v9226_v45  ;;  %v880_v44 = vld [vmem:[#allocation5 + $0x1840] sm:$0xff]  ;;  %v925_v35 = vld [vmem:[#allocation5 + $0x19a8] sm:$0xff] }
 0x1c5   :  { %6571 = vmatprep.subr.bf16.mxu0 %v9233_v24  ;;  %6899 = vmatprep.subr.bf16.mxu1 %v9235_v47  ;;  %v884_v45 = vld [vmem:[#allocation5 + $0x1860] sm:$0xff]  ;;  %v10242_v24 = vcombine.low %v10230_v19, %v10230_v19  ;;  %v881_v47 = vld [vmem:[#allocation5 + $0x1848] sm:$0xff] }
 0x1c6   :  { %v889_v19 = vld [vmem:[#allocation5 + $0x1888] sm:$0xff]  ;;  %v9288_v62 = vcombine.low %v880_v44, %v884_v45  ;;  %v9290_v63 = vcombine.low %v881_v47, %v885_v48 }
 0x1c7   :  { %v9298_v7 = vcombine.low %v889_v19, %v893_v61 }
 0x1c8   :  { %6572 = vmatpush1.bf16.msra.mxu0 %v9232_v52  ;;  %6900 = vmatpush1.bf16.msra.mxu1 %v9234_v54  ;;  %v9289_v52 = vcombine.high %v880_v44, %v884_v45  ;;  %v9291_v54 = vcombine.high %v881_v47, %v885_v48  ;;  %v929_v44 = vld [vmem:[#allocation5 + $0x19c8] sm:$0xff]  ;;  %v9330_v48 = vcombine.low %v921_v15, %v925_v35 }
 0x1c9   :  { %6573 = vmatprep.subr.bf16.mxu0 %v9241_v56  ;;  %6901 = vmatprep.subr.bf16.mxu1 %v9243_v58  ;;  %v888_v56 = vld [vmem:[#allocation5 + $0x1880] sm:$0xff]  ;;  %v933_v45 = vld [vmem:[#allocation5 + $0x19e8] sm:$0xff] }
 0x1ca   :  { %v892_v58 = vld [vmem:[#allocation5 + $0x18a0] sm:$0xff] }
 0x1cb   :  { %v9296_v6 = vcombine.low %v888_v56, %v892_v58 }
 0x1cc   :  { %6574 = vmatpush1.bf16.msra.mxu0 %v9240_v0  ;;  %6902 = vmatpush1.bf16.msra.mxu1 %v9242_v1  ;;  %v9297_v0 = vcombine.high %v888_v56, %v892_v58  ;;  %v9299_v1 = vcombine.high %v889_v19, %v893_v61  ;;  %v937_v56 = vld [vmem:[#allocation5 + $0x1a08] sm:$0xff]  ;;  %v9338_v61 = vcombine.low %v929_v44, %v933_v45 }
 0x1cd   :  { %6575 = vmatprep.subr.bf16.mxu0 %v9249_v39  ;;  %6903 = vmatprep.subr.bf16.mxu1 %v9251_v3  ;;  %v896_v39 = vld [vmem:[#allocation5 + $0x18c0] sm:$0xff]  ;;  %v941_v58 = vld [vmem:[#allocation5 + $0x1a28] sm:$0xff] }
 0x1ce   :  { %v900_v3 = vld [vmem:[#allocation5 + $0x18e0] sm:$0xff] }
 0x1cf   :  { %v9304_v17 = vcombine.low %v896_v39, %v900_v3 }
 0x1d0   :  { %6576 = vmatpush1.bf16.msra.mxu0 %v9248_v8  ;;  %6904 = vmatpush1.bf16.msra.mxu1 %v9250_v9  ;;  %v9305_v8 = vcombine.high %v896_v39, %v900_v3  ;;  %v9307_v9 = vcombine.high %v897_v4, %v901_v5  ;;  %v945_v39 = vld [vmem:[#allocation5 + $0x1a48] sm:$0xff]  ;;  %v9346_v5 = vcombine.low %v937_v56, %v941_v58 }
 0x1d1   :  { %6577 = vmatprep.subr.bf16.mxu0 %v9257_v10  ;;  %6905 = vmatprep.subr.bf16.mxu1 %v9259_v11  ;;  %v904_v10 = vld [vmem:[#allocation5 + $0x1900] sm:$0xff]  ;;  %v949_v3 = vld [vmem:[#allocation5 + $0x1a68] sm:$0xff] }
 0x1d2   :  { %v908_v11 = vld [vmem:[#allocation5 + $0x1920] sm:$0xff] }
 0x1d3   :  { %v9312_v59 = vcombine.low %v904_v10, %v908_v11 }
 0x1d4   :  { %6578 = vmatpush1.bf16.msra.mxu0 %v9256_v20  ;;  %6906 = vmatpush1.bf16.msra.mxu1 %v9258_v21  ;;  %v9313_v20 = vcombine.high %v904_v10, %v908_v11  ;;  %v9315_v21 = vcombine.high %v905_v13, %v909_v14  ;;  %v953_v10 = vld [vmem:[#allocation5 + $0x1a88] sm:$0xff]  ;;  %v9354_v14 = vcombine.low %v945_v39, %v949_v3 }
 0x1d5   :  { %6579 = vmatprep.subr.bf16.mxu0 %v9265_v22  ;;  %6907 = vmatprep.subr.bf16.mxu1 %v9267_v23  ;;  %v912_v22 = vld [vmem:[#allocation5 + $0x1940] sm:$0xff]  ;;  %v957_v11 = vld [vmem:[#allocation5 + $0x1aa8] sm:$0xff] }
 0x1d6   :  { %v916_v23 = vld [vmem:[#allocation5 + $0x1960] sm:$0xff] }
 0x1d7   :  { %v9320_v37 = vcombine.low %v912_v22, %v916_v23 }
 0x1d8   :  { %6580 = vmatpush1.bf16.msra.mxu0 %v9264_v30  ;;  %6908 = vmatpush1.bf16.msra.mxu1 %v9266_v31  ;;  %v9321_v30 = vcombine.high %v912_v22, %v916_v23  ;;  %v9323_v31 = vcombine.high %v913_v26, %v917_v27  ;;  %v961_v22 = vld [vmem:[#allocation5 + $0x1ac8] sm:$0xff]  ;;  %v9362_v27 = vcombine.low %v953_v10, %v957_v11 }
 0x1d9   :  { %6581 = vmatprep.subr.bf16.mxu0 %v9273_v33  ;;  %6909 = vmatprep.subr.bf16.mxu1 %v9275_v34  ;;  %v920_v33 = vld [vmem:[#allocation5 + $0x1980] sm:$0xff]  ;;  %v965_v23 = vld [vmem:[#allocation5 + $0x1ae8] sm:$0xff] }
 0x1da   :  { %v924_v34 = vld [vmem:[#allocation5 + $0x19a0] sm:$0xff] }
 0x1db   :  { %v9328_v47 = vcombine.low %v920_v33, %v924_v34 }
 0x1dc   :  { %6582 = vmatpush1.bf16.msra.mxu0 %v9272_v40  ;;  %6910 = vmatpush1.bf16.msra.mxu1 %v9274_v41  ;;  %v9329_v40 = vcombine.high %v920_v33, %v924_v34  ;;  %v9331_v41 = vcombine.high %v921_v15, %v925_v35  ;;  %v969_v33 = vld [vmem:[#allocation5 + $0x1b08] sm:$0xff]  ;;  %v9370_v35 = vcombine.low %v961_v22, %v965_v23 }
 0x1dd   :  { %6592 = vmatprep.subr.bf16.mxu0 %v9281_v42  ;;  %6920 = vmatprep.subr.bf16.mxu1 %v9283_v43  ;;  %v928_v42 = vld [vmem:[#allocation5 + $0x19c0] sm:$0xff]  ;;  %v973_v34 = vld [vmem:[#allocation5 + $0x1b28] sm:$0xff] }
 0x1de   :  { %v932_v43 = vld [vmem:[#allocation5 + $0x19e0] sm:$0xff] }
 0x1df   :  { %6584 = vmatmul.mubr.bf16.vlgmr.msra.gmra.mrb[0].mxu0 %v10242_v24  ;;  %6912 = vmatmul.mubr.bf16.vlgmr.msra.gmra.mrb[0].mxu1 %v10242_v24  ;;  %v9336_v19 = vcombine.low %v928_v42, %v932_v43 }
 0x1e0   :  { %6593 = vmatpush1.bf16.msra.mxu0 %v9280_v50  ;;  %6921 = vmatpush1.bf16.msra.mxu1 %v9282_v51  ;;  %v9337_v50 = vcombine.high %v928_v42, %v932_v43  ;;  %v9339_v51 = vcombine.high %v929_v44, %v933_v45  ;;  %v977_v42 = vld [vmem:[#allocation5 + $0x1b48] sm:$0xff]  ;;  %v9378_v45 = vcombine.low %v969_v33, %v973_v34 }
 0x1e1   :  { %6594 = vmatprep.subr.bf16.mxu0 %v9289_v52  ;;  %6922 = vmatprep.subr.bf16.mxu1 %v9291_v54  ;;  %v936_v52 = vld [vmem:[#allocation5 + $0x1a00] sm:$0xff]  ;;  %v981_v43 = vld [vmem:[#allocation5 + $0x1b68] sm:$0xff] }
 0x1e2   :  { %6624 = vmatprep.mubr.bf16.mxu0 %v10248_v60  ;;  %6952 = vmatprep.mubr.bf16.mxu1 %v10248_v60  ;;  %v940_v54 = vld [vmem:[#allocation5 + $0x1a20] sm:$0xff] }
 0x1e3   :  { %v9344_v4 = vcombine.low %v936_v52, %v940_v54 }
 0x1e4   :  { %6595 = vmatpush1.bf16.msra.mxu0 %v9288_v62  ;;  %6923 = vmatpush1.bf16.msra.mxu1 %v9290_v63  ;;  %v9345_v62 = vcombine.high %v936_v52, %v940_v54  ;;  %v9347_v63 = vcombine.high %v937_v56, %v941_v58  ;;  %v985_v52 = vld [vmem:[#allocation5 + $0x1b88] sm:$0xff]  ;;  %v9386_v58 = vcombine.low %v977_v42, %v981_v43 }
 0x1e5   :  { %6596 = vmatprep.subr.bf16.mxu0 %v9297_v0  ;;  %6924 = vmatprep.subr.bf16.mxu1 %v9299_v1  ;;  %v944_v0 = vld [vmem:[#allocation5 + $0x1a40] sm:$0xff]  ;;  %v989_v54 = vld [vmem:[#allocation5 + $0x1ba8] sm:$0xff] }
 0x1e6   :  { %v948_v1 = vld [vmem:[#allocation5 + $0x1a60] sm:$0xff] }
 0x1e7   :  { %v9352_v13 = vcombine.low %v944_v0, %v948_v1 }
 0x1e8   :  { %6597 = vmatpush1.bf16.msra.mxu0 %v9296_v6  ;;  %6925 = vmatpush1.bf16.msra.mxu1 %v9298_v7  ;;  %v9353_v6 = vcombine.high %v944_v0, %v948_v1  ;;  %v9355_v7 = vcombine.high %v945_v39, %v949_v3  ;;  %v993_v0 = vld [vmem:[#allocation5 + $0x1bc8] sm:$0xff]  ;;  %v9394_v3 = vcombine.low %v985_v52, %v989_v54 }
 0x1e9   :  { %6598 = vmatprep.subr.bf16.mxu0 %v9305_v8  ;;  %6926 = vmatprep.subr.bf16.mxu1 %v9307_v9  ;;  %v952_v8 = vld [vmem:[#allocation5 + $0x1a80] sm:$0xff]  ;;  %v997_v1 = vld [vmem:[#allocation5 + $0x1be8] sm:$0xff] }
 0x1ea   :  { %v956_v9 = vld [vmem:[#allocation5 + $0x1aa0] sm:$0xff] }
 0x1eb   :  { %v9360_v26 = vcombine.low %v952_v8, %v956_v9 }
 0x1ec   :  { %6599 = vmatpush1.bf16.msra.mxu0 %v9304_v17  ;;  %6927 = vmatpush1.bf16.msra.mxu1 %v9306_v18  ;;  %v9361_v17 = vcombine.high %v952_v8, %v956_v9  ;;  %v9363_v18 = vcombine.high %v953_v10, %v957_v11  ;;  %v1001_v8 = vld [vmem:[#allocation5 + $0x1c08] sm:$0xff]  ;;  %v9402_v11 = vcombine.low %v993_v0, %v997_v1 }
 0x1ed   :  { %6600 = vmatprep.subr.bf16.mxu0 %v9313_v20  ;;  %6928 = vmatprep.subr.bf16.mxu1 %v9315_v21  ;;  %v960_v20 = vld [vmem:[#allocation5 + $0x1ac0] sm:$0xff]  ;;  %v1005_v9 = vld [vmem:[#allocation5 + $0x1c28] sm:$0xff] }
 0x1ee   :  { %v964_v21 = vld [vmem:[#allocation5 + $0x1ae0] sm:$0xff] }
 0x1ef   :  { %v9368_v15 = vcombine.low %v960_v20, %v964_v21 }
 0x1f0   :  { %6601 = vmatpush1.bf16.msra.mxu0 %v9312_v59  ;;  %6929 = vmatpush1.bf16.msra.mxu1 %v9314_v29  ;;  %v9369_v59 = vcombine.high %v960_v20, %v964_v21  ;;  %v9371_v29 = vcombine.high %v961_v22, %v965_v23  ;;  %v10256_v20 = vcombine.low %v10244_v49, %v10244_v49  ;;  %v1009_v21 = vld [vmem:[#allocation5 + $0x1c48] sm:$0xff]  ;;  %v10258_v23 = vld [vmem:[#allocation2 + $0x38] sm:$0xff] }
 0x1f1   :  { %6602 = vmatprep.subr.bf16.mxu0 %v9321_v30  ;;  %6930 = vmatprep.subr.bf16.mxu1 %v9323_v31  ;;  %v968_v30 = vld [vmem:[#allocation5 + $0x1b00] sm:$0xff]  ;;  %v1013_v22 = vld [vmem:[#allocation5 + $0x1c68] sm:$0xff] }
 0x1f2   :  { %v972_v31 = vld [vmem:[#allocation5 + $0x1b20] sm:$0xff]  ;;  %v1017_v49 = vld [vmem:[#allocation5 + $0x1c88] sm:$0xff] }
 0x1f3   :  { %v9376_v44 = vcombine.low %v968_v30, %v972_v31 }
 0x1f4   :  { %6603 = vmatpush1.bf16.msra.mxu0 %v9320_v37  ;;  %6931 = vmatpush1.bf16.msra.mxu1 %v9322_v38  ;;  %v9377_v37 = vcombine.high %v968_v30, %v972_v31  ;;  %v9379_v38 = vcombine.high %v969_v33, %v973_v34  ;;  %v1016_v30 = vld [vmem:[#allocation5 + $0x1c80] sm:$0xff]  ;;  %v10262_v33 = vcombine.high %v10258_v23, %v10258_v23  ;;  %v1021_v34 = vld [vmem:[#allocation5 + $0x1ca8] sm:$0xff] }
 0x1f5   :  { %6604 = vmatprep.subr.bf16.mxu0 %v9329_v40  ;;  %6932 = vmatprep.subr.bf16.mxu1 %v9331_v41  ;;  %v976_v40 = vld [vmem:[#allocation5 + $0x1b40] sm:$0xff] }
 0x1f6   :  { %v980_v41 = vld [vmem:[#allocation5 + $0x1b60] sm:$0xff] }
 0x1f7   :  { %v9384_v56 = vcombine.low %v976_v40, %v980_v41  ;;  %v1020_v31 = vld [vmem:[#allocation5 + $0x1ca0] sm:$0xff] }
 0x1f8   :  { %6605 = vmatpush1.bf16.msra.mxu0 %v9328_v47  ;;  %6933 = vmatpush1.bf16.msra.mxu1 %v9330_v48  ;;  %v9385_v47 = vcombine.high %v976_v40, %v980_v41  ;;  %v9387_v48 = vcombine.high %v977_v42, %v981_v43  ;;  %v1024_v40 = vld [vmem:[#allocation5 + $0x1cc0] sm:$0xff]  ;;  %v1025_v42 = vld [vmem:[#allocation5 + $0x1cc8] sm:$0xff] }
 0x1f9   :  { %6606 = vmatprep.subr.bf16.mxu0 %v9337_v50  ;;  %6934 = vmatprep.subr.bf16.mxu1 %v9339_v51  ;;  %v984_v50 = vld [vmem:[#allocation5 + $0x1b80] sm:$0xff]  ;;  %v1029_v43 = vld [vmem:[#allocation5 + $0x1ce8] sm:$0xff] }
 0x1fa   :  { %v988_v51 = vld [vmem:[#allocation5 + $0x1ba0] sm:$0xff] }
 0x1fb   :  { %v9392_v39 = vcombine.low %v984_v50, %v988_v51  ;;  %v1028_v41 = vld [vmem:[#allocation5 + $0x1ce0] sm:$0xff] }
 0x1fc   :  { %6607 = vmatpush1.bf16.msra.mxu0 %v9336_v19  ;;  %6935 = vmatpush1.bf16.msra.mxu1 %v9338_v61  ;;  %v9393_v19 = vcombine.high %v984_v50, %v988_v51  ;;  %v9395_v61 = vcombine.high %v985_v52, %v989_v54  ;;  %v1032_v50 = vld [vmem:[#allocation5 + $0x1d00] sm:$0xff]  ;;  %v1033_v52 = vld [vmem:[#allocation5 + $0x1d08] sm:$0xff] }
 0x1fd   :  { %6608 = vmatprep.subr.bf16.mxu0 %v9345_v62  ;;  %6936 = vmatprep.subr.bf16.mxu1 %v9347_v63  ;;  %v992_v62 = vld [vmem:[#allocation5 + $0x1bc0] sm:$0xff]  ;;  %v1037_v54 = vld [vmem:[#allocation5 + $0x1d28] sm:$0xff] }
 0x1fe   :  { %v996_v63 = vld [vmem:[#allocation5 + $0x1be0] sm:$0xff] }
 0x1ff   :  { %v9400_v10 = vcombine.low %v992_v62, %v996_v63  ;;  %v1036_v51 = vld [vmem:[#allocation5 + $0x1d20] sm:$0xff] }
 0x200   :  { %6609 = vmatpush1.bf16.msra.mxu0 %v9344_v4  ;;  %6937 = vmatpush1.bf16.msra.mxu1 %v9346_v5  ;;  %v9401_v4 = vcombine.high %v992_v62, %v996_v63  ;;  %v9403_v5 = vcombine.high %v993_v0, %v997_v1  ;;  %v1040_v62 = vld [vmem:[#allocation5 + $0x1d40] sm:$0xff]  ;;  %v1041_v0 = vld [vmem:[#allocation5 + $0x1d48] sm:$0xff] }
 0x201   :  { %6610 = vmatprep.subr.bf16.mxu0 %v9353_v6  ;;  %6938 = vmatprep.subr.bf16.mxu1 %v9355_v7  ;;  %v1000_v6 = vld [vmem:[#allocation5 + $0x1c00] sm:$0xff]  ;;  %v1045_v1 = vld [vmem:[#allocation5 + $0x1d68] sm:$0xff] }
 0x202   :  { %v1004_v7 = vld [vmem:[#allocation5 + $0x1c20] sm:$0xff] }
 0x203   :  { %v1044_v63 = vld [vmem:[#allocation5 + $0x1d60] sm:$0xff] }
 0x204   :  { %6611 = vmatpush1.bf16.msra.mxu0 %v9352_v13  ;;  %6939 = vmatpush1.bf16.msra.mxu1 %v9354_v14  ;;  %v9409_v13 = vcombine.high %v1000_v6, %v1004_v7  ;;  %v9411_v14 = vcombine.high %v1001_v8, %v1005_v9 }
 0x205   :  { %6612 = vmatprep.subr.bf16.mxu0 %v9361_v17  ;;  %6940 = vmatprep.subr.bf16.mxu1 %v9363_v18  ;;  %v1008_v17 = vld [vmem:[#allocation5 + $0x1c40] sm:$0xff] }
 0x206   :  { %v1012_v18 = vld [vmem:[#allocation5 + $0x1c60] sm:$0xff] }
 0x208   :  { %6613 = vmatpush1.bf16.msra.mxu0 %v9360_v26  ;;  %6941 = vmatpush1.bf16.msra.mxu1 %v9362_v27  ;;  %v9408_v26 = vcombine.low %v1000_v6, %v1004_v7  ;;  %v9410_v27 = vcombine.low %v1001_v8, %v1005_v9  ;;  %v1048_v6 = vld [vmem:[#allocation5 + $0x1d80] sm:$0xff]  ;;  %v1049_v8 = vld [vmem:[#allocation5 + $0x1d88] sm:$0xff] }
 0x209   :  { %6614 = vmatprep.subr.bf16.mxu0 %v9369_v59  ;;  %6942 = vmatprep.subr.bf16.mxu1 %v9371_v29  ;;  %v9417_v59 = vcombine.high %v1008_v17, %v1012_v18  ;;  %v9419_v29 = vcombine.high %v1009_v21, %v1013_v22  ;;  %v1052_v7 = vld [vmem:[#allocation5 + $0x1da0] sm:$0xff]  ;;  %v1053_v9 = vld [vmem:[#allocation5 + $0x1da8] sm:$0xff] }
 0x20c   :  { %6615 = vmatpush1.bf16.msra.mxu0 %v9368_v15  ;;  %6943 = vmatpush1.bf16.msra.mxu1 %v9370_v35  ;;  %v9416_v15 = vcombine.low %v1008_v17, %v1012_v18  ;;  %v9418_v35 = vcombine.low %v1009_v21, %v1013_v22  ;;  %v1056_v17 = vld [vmem:[#allocation5 + $0x1dc0] sm:$0xff]  ;;  %v1057_v21 = vld [vmem:[#allocation5 + $0x1dc8] sm:$0xff] }
 0x20d   :  { %6616 = vmatprep.subr.bf16.mxu0 %v9377_v37  ;;  %6944 = vmatprep.subr.bf16.mxu1 %v9379_v38  ;;  %v9425_v37 = vcombine.high %v1016_v30, %v1020_v31  ;;  %v9427_v38 = vcombine.high %v1017_v49, %v1021_v34  ;;  %v1060_v18 = vld [vmem:[#allocation5 + $0x1de0] sm:$0xff]  ;;  %v1061_v22 = vld [vmem:[#allocation5 + $0x1de8] sm:$0xff] }
 0x210   :  { %6617 = vmatpush1.bf16.msra.mxu0 %v9376_v44  ;;  %6945 = vmatpush1.bf16.msra.mxu1 %v9378_v45  ;;  %v9424_v44 = vcombine.low %v1016_v30, %v1020_v31  ;;  %v9426_v45 = vcombine.low %v1017_v49, %v1021_v34  ;;  %v1064_v30 = vld [vmem:[#allocation5 + $0x1e00] sm:$0xff]  ;;  %v1065_v49 = vld [vmem:[#allocation5 + $0x1e08] sm:$0xff] }
 0x211   :  { %6618 = vmatprep.subr.bf16.mxu0 %v9385_v47  ;;  %6946 = vmatprep.subr.bf16.mxu1 %v9387_v48  ;;  %v9433_v47 = vcombine.high %v1024_v40, %v1028_v41  ;;  %v9435_v48 = vcombine.high %v1025_v42, %v1029_v43  ;;  %v1068_v31 = vld [vmem:[#allocation5 + $0x1e20] sm:$0xff]  ;;  %v1069_v34 = vld [vmem:[#allocation5 + $0x1e28] sm:$0xff] }
 0x214   :  { %6619 = vmatpush1.bf16.msra.mxu0 %v9384_v56  ;;  %6947 = vmatpush1.bf16.msra.mxu1 %v9386_v58  ;;  %v9432_v56 = vcombine.low %v1024_v40, %v1028_v41  ;;  %v9434_v58 = vcombine.low %v1025_v42, %v1029_v43  ;;  %v1072_v40 = vld [vmem:[#allocation5 + $0x1e40] sm:$0xff]  ;;  %v1073_v42 = vld [vmem:[#allocation5 + $0x1e48] sm:$0xff] }
 0x215   :  { %6620 = vmatprep.subr.bf16.mxu0 %v9393_v19  ;;  %6948 = vmatprep.subr.bf16.mxu1 %v9395_v61  ;;  %v9441_v19 = vcombine.high %v1032_v50, %v1036_v51  ;;  %v9443_v61 = vcombine.high %v1033_v52, %v1037_v54  ;;  %v1076_v41 = vld [vmem:[#allocation5 + $0x1e60] sm:$0xff]  ;;  %v1077_v43 = vld [vmem:[#allocation5 + $0x1e68] sm:$0xff] }
 0x218   :  { %6621 = vmatpush1.bf16.msra.mxu0 %v9392_v39  ;;  %6949 = vmatpush1.bf16.msra.mxu1 %v9394_v3  ;;  %v9440_v39 = vcombine.low %v1032_v50, %v1036_v51  ;;  %v9442_v3 = vcombine.low %v1033_v52, %v1037_v54  ;;  %v1080_v50 = vld [vmem:[#allocation5 + $0x1e80] sm:$0xff]  ;;  %v1081_v52 = vld [vmem:[#allocation5 + $0x1e88] sm:$0xff] }
 0x219   :  { %6622 = vmatprep.subr.bf16.mxu0 %v9401_v4  ;;  %6950 = vmatprep.subr.bf16.mxu1 %v9403_v5  ;;  %v9449_v4 = vcombine.high %v1040_v62, %v1044_v63  ;;  %v9451_v5 = vcombine.high %v1041_v0, %v1045_v1  ;;  %v1084_v51 = vld [vmem:[#allocation5 + $0x1ea0] sm:$0xff]  ;;  %v1085_v54 = vld [vmem:[#allocation5 + $0x1ea8] sm:$0xff] }
 0x21c   :  { %6623 = vmatpush1.bf16.msra.mxu0 %v9400_v10  ;;  %6951 = vmatpush1.bf16.msra.mxu1 %v9402_v11  ;;  %v9448_v10 = vcombine.low %v1040_v62, %v1044_v63  ;;  %v9450_v11 = vcombine.low %v1041_v0, %v1045_v1  ;;  %v1088_v62 = vld [vmem:[#allocation5 + $0x1ec0] sm:$0xff]  ;;  %v1089_v0 = vld [vmem:[#allocation5 + $0x1ec8] sm:$0xff] }
 0x21d   :  { %6633 = vmatprep.subr.bf16.mxu0 %v9409_v13  ;;  %6961 = vmatprep.subr.bf16.mxu1 %v9411_v14  ;;  %v9457_v13 = vcombine.high %v1048_v6, %v1052_v7  ;;  %v9459_v14 = vcombine.high %v1049_v8, %v1053_v9  ;;  %v1092_v63 = vld [vmem:[#allocation5 + $0x1ee0] sm:$0xff]  ;;  %v1093_v1 = vld [vmem:[#allocation5 + $0x1ee8] sm:$0xff] }
 0x21f   :  { %6625 = vmatmul.mubr.bf16.vlgmr.msra.gmra.mrb[0].mxu0 %v10256_v20  ;;  %6953 = vmatmul.mubr.bf16.vlgmr.msra.gmra.mrb[0].mxu1 %v10256_v20 }
 0x220   :  { %6634 = vmatpush1.bf16.msra.mxu0 %v9408_v26  ;;  %6962 = vmatpush1.bf16.msra.mxu1 %v9410_v27  ;;  %v9456_v26 = vcombine.low %v1048_v6, %v1052_v7  ;;  %v9458_v27 = vcombine.low %v1049_v8, %v1053_v9  ;;  %v1096_v6 = vld [vmem:[#allocation5 + $0x1f00] sm:$0xff]  ;;  %v1097_v8 = vld [vmem:[#allocation5 + $0x1f08] sm:$0xff] }
 0x221   :  { %6635 = vmatprep.subr.bf16.mxu0 %v9417_v59  ;;  %6963 = vmatprep.subr.bf16.mxu1 %v9419_v29  ;;  %v9465_v59 = vcombine.high %v1056_v17, %v1060_v18  ;;  %v9467_v29 = vcombine.high %v1057_v21, %v1061_v22  ;;  %v1100_v7 = vld [vmem:[#allocation5 + $0x1f20] sm:$0xff]  ;;  %v1101_v9 = vld [vmem:[#allocation5 + $0x1f28] sm:$0xff] }
 0x222   :  { %6665 = vmatprep.mubr.bf16.mxu0 %v10262_v33  ;;  %6993 = vmatprep.mubr.bf16.mxu1 %v10262_v33 }
 0x224   :  { %6636 = vmatpush1.bf16.msra.mxu0 %v9416_v15  ;;  %6964 = vmatpush1.bf16.msra.mxu1 %v9418_v35  ;;  %v9464_v15 = vcombine.low %v1056_v17, %v1060_v18  ;;  %v9466_v35 = vcombine.low %v1057_v21, %v1061_v22  ;;  %v1104_v17 = vld [vmem:[#allocation5 + $0x1f40] sm:$0xff]  ;;  %v1105_v21 = vld [vmem:[#allocation5 + $0x1f48] sm:$0xff] }
 0x225   :  { %6637 = vmatprep.subr.bf16.mxu0 %v9425_v37  ;;  %6965 = vmatprep.subr.bf16.mxu1 %v9427_v38  ;;  %v9473_v37 = vcombine.high %v1064_v30, %v1068_v31  ;;  %v9475_v38 = vcombine.high %v1065_v49, %v1069_v34  ;;  %v1108_v18 = vld [vmem:[#allocation5 + $0x1f60] sm:$0xff]  ;;  %v1109_v22 = vld [vmem:[#allocation5 + $0x1f68] sm:$0xff] }
 0x228   :  { %6638 = vmatpush1.bf16.msra.mxu0 %v9424_v44  ;;  %6966 = vmatpush1.bf16.msra.mxu1 %v9426_v45  ;;  %v9472_v44 = vcombine.low %v1064_v30, %v1068_v31  ;;  %v9474_v45 = vcombine.low %v1065_v49, %v1069_v34  ;;  %v1112_v30 = vld [vmem:[#allocation5 + $0x1f80] sm:$0xff]  ;;  %v1113_v49 = vld [vmem:[#allocation5 + $0x1f88] sm:$0xff] }
 0x229   :  { %6639 = vmatprep.subr.bf16.mxu0 %v9433_v47  ;;  %6967 = vmatprep.subr.bf16.mxu1 %v9435_v48  ;;  %v9481_v47 = vcombine.high %v1072_v40, %v1076_v41  ;;  %v9483_v48 = vcombine.high %v1073_v42, %v1077_v43  ;;  %v1116_v31 = vld [vmem:[#allocation5 + $0x1fa0] sm:$0xff]  ;;  %v1117_v34 = vld [vmem:[#allocation5 + $0x1fa8] sm:$0xff] }
 0x22c   :  { %6640 = vmatpush1.bf16.msra.mxu0 %v9432_v56  ;;  %6968 = vmatpush1.bf16.msra.mxu1 %v9434_v58  ;;  %v9480_v56 = vcombine.low %v1072_v40, %v1076_v41  ;;  %v9482_v58 = vcombine.low %v1073_v42, %v1077_v43  ;;  %v1120_v40 = vld [vmem:[#allocation5 + $0x1fc0] sm:$0xff]  ;;  %v1121_v42 = vld [vmem:[#allocation5 + $0x1fc8] sm:$0xff] }
 0x22d   :  { %6641 = vmatprep.subr.bf16.mxu0 %v9441_v19  ;;  %6969 = vmatprep.subr.bf16.mxu1 %v9443_v61  ;;  %v9489_v19 = vcombine.high %v1080_v50, %v1084_v51  ;;  %v9491_v61 = vcombine.high %v1081_v52, %v1085_v54  ;;  %v1124_v41 = vld [vmem:[#allocation5 + $0x1fe0] sm:$0xff]  ;;  %v1125_v43 = vld [vmem:[#allocation5 + $0x1fe8] sm:$0xff] }
 0x230   :  { %6642 = vmatpush1.bf16.msra.mxu0 %v9440_v39  ;;  %6970 = vmatpush1.bf16.msra.mxu1 %v9442_v3  ;;  %v9488_v39 = vcombine.low %v1080_v50, %v1084_v51  ;;  %v9490_v3 = vcombine.low %v1081_v52, %v1085_v54  ;;  %v106_v50 = vld [vmem:[#allocation5 + $0x10] sm:$0xff]  ;;  %v107_v52 = vld [vmem:[#allocation5 + $0x18] sm:$0xff] }
 0x231   :  { %6643 = vmatprep.subr.bf16.mxu0 %v9449_v4  ;;  %6971 = vmatprep.subr.bf16.mxu1 %v9451_v5  ;;  %v9497_v4 = vcombine.high %v1088_v62, %v1092_v63  ;;  %v9499_v5 = vcombine.high %v1089_v0, %v1093_v1  ;;  %v110_v51 = vld [vmem:[#allocation5 + $0x30] sm:$0xff]  ;;  %v111_v54 = vld [vmem:[#allocation5 + $0x38] sm:$0xff] }
 0x234   :  { %6644 = vmatpush1.bf16.msra.mxu0 %v9448_v10  ;;  %6972 = vmatpush1.bf16.msra.mxu1 %v9450_v11  ;;  %v9496_v10 = vcombine.low %v1088_v62, %v1092_v63  ;;  %v9498_v11 = vcombine.low %v1089_v0, %v1093_v1  ;;  %v114_v62 = vld [vmem:[#allocation5 + $0x50] sm:$0xff]  ;;  %v10270_v0 = vcombine.low %v10258_v23, %v10258_v23  ;;  %v115_v1 = vld [vmem:[#allocation5 + $0x58] sm:$0xff] }
 0x235   :  { %6645 = vmatprep.subr.bf16.mxu0 %v9457_v13  ;;  %6973 = vmatprep.subr.bf16.mxu1 %v9459_v14  ;;  %v9505_v13 = vcombine.high %v1096_v6, %v1100_v7  ;;  %v9507_v14 = vcombine.high %v1097_v8, %v1101_v9  ;;  %v118_v63 = vld [vmem:[#allocation5 + $0x70] sm:$0xff] }
 0x236   :  { %v8524_v23 = vcombine.low %v114_v62, %v118_v63 }
 0x238   :  { %6646 = vmatpush1.bf16.msra.mxu0 %v9456_v26  ;;  %6974 = vmatpush1.bf16.msra.mxu1 %v9458_v27  ;;  %v9504_v26 = vcombine.low %v1096_v6, %v1100_v7  ;;  %v9506_v27 = vcombine.low %v1097_v8, %v1101_v9  ;;  %v122_v7 = vld [vmem:[#allocation5 + $0x90] sm:$0xff]  ;;  %v123_v9 = vld [vmem:[#allocation5 + $0x98] sm:$0xff] }
 0x239   :  { %6647 = vmatprep.subr.bf16.mxu0 %v9465_v59  ;;  %6975 = vmatprep.subr.bf16.mxu1 %v9467_v29  ;;  %v9513_v59 = vcombine.high %v1104_v17, %v1108_v18  ;;  %v9515_v29 = vcombine.high %v1105_v21, %v1109_v22  ;;  %v126_v8 = vld [vmem:[#allocation5 + $0xb0] sm:$0xff] }
 0x23c   :  { %6648 = vmatpush1.bf16.msra.mxu0 %v9464_v15  ;;  %6976 = vmatpush1.bf16.msra.mxu1 %v9466_v35  ;;  %v9512_v15 = vcombine.low %v1104_v17, %v1108_v18  ;;  %v9514_v35 = vcombine.low %v1105_v21, %v1109_v22  ;;  %v130_v17 = vld [vmem:[#allocation5 + $0xd0] sm:$0xff]  ;;  %v131_v21 = vld [vmem:[#allocation5 + $0xd8] sm:$0xff] }
 0x23d   :  { %6649 = vmatprep.subr.bf16.mxu0 %v9473_v37  ;;  %6977 = vmatprep.subr.bf16.mxu1 %v9475_v38  ;;  %v9521_v37 = vcombine.high %v1112_v30, %v1116_v31  ;;  %v9523_v38 = vcombine.high %v1113_v49, %v1117_v34  ;;  %v134_v18 = vld [vmem:[#allocation5 + $0xf0] sm:$0xff]  ;;  %v135_v22 = vld [vmem:[#allocation5 + $0xf8] sm:$0xff] }
 0x240   :  { %6650 = vmatpush1.bf16.msra.mxu0 %v9472_v44  ;;  %6978 = vmatpush1.bf16.msra.mxu1 %v9474_v45  ;;  %v9520_v44 = vcombine.low %v1112_v30, %v1116_v31  ;;  %v9522_v45 = vcombine.low %v1113_v49, %v1117_v34  ;;  %v138_v30 = vld [vmem:[#allocation5 + $0x110] sm:$0xff]  ;;  %v139_v49 = vld [vmem:[#allocation5 + $0x118] sm:$0xff] }
 0x241   :  { %6651 = vmatprep.subr.bf16.mxu0 %v9481_v47  ;;  %6979 = vmatprep.subr.bf16.mxu1 %v9483_v48  ;;  %v9529_v47 = vcombine.high %v1120_v40, %v1124_v41  ;;  %v9531_v48 = vcombine.high %v1121_v42, %v1125_v43  ;;  %v142_v31 = vld [vmem:[#allocation5 + $0x130] sm:$0xff]  ;;  %v143_v34 = vld [vmem:[#allocation5 + $0x138] sm:$0xff] }
 0x244   :  { %6652 = vmatpush1.bf16.msra.mxu0 %v9480_v56  ;;  %6980 = vmatpush1.bf16.msra.mxu1 %v9482_v58  ;;  %v9528_v56 = vcombine.low %v1120_v40, %v1124_v41  ;;  %v9530_v58 = vcombine.low %v1121_v42, %v1125_v43  ;;  %v150_v40 = vld [vmem:[#allocation5 + $0x170] sm:$0xff]  ;;  %v147_v41 = vld [vmem:[#allocation5 + $0x158] sm:$0xff]  ;;  %v8548_v43 = vcombine.low %v138_v30, %v142_v31 }
 0x245   :  { %6653 = vmatprep.subr.bf16.mxu0 %v9489_v19  ;;  %6981 = vmatprep.subr.bf16.mxu1 %v9491_v61  ;;  %v8517_v19 = vcombine.high %v106_v50, %v110_v51  ;;  %v8519_v61 = vcombine.high %v107_v52, %v111_v54  ;;  %v151_v42 = vld [vmem:[#allocation5 + $0x178] sm:$0xff] }
 0x248   :  { %6654 = vmatpush1.bf16.msra.mxu0 %v9488_v39  ;;  %6982 = vmatpush1.bf16.msra.mxu1 %v9490_v3  ;;  %v119_v39 = vld [vmem:[#allocation5 + $0x78] sm:$0xff]  ;;  %v8516_v3 = vcombine.low %v106_v50, %v110_v51  ;;  %v158_v50 = vld [vmem:[#allocation5 + $0x1b0] sm:$0xff] }
 0x249   :  { %6655 = vmatprep.subr.bf16.mxu0 %v9497_v4  ;;  %6983 = vmatprep.subr.bf16.mxu1 %v9499_v5  ;;  %v8518_v4 = vcombine.low %v107_v52, %v111_v54  ;;  %v8525_v5 = vcombine.high %v114_v62, %v118_v63  ;;  %v8527_v6 = vcombine.high %v115_v1, %v119_v39  ;;  %v155_v51 = vld [vmem:[#allocation5 + $0x198] sm:$0xff]  ;;  %v166_v62 = vld [vmem:[#allocation5 + $0x1f0] sm:$0xff] }
 0x24a   :  { %v159_v52 = vld [vmem:[#allocation5 + $0x1b8] sm:$0xff] }
 0x24b   :  { %v163_v63 = vld [vmem:[#allocation5 + $0x1d8] sm:$0xff] }
 0x24c   :  { %6656 = vmatpush1.bf16.msra.mxu0 %v9496_v10  ;;  %6984 = vmatpush1.bf16.msra.mxu1 %v9498_v11  ;;  %v127_v10 = vld [vmem:[#allocation5 + $0xb8] sm:$0xff]  ;;  %v8526_v11 = vcombine.low %v115_v1, %v119_v39 }
 0x24d   :  { %6657 = vmatprep.subr.bf16.mxu0 %v9505_v13  ;;  %6985 = vmatprep.subr.bf16.mxu1 %v9507_v14  ;;  %v8533_v13 = vcombine.high %v122_v7, %v126_v8  ;;  %v8535_v14 = vcombine.high %v123_v9, %v127_v10  ;;  %v167_v1 = vld [vmem:[#allocation5 + $0x1f8] sm:$0xff] }
 0x250   :  { %6658 = vmatpush1.bf16.msra.mxu0 %v9504_v26  ;;  %6986 = vmatpush1.bf16.msra.mxu1 %v9506_v27  ;;  %v8532_v26 = vcombine.low %v122_v7, %v126_v8  ;;  %v8534_v27 = vcombine.low %v123_v9, %v127_v10  ;;  %v174_v7 = vld [vmem:[#allocation5 + $0x230] sm:$0xff]  ;;  %v171_v8 = vld [vmem:[#allocation5 + $0x218] sm:$0xff] }
 0x251   :  { %6659 = vmatprep.subr.bf16.mxu0 %v9513_v59  ;;  %6987 = vmatprep.subr.bf16.mxu1 %v9515_v29  ;;  %v8541_v59 = vcombine.high %v130_v17, %v134_v18  ;;  %v8543_v29 = vcombine.high %v131_v21, %v135_v22  ;;  %v175_v9 = vld [vmem:[#allocation5 + $0x238] sm:$0xff] }
 0x254   :  { %6660 = vmatpush1.bf16.msra.mxu0 %v9512_v15  ;;  %6988 = vmatpush1.bf16.msra.mxu1 %v9514_v35  ;;  %v8540_v15 = vcombine.low %v130_v17, %v134_v18  ;;  %v8542_v35 = vcombine.low %v131_v21, %v135_v22  ;;  %v182_v17 = vld [vmem:[#allocation5 + $0x270] sm:$0xff]  ;;  %v179_v18 = vld [vmem:[#allocation5 + $0x258] sm:$0xff] }
 0x255   :  { %6661 = vmatprep.subr.bf16.mxu0 %v9521_v37  ;;  %6989 = vmatprep.subr.bf16.mxu1 %v9523_v38  ;;  %v8549_v37 = vcombine.high %v138_v30, %v142_v31  ;;  %v146_v38 = vld [vmem:[#allocation5 + $0x150] sm:$0xff]  ;;  %v183_v21 = vld [vmem:[#allocation5 + $0x278] sm:$0xff] }
 0x256   :  { %v8556_v54 = vcombine.low %v146_v38, %v150_v40  ;;  %v190_v30 = vld [vmem:[#allocation5 + $0x2b0] sm:$0xff]  ;;  %v187_v31 = vld [vmem:[#allocation5 + $0x298] sm:$0xff] }
 0x258   :  { %6662 = vmatpush1.bf16.msra.mxu0 %v9520_v44  ;;  %6990 = vmatpush1.bf16.msra.mxu1 %v9522_v45  ;;  %v8550_v44 = vcombine.low %v139_v49, %v143_v34  ;;  %v8557_v45 = vcombine.high %v146_v38, %v150_v40  ;;  %v198_v38 = vld [vmem:[#allocation5 + $0x2f0] sm:$0xff]  ;;  %v195_v40 = vld [vmem:[#allocation5 + $0x2d8] sm:$0xff] }
 0x259   :  { %6663 = vmatprep.subr.bf16.mxu0 %v9529_v47  ;;  %6991 = vmatprep.subr.bf16.mxu1 %v9531_v48  ;;  %v8559_v47 = vcombine.high %v147_v41, %v151_v42  ;;  %v154_v48 = vld [vmem:[#allocation5 + $0x190] sm:$0xff] }
 0x25a   :  { %v8564_v39 = vcombine.low %v154_v48, %v158_v50 }
 0x25c   :  { %6664 = vmatpush1.bf16.msra.mxu0 %v9528_v56  ;;  %6992 = vmatpush1.bf16.msra.mxu1 %v9530_v58  ;;  %v8558_v56 = vcombine.low %v147_v41, %v151_v42  ;;  %v8565_v58 = vcombine.high %v154_v48, %v158_v50  ;;  %v199_v41 = vld [vmem:[#allocation5 + $0x2f8] sm:$0xff]  ;;  %v206_v48 = vld [vmem:[#allocation5 + $0x330] sm:$0xff] }
 0x25d   :  { %7002 = vmatprep.subr.bf16.mxu0 %v8517_v19  ;;  %7330 = vmatprep.subr.bf16.mxu1 %v8519_v61  ;;  %v8567_v19 = vcombine.high %v155_v51, %v159_v52  ;;  %v162_v61 = vld [vmem:[#allocation5 + $0x1d0] sm:$0xff]  ;;  %v203_v50 = vld [vmem:[#allocation5 + $0x318] sm:$0xff] }
 0x25e   :  { %v8572_v10 = vcombine.low %v162_v61, %v166_v62 }
 0x25f   :  { %6666 = vmatmul.mubr.bf16.vlgmr.msra.gmra.mrb[0].mxu0 %v10270_v0  ;;  %6994 = vmatmul.mubr.bf16.vlgmr.msra.gmra.mrb[0].mxu1 %v10270_v0 }
 0x260   :  { %7003 = vmatpush1.bf16.msra.mxu0 %v8516_v3  ;;  %7331 = vmatpush1.bf16.msra.mxu1 %v8518_v4  ;;  %v8566_v3 = vcombine.low %v155_v51, %v159_v52  ;;  %v8573_v4 = vcombine.high %v162_v61, %v166_v62  ;;  %v207_v51 = vld [vmem:[#allocation5 + $0x338] sm:$0xff]  ;;  %v214_v61 = vld [vmem:[#allocation5 + $0x370] sm:$0xff] }
 0x261   :  { %7004 = vmatprep.subr.bf16.mxu0 %v8525_v5  ;;  %7332 = vmatprep.subr.bf16.mxu1 %v8527_v6  ;;  %v8575_v5 = vcombine.high %v163_v63, %v167_v1  ;;  %v170_v6 = vld [vmem:[#allocation5 + $0x210] sm:$0xff]  ;;  %v211_v62 = vld [vmem:[#allocation5 + $0x358] sm:$0xff] }
 0x262   :  { %7034 = vmatprep.mubr.bf16.mxu0 %v10166_v57  ;;  %7362 = vmatprep.mubr.bf16.mxu1 %v10166_v57  ;;  %v8551_v57 = vcombine.high %v139_v49, %v143_v34  ;;  %v8580_v22 = vcombine.low %v170_v6, %v174_v7  ;;  %v191_v49 = vld [vmem:[#allocation5 + $0x2b8] sm:$0xff] }
 0x264   :  { %7005 = vmatpush1.bf16.msra.mxu0 %v8524_v23  ;;  %7333 = vmatpush1.bf16.msra.mxu1 %v8526_v11  ;;  %v8574_v23 = vcombine.low %v163_v63, %v167_v1  ;;  %v8581_v11 = vcombine.high %v170_v6, %v174_v7  ;;  %v215_v63 = vld [vmem:[#allocation5 + $0x378] sm:$0xff]  ;;  %v222_v6 = vld [vmem:[#allocation5 + $0x3b0] sm:$0xff] }
 0x265   :  { %7006 = vmatprep.subr.bf16.mxu0 %v8533_v13  ;;  %7334 = vmatprep.subr.bf16.mxu1 %v8535_v14  ;;  %v8583_v13 = vcombine.high %v171_v8, %v175_v9  ;;  %v178_v14 = vld [vmem:[#allocation5 + $0x250] sm:$0xff]  ;;  %v219_v7 = vld [vmem:[#allocation5 + $0x398] sm:$0xff] }
 0x266   :  { %v8588_v34 = vcombine.low %v178_v14, %v182_v17 }
 0x268   :  { %7007 = vmatpush1.bf16.msra.mxu0 %v8532_v26  ;;  %7335 = vmatpush1.bf16.msra.mxu1 %v8534_v27  ;;  %v8582_v26 = vcombine.low %v171_v8, %v175_v9  ;;  %v8589_v27 = vcombine.high %v178_v14, %v182_v17  ;;  %v223_v8 = vld [vmem:[#allocation5 + $0x3b8] sm:$0xff]  ;;  %v230_v14 = vld [vmem:[#allocation5 + $0x3f0] sm:$0xff] }
 0x269   :  { %7008 = vmatprep.subr.bf16.mxu0 %v8541_v59  ;;  %7336 = vmatprep.subr.bf16.mxu1 %v8543_v29  ;;  %v8591_v59 = vcombine.high %v179_v18, %v183_v21  ;;  %v186_v29 = vld [vmem:[#allocation5 + $0x290] sm:$0xff]  ;;  %v227_v17 = vld [vmem:[#allocation5 + $0x3d8] sm:$0xff] }
 0x26a   :  { %v8596_v42 = vcombine.low %v186_v29, %v190_v30 }
 0x26c   :  { %7009 = vmatpush1.bf16.msra.mxu0 %v8540_v15  ;;  %7337 = vmatpush1.bf16.msra.mxu1 %v8542_v35  ;;  %v8590_v15 = vcombine.low %v179_v18, %v183_v21  ;;  %v8597_v35 = vcombine.high %v186_v29, %v190_v30  ;;  %v231_v18 = vld [vmem:[#allocation5 + $0x3f8] sm:$0xff]  ;;  %v238_v29 = vld [vmem:[#allocation5 + $0x430] sm:$0xff] }
 0x26d   :  { %7010 = vmatprep.subr.bf16.mxu0 %v8549_v37  ;;  %7338 = vmatprep.subr.bf16.mxu1 %v8551_v57  ;;  %v8599_v37 = vcombine.high %v187_v31, %v191_v49  ;;  %v194_v57 = vld [vmem:[#allocation5 + $0x2d0] sm:$0xff]  ;;  %v235_v30 = vld [vmem:[#allocation5 + $0x418] sm:$0xff] }
 0x26e   :  { %v8604_v52 = vcombine.low %v194_v57, %v198_v38 }
 0x270   :  { %7011 = vmatpush1.bf16.msra.mxu0 %v8548_v43  ;;  %7339 = vmatpush1.bf16.msra.mxu1 %v8550_v44  ;;  %v8598_v43 = vcombine.low %v187_v31, %v191_v49  ;;  %v8605_v44 = vcombine.high %v194_v57, %v198_v38  ;;  %v239_v31 = vld [vmem:[#allocation5 + $0x438] sm:$0xff]  ;;  %v246_v57 = vld [vmem:[#allocation5 + $0x470] sm:$0xff] }
 0x271   :  { %7012 = vmatprep.subr.bf16.mxu0 %v8557_v45  ;;  %7340 = vmatprep.subr.bf16.mxu1 %v8559_v47  ;;  %v8607_v45 = vcombine.high %v195_v40, %v199_v41  ;;  %v202_v47 = vld [vmem:[#allocation5 + $0x310] sm:$0xff]  ;;  %v243_v38 = vld [vmem:[#allocation5 + $0x458] sm:$0xff] }
 0x272   :  { %v8612_v1 = vcombine.low %v202_v47, %v206_v48 }
 0x274   :  { %7013 = vmatpush1.bf16.msra.mxu0 %v8556_v54  ;;  %7341 = vmatpush1.bf16.msra.mxu1 %v8558_v56  ;;  %v8606_v54 = vcombine.low %v195_v40, %v199_v41  ;;  %v8613_v56 = vcombine.high %v202_v47, %v206_v48  ;;  %v247_v40 = vld [vmem:[#allocation5 + $0x478] sm:$0xff]  ;;  %v254_v47 = vld [vmem:[#allocation5 + $0x4b0] sm:$0xff] }
 0x275   :  { %7014 = vmatprep.subr.bf16.mxu0 %v8565_v58  ;;  %7342 = vmatprep.subr.bf16.mxu1 %v8567_v19  ;;  %v8615_v58 = vcombine.high %v203_v50, %v207_v51  ;;  %v210_v19 = vld [vmem:[#allocation5 + $0x350] sm:$0xff]  ;;  %v251_v48 = vld [vmem:[#allocation5 + $0x498] sm:$0xff] }
 0x276   :  { %v8620_v9 = vcombine.low %v210_v19, %v214_v61 }
 0x278   :  { %7015 = vmatpush1.bf16.msra.mxu0 %v8564_v39  ;;  %7343 = vmatpush1.bf16.msra.mxu1 %v8566_v3  ;;  %v8614_v39 = vcombine.low %v203_v50, %v207_v51  ;;  %v8621_v3 = vcombine.high %v210_v19, %v214_v61  ;;  %v255_v50 = vld [vmem:[#allocation5 + $0x4b8] sm:$0xff]  ;;  %v262_v19 = vld [vmem:[#allocation5 + $0x4f0] sm:$0xff] }
 0x279   :  { %7016 = vmatprep.subr.bf16.mxu0 %v8573_v4  ;;  %7344 = vmatprep.subr.bf16.mxu1 %v8575_v5  ;;  %v8623_v4 = vcombine.high %v211_v62, %v215_v63  ;;  %v218_v5 = vld [vmem:[#allocation5 + $0x390] sm:$0xff]  ;;  %v259_v61 = vld [vmem:[#allocation5 + $0x4d8] sm:$0xff] }
 0x27a   :  { %v8628_v21 = vcombine.low %v218_v5, %v222_v6 }
 0x27c   :  { %7017 = vmatpush1.bf16.msra.mxu0 %v8572_v10  ;;  %7345 = vmatpush1.bf16.msra.mxu1 %v8574_v23  ;;  %v8622_v10 = vcombine.low %v211_v62, %v215_v63  ;;  %v8629_v23 = vcombine.high %v218_v5, %v222_v6  ;;  %v263_v62 = vld [vmem:[#allocation5 + $0x4f8] sm:$0xff] }
 0x27d   :  { %7018 = vmatprep.subr.bf16.mxu0 %v8581_v11  ;;  %7346 = vmatprep.subr.bf16.mxu1 %v8583_v13  ;;  %v8631_v11 = vcombine.high %v219_v7, %v223_v8  ;;  %v226_v13 = vld [vmem:[#allocation5 + $0x3d0] sm:$0xff]  ;;  %v267_v5 = vld [vmem:[#allocation5 + $0x518] sm:$0xff] }
 0x27e   :  { %v8636_v49 = vcombine.low %v226_v13, %v230_v14  ;;  %v271_v6 = vld [vmem:[#allocation5 + $0x538] sm:$0xff] }
 0x280   :  { %7019 = vmatpush1.bf16.msra.mxu0 %v8580_v22  ;;  %7347 = vmatpush1.bf16.msra.mxu1 %v8582_v26  ;;  %v8630_v22 = vcombine.low %v219_v7, %v223_v8  ;;  %v8637_v26 = vcombine.high %v226_v13, %v230_v14  ;;  %v8670_v8 = vcombine.low %v259_v61, %v263_v62  ;;  %v279_v13 = vld [vmem:[#allocation5 + $0x578] sm:$0xff] }
 0x281   :  { %7020 = vmatprep.subr.bf16.mxu0 %v8589_v27  ;;  %7348 = vmatprep.subr.bf16.mxu1 %v8591_v59  ;;  %v8639_v27 = vcombine.high %v227_v17, %v231_v18  ;;  %v234_v59 = vld [vmem:[#allocation5 + $0x410] sm:$0xff] }
 0x282   :  { %v8644_v41 = vcombine.low %v234_v59, %v238_v29 }
 0x284   :  { %7021 = vmatpush1.bf16.msra.mxu0 %v8588_v34  ;;  %7349 = vmatpush1.bf16.msra.mxu1 %v8590_v15  ;;  %v8638_v34 = vcombine.low %v227_v17, %v231_v18  ;;  %v8645_v15 = vcombine.high %v234_v59, %v238_v29  ;;  %v8678_v17 = vcombine.low %v267_v5, %v271_v6  ;;  %v287_v59 = vld [vmem:[#allocation5 + $0x5b8] sm:$0xff] }
 0x285   :  { %7022 = vmatprep.subr.bf16.mxu0 %v8597_v35  ;;  %7350 = vmatprep.subr.bf16.mxu1 %v8599_v37  ;;  %v8647_v35 = vcombine.high %v235_v30, %v239_v31  ;;  %v242_v37 = vld [vmem:[#allocation5 + $0x450] sm:$0xff] }
 0x286   :  { %v8652_v51 = vcombine.low %v242_v37, %v246_v57 }
 0x288   :  { %7023 = vmatpush1.bf16.msra.mxu0 %v8596_v42  ;;  %7351 = vmatpush1.bf16.msra.mxu1 %v8598_v43  ;;  %v8646_v42 = vcombine.low %v235_v30, %v239_v31  ;;  %v8653_v43 = vcombine.high %v242_v37, %v246_v57  ;;  %v295_v37 = vld [vmem:[#allocation5 + $0x5f8] sm:$0xff] }
 0x289   :  { %7024 = vmatprep.subr.bf16.mxu0 %v8605_v44  ;;  %7352 = vmatprep.subr.bf16.mxu1 %v8607_v45  ;;  %v8655_v44 = vcombine.high %v243_v38, %v247_v40  ;;  %v250_v45 = vld [vmem:[#allocation5 + $0x490] sm:$0xff] }
 0x28a   :  { %v8660_v63 = vcombine.low %v250_v45, %v254_v47 }
 0x28c   :  { %7025 = vmatpush1.bf16.msra.mxu0 %v8604_v52  ;;  %7353 = vmatpush1.bf16.msra.mxu1 %v8606_v54  ;;  %v8654_v52 = vcombine.low %v243_v38, %v247_v40  ;;  %v8661_v54 = vcombine.high %v250_v45, %v254_v47  ;;  %v303_v45 = vld [vmem:[#allocation5 + $0x638] sm:$0xff] }
 0x28d   :  { %7026 = vmatprep.subr.bf16.mxu0 %v8613_v56  ;;  %7354 = vmatprep.subr.bf16.mxu1 %v8615_v58  ;;  %v8663_v56 = vcombine.high %v251_v48, %v255_v50  ;;  %v258_v58 = vld [vmem:[#allocation5 + $0x4d0] sm:$0xff] }
 0x28e   :  { %v8668_v7 = vcombine.low %v258_v58, %v262_v19 }
 0x290   :  { %7027 = vmatpush1.bf16.msra.mxu0 %v8612_v1  ;;  %7355 = vmatpush1.bf16.msra.mxu1 %v8614_v39  ;;  %v8669_v1 = vcombine.high %v258_v58, %v262_v19  ;;  %v8671_v39 = vcombine.high %v259_v61, %v263_v62  ;;  %v311_v58 = vld [vmem:[#allocation5 + $0x678] sm:$0xff] }
 0x291   :  { %7028 = vmatprep.subr.bf16.mxu0 %v8621_v3  ;;  %7356 = vmatprep.subr.bf16.mxu1 %v8623_v4  ;;  %v266_v3 = vld [vmem:[#allocation5 + $0x510] sm:$0xff] }
 0x292   :  { %v270_v4 = vld [vmem:[#allocation5 + $0x530] sm:$0xff] }
 0x293   :  { %v8676_v14 = vcombine.low %v266_v3, %v270_v4 }
 0x294   :  { %7029 = vmatpush1.bf16.msra.mxu0 %v8620_v9  ;;  %7357 = vmatpush1.bf16.msra.mxu1 %v8622_v10  ;;  %v8677_v9 = vcombine.high %v266_v3, %v270_v4  ;;  %v274_v10 = vld [vmem:[#allocation5 + $0x550] sm:$0xff]  ;;  %v319_v3 = vld [vmem:[#allocation5 + $0x6b8] sm:$0xff] }
 0x295   :  { %7030 = vmatprep.subr.bf16.mxu0 %v8629_v23  ;;  %7358 = vmatprep.subr.bf16.mxu1 %v8631_v11  ;;  %v278_v23 = vld [vmem:[#allocation5 + $0x570] sm:$0xff]  ;;  %v275_v11 = vld [vmem:[#allocation5 + $0x558] sm:$0xff] }
 0x296   :  { %v8685_v18 = vcombine.high %v274_v10, %v278_v23  ;;  %v8684_v29 = vcombine.low %v274_v10, %v278_v23  ;;  %v8686_v30 = vcombine.low %v275_v11, %v279_v13  ;;  %v327_v10 = vld [vmem:[#allocation5 + $0x6f8] sm:$0xff] }
 0x298   :  { %7031 = vmatpush1.bf16.msra.mxu0 %v8628_v21  ;;  %7359 = vmatpush1.bf16.msra.mxu1 %v8630_v22  ;;  %v8687_v21 = vcombine.high %v275_v11, %v279_v13  ;;  %v282_v22 = vld [vmem:[#allocation5 + $0x590] sm:$0xff] }
 0x299   :  { %7032 = vmatprep.subr.bf16.mxu0 %v8637_v26  ;;  %7360 = vmatprep.subr.bf16.mxu1 %v8639_v27  ;;  %v286_v26 = vld [vmem:[#allocation5 + $0x5b0] sm:$0xff]  ;;  %v283_v27 = vld [vmem:[#allocation5 + $0x598] sm:$0xff] }
 0x29a   :  { %v8693_v31 = vcombine.high %v282_v22, %v286_v26  ;;  %v8692_v57 = vcombine.low %v282_v22, %v286_v26  ;;  %v8694_v38 = vcombine.low %v283_v27, %v287_v59  ;;  %v335_v22 = vld [vmem:[#allocation5 + $0x738] sm:$0xff] }
 0x29c   :  { %7033 = vmatpush1.bf16.msra.mxu0 %v8636_v49  ;;  %7361 = vmatpush1.bf16.msra.mxu1 %v8638_v34  ;;  %v8695_v49 = vcombine.high %v283_v27, %v287_v59  ;;  %v290_v34 = vld [vmem:[#allocation5 + $0x5d0] sm:$0xff] }
 0x29d   :  { %7043 = vmatprep.subr.bf16.mxu0 %v8645_v15  ;;  %7371 = vmatprep.subr.bf16.mxu1 %v8647_v35  ;;  %v294_v15 = vld [vmem:[#allocation5 + $0x5f0] sm:$0xff]  ;;  %v291_v35 = vld [vmem:[#allocation5 + $0x5d8] sm:$0xff] }
 0x29e   :  { %v8701_v40 = vcombine.high %v290_v34, %v294_v15  ;;  %v8700_v47 = vcombine.low %v290_v34, %v294_v15  ;;  %v343_v34 = vld [vmem:[#allocation5 + $0x778] sm:$0xff] }
 0x29f   :  { %7035 = vmatmul.mubr.bf16.vlgmr.msra.gmra.mrb[4].mxu0 %v10172_v12  ;;  %7363 = vmatmul.mubr.bf16.vlgmr.msra.gmra.mrb[4].mxu1 %v10172_v12  ;;  %v8662_v12 = vcombine.low %v251_v48, %v255_v50  ;;  %v8702_v48 = vcombine.low %v291_v35, %v295_v37 }
 0x2a0   :  { %7044 = vmatpush1.bf16.msra.mxu0 %v8644_v41  ;;  %7372 = vmatpush1.bf16.msra.mxu1 %v8646_v42  ;;  %v8703_v41 = vcombine.high %v291_v35, %v295_v37  ;;  %v298_v42 = vld [vmem:[#allocation5 + $0x610] sm:$0xff] }
 0x2a1   :  { %7045 = vmatprep.subr.bf16.mxu0 %v8653_v43  ;;  %7373 = vmatprep.subr.bf16.mxu1 %v8655_v44  ;;  %v302_v43 = vld [vmem:[#allocation5 + $0x630] sm:$0xff]  ;;  %v299_v44 = vld [vmem:[#allocation5 + $0x618] sm:$0xff] }
 0x2a2   :  { %7075 = vmatprep.mubr.bf16.mxu0 %v10178_v53  ;;  %7403 = vmatprep.mubr.bf16.mxu1 %v10178_v53  ;;  %v8679_v53 = vcombine.high %v267_v5, %v271_v6  ;;  %v8709_v50 = vcombine.high %v298_v42, %v302_v43  ;;  %v8708_v19 = vcombine.low %v298_v42, %v302_v43  ;;  %v351_v42 = vld [vmem:[#allocation5 + $0x7b8] sm:$0xff] }
 0x2a3   :  { %v8710_v61 = vcombine.low %v299_v44, %v303_v45 }
 0x2a4   :  { %7046 = vmatpush1.bf16.msra.mxu0 %v8652_v51  ;;  %7374 = vmatpush1.bf16.msra.mxu1 %v8654_v52  ;;  %v8711_v51 = vcombine.high %v299_v44, %v303_v45  ;;  %v306_v52 = vld [vmem:[#allocation5 + $0x650] sm:$0xff] }
 0x2a5   :  { %7047 = vmatprep.subr.bf16.mxu0 %v8661_v54  ;;  %7375 = vmatprep.subr.bf16.mxu1 %v8663_v56  ;;  %v310_v54 = vld [vmem:[#allocation5 + $0x670] sm:$0xff]  ;;  %v307_v56 = vld [vmem:[#allocation5 + $0x658] sm:$0xff] }
 0x2a6   :  { %v8717_v62 = vcombine.high %v306_v52, %v310_v54  ;;  %v8716_v4 = vcombine.low %v306_v52, %v310_v54  ;;  %v8718_v5 = vcombine.low %v307_v56, %v311_v58  ;;  %v359_v52 = vld [vmem:[#allocation5 + $0x7f8] sm:$0xff] }
 0x2a8   :  { %7048 = vmatpush1.bf16.msra.mxu0 %v8660_v63  ;;  %7376 = vmatpush1.bf16.msra.mxu1 %v8662_v12  ;;  %v8719_v63 = vcombine.high %v307_v56, %v311_v58  ;;  %v314_v12 = vld [vmem:[#allocation5 + $0x690] sm:$0xff] }
 0x2a9   :  { %7049 = vmatprep.subr.bf16.mxu0 %v8669_v1  ;;  %7377 = vmatprep.subr.bf16.mxu1 %v8671_v39  ;;  %v318_v1 = vld [vmem:[#allocation5 + $0x6b0] sm:$0xff]  ;;  %v315_v39 = vld [vmem:[#allocation5 + $0x698] sm:$0xff] }
 0x2aa   :  { %v8725_v6 = vcombine.high %v314_v12, %v318_v1  ;;  %v8724_v23 = vcombine.low %v314_v12, %v318_v1  ;;  %v8726_v11 = vcombine.low %v315_v39, %v319_v3  ;;  %v367_v12 = vld [vmem:[#allocation5 + $0x838] sm:$0xff] }
 0x2ac   :  { %7050 = vmatpush1.bf16.msra.mxu0 %v8668_v7  ;;  %7378 = vmatpush1.bf16.msra.mxu1 %v8670_v8  ;;  %v8727_v7 = vcombine.high %v315_v39, %v319_v3  ;;  %v322_v8 = vld [vmem:[#allocation5 + $0x6d0] sm:$0xff] }
 0x2ad   :  { %7051 = vmatprep.subr.bf16.mxu0 %v8677_v9  ;;  %7379 = vmatprep.subr.bf16.mxu1 %v8679_v53  ;;  %v326_v9 = vld [vmem:[#allocation5 + $0x6f0] sm:$0xff]  ;;  %v323_v53 = vld [vmem:[#allocation5 + $0x6d8] sm:$0xff] }
 0x2ae   :  { %v8733_v13 = vcombine.high %v322_v8, %v326_v9  ;;  %v8732_v26 = vcombine.low %v322_v8, %v326_v9  ;;  %v8734_v27 = vcombine.low %v323_v53, %v327_v10  ;;  %v375_v8 = vld [vmem:[#allocation5 + $0x878] sm:$0xff] }
 0x2b0   :  { %7052 = vmatpush1.bf16.msra.mxu0 %v8676_v14  ;;  %7380 = vmatpush1.bf16.msra.mxu1 %v8678_v17  ;;  %v8735_v14 = vcombine.high %v323_v53, %v327_v10  ;;  %v330_v17 = vld [vmem:[#allocation5 + $0x710] sm:$0xff] }
 0x2b1   :  { %7053 = vmatprep.subr.bf16.mxu0 %v8685_v18  ;;  %7381 = vmatprep.subr.bf16.mxu1 %v8687_v21  ;;  %v334_v18 = vld [vmem:[#allocation5 + $0x730] sm:$0xff]  ;;  %v331_v21 = vld [vmem:[#allocation5 + $0x718] sm:$0xff] }
 0x2b2   :  { %v8741_v59 = vcombine.high %v330_v17, %v334_v18  ;;  %v8740_v15 = vcombine.low %v330_v17, %v334_v18  ;;  %v8742_v35 = vcombine.low %v331_v21, %v335_v22  ;;  %v383_v17 = vld [vmem:[#allocation5 + $0x8b8] sm:$0xff] }
 0x2b4   :  { %7054 = vmatpush1.bf16.msra.mxu0 %v8684_v29  ;;  %7382 = vmatpush1.bf16.msra.mxu1 %v8686_v30  ;;  %v8743_v29 = vcombine.high %v331_v21, %v335_v22  ;;  %v338_v30 = vld [vmem:[#allocation5 + $0x750] sm:$0xff] }
 0x2b5   :  { %7055 = vmatprep.subr.bf16.mxu0 %v8693_v31  ;;  %7383 = vmatprep.subr.bf16.mxu1 %v8695_v49  ;;  %v342_v31 = vld [vmem:[#allocation5 + $0x770] sm:$0xff]  ;;  %v339_v49 = vld [vmem:[#allocation5 + $0x758] sm:$0xff] }
 0x2b6   :  { %v8749_v37 = vcombine.high %v338_v30, %v342_v31  ;;  %v8748_v43 = vcombine.low %v338_v30, %v342_v31  ;;  %v8750_v44 = vcombine.low %v339_v49, %v343_v34  ;;  %v391_v30 = vld [vmem:[#allocation5 + $0x8f8] sm:$0xff] }
 0x2b8   :  { %7056 = vmatpush1.bf16.msra.mxu0 %v8692_v57  ;;  %7384 = vmatpush1.bf16.msra.mxu1 %v8694_v38  ;;  %v8751_v57 = vcombine.high %v339_v49, %v343_v34  ;;  %v346_v38 = vld [vmem:[#allocation5 + $0x790] sm:$0xff] }
 0x2b9   :  { %7057 = vmatprep.subr.bf16.mxu0 %v8701_v40  ;;  %7385 = vmatprep.subr.bf16.mxu1 %v8703_v41  ;;  %v350_v40 = vld [vmem:[#allocation5 + $0x7b0] sm:$0xff]  ;;  %v347_v41 = vld [vmem:[#allocation5 + $0x798] sm:$0xff] }
 0x2ba   :  { %v8757_v45 = vcombine.high %v346_v38, %v350_v40  ;;  %v8756_v54 = vcombine.low %v346_v38, %v350_v40  ;;  %v8758_v56 = vcombine.low %v347_v41, %v351_v42 }
 0x2bc   :  { %7058 = vmatpush1.bf16.msra.mxu0 %v8700_v47  ;;  %7386 = vmatpush1.bf16.msra.mxu1 %v8702_v48  ;;  %v8759_v47 = vcombine.high %v347_v41, %v351_v42  ;;  %v354_v48 = vld [vmem:[#allocation5 + $0x7d0] sm:$0xff] }
 0x2bd   :  { %7059 = vmatprep.subr.bf16.mxu0 %v8709_v50  ;;  %7387 = vmatprep.subr.bf16.mxu1 %v8711_v51  ;;  %v358_v50 = vld [vmem:[#allocation5 + $0x7f0] sm:$0xff]  ;;  %v355_v51 = vld [vmem:[#allocation5 + $0x7d8] sm:$0xff] }
 0x2be   :  { %v8765_v58 = vcombine.high %v354_v48, %v358_v50  ;;  %v8764_v1 = vcombine.low %v354_v48, %v358_v50  ;;  %v8766_v39 = vcombine.low %v355_v51, %v359_v52  ;;  %v402_v42 = vld [vmem:[#allocation5 + $0x950] sm:$0xff] }
 0x2c0   :  { %7060 = vmatpush1.bf16.msra.mxu0 %v8708_v19  ;;  %7388 = vmatpush1.bf16.msra.mxu1 %v8710_v61  ;;  %v8767_v19 = vcombine.high %v355_v51, %v359_v52  ;;  %v362_v61 = vld [vmem:[#allocation5 + $0x810] sm:$0xff] }
 0x2c1   :  { %7061 = vmatprep.subr.bf16.mxu0 %v8717_v62  ;;  %7389 = vmatprep.subr.bf16.mxu1 %v8719_v63  ;;  %v366_v62 = vld [vmem:[#allocation5 + $0x830] sm:$0xff]  ;;  %v363_v63 = vld [vmem:[#allocation5 + $0x818] sm:$0xff] }
 0x2c2   :  { %v8773_v3 = vcombine.high %v362_v61, %v366_v62  ;;  %v8772_v9 = vcombine.low %v362_v61, %v366_v62  ;;  %v8774_v53 = vcombine.low %v363_v63, %v367_v12  ;;  %v410_v52 = vld [vmem:[#allocation5 + $0x990] sm:$0xff] }
 0x2c4   :  { %7062 = vmatpush1.bf16.msra.mxu0 %v8716_v4  ;;  %7390 = vmatpush1.bf16.msra.mxu1 %v8718_v5  ;;  %v8775_v4 = vcombine.high %v363_v63, %v367_v12  ;;  %v370_v5 = vld [vmem:[#allocation5 + $0x850] sm:$0xff] }
 0x2c5   :  { %7063 = vmatprep.subr.bf16.mxu0 %v8725_v6  ;;  %7391 = vmatprep.subr.bf16.mxu1 %v8727_v7  ;;  %v374_v6 = vld [vmem:[#allocation5 + $0x870] sm:$0xff]  ;;  %v371_v7 = vld [vmem:[#allocation5 + $0x858] sm:$0xff] }
 0x2c6   :  { %v8781_v10 = vcombine.high %v370_v5, %v374_v6  ;;  %v8780_v18 = vcombine.low %v370_v5, %v374_v6  ;;  %v8782_v21 = vcombine.low %v371_v7, %v375_v8  ;;  %v418_v12 = vld [vmem:[#allocation5 + $0x9d0] sm:$0xff] }
 0x2c8   :  { %7064 = vmatpush1.bf16.msra.mxu0 %v8724_v23  ;;  %7392 = vmatpush1.bf16.msra.mxu1 %v8726_v11  ;;  %v8783_v23 = vcombine.high %v371_v7, %v375_v8  ;;  %v378_v11 = vld [vmem:[#allocation5 + $0x890] sm:$0xff] }
 0x2c9   :  { %7065 = vmatprep.subr.bf16.mxu0 %v8733_v13  ;;  %7393 = vmatprep.subr.bf16.mxu1 %v8735_v14  ;;  %v382_v13 = vld [vmem:[#allocation5 + $0x8b0] sm:$0xff]  ;;  %v379_v14 = vld [vmem:[#allocation5 + $0x898] sm:$0xff] }
 0x2ca   :  { %v8789_v22 = vcombine.high %v378_v11, %v382_v13  ;;  %v8788_v31 = vcombine.low %v378_v11, %v382_v13  ;;  %v426_v8 = vld [vmem:[#allocation5 + $0xa10] sm:$0xff] }
 0x2cc   :  { %7066 = vmatpush1.bf16.msra.mxu0 %v8732_v26  ;;  %7394 = vmatpush1.bf16.msra.mxu1 %v8734_v27  ;;  %v8791_v26 = vcombine.high %v379_v14, %v383_v17  ;;  %v386_v27 = vld [vmem:[#allocation5 + $0x8d0] sm:$0xff] }
 0x2cd   :  { %7067 = vmatprep.subr.bf16.mxu0 %v8741_v59  ;;  %7395 = vmatprep.subr.bf16.mxu1 %v8743_v29  ;;  %v390_v59 = vld [vmem:[#allocation5 + $0x8f0] sm:$0xff]  ;;  %v387_v29 = vld [vmem:[#allocation5 + $0x8d8] sm:$0xff] }
 0x2ce   :  { %v8797_v49 = vcombine.high %v386_v27, %v390_v59  ;;  %v8799_v34 = vcombine.high %v387_v29, %v391_v30  ;;  %v8796_v38 = vcombine.low %v386_v27, %v390_v59  ;;  %v8798_v40 = vcombine.low %v387_v29, %v391_v30  ;;  %v442_v30 = vld [vmem:[#allocation5 + $0xa90] sm:$0xff] }
 0x2d0   :  { %7068 = vmatpush1.bf16.msra.mxu0 %v8740_v15  ;;  %7396 = vmatpush1.bf16.msra.mxu1 %v8742_v35  ;;  %v394_v15 = vld [vmem:[#allocation5 + $0x910] sm:$0xff] }
 0x2d1   :  { %7069 = vmatprep.subr.bf16.mxu0 %v8749_v37  ;;  %7397 = vmatprep.subr.bf16.mxu1 %v8751_v57  ;;  %v398_v35 = vld [vmem:[#allocation5 + $0x930] sm:$0xff]  ;;  %v395_v37 = vld [vmem:[#allocation5 + $0x918] sm:$0xff] }
 0x2d2   :  { %v399_v57 = vld [vmem:[#allocation5 + $0x938] sm:$0xff]  ;;  %v8805_v41 = vcombine.high %v394_v15, %v398_v35 }
 0x2d3   :  { %v8806_v48 = vcombine.low %v395_v37, %v399_v57 }
 0x2d4   :  { %7070 = vmatpush1.bf16.msra.mxu0 %v8748_v43  ;;  %7398 = vmatpush1.bf16.msra.mxu1 %v8750_v44  ;;  %v406_v43 = vld [vmem:[#allocation5 + $0x970] sm:$0xff]  ;;  %v403_v44 = vld [vmem:[#allocation5 + $0x958] sm:$0xff] }
 0x2d5   :  { %7071 = vmatprep.subr.bf16.mxu0 %v8757_v45  ;;  %7399 = vmatprep.subr.bf16.mxu1 %v8759_v47  ;;  %v407_v45 = vld [vmem:[#allocation5 + $0x978] sm:$0xff]  ;;  %v8804_v47 = vcombine.low %v394_v15, %v398_v35  ;;  %v8813_v50 = vcombine.high %v402_v42, %v406_v43 }
 0x2d6   :  { %v8815_v51 = vcombine.high %v403_v44, %v407_v45  ;;  %v8814_v61 = vcombine.low %v403_v44, %v407_v45  ;;  %v458_v45 = vld [vmem:[#allocation5 + $0xb10] sm:$0xff] }
 0x2d8   :  { %7072 = vmatpush1.bf16.msra.mxu0 %v8756_v54  ;;  %7400 = vmatpush1.bf16.msra.mxu1 %v8758_v56  ;;  %v414_v54 = vld [vmem:[#allocation5 + $0x9b0] sm:$0xff]  ;;  %v411_v56 = vld [vmem:[#allocation5 + $0x998] sm:$0xff] }
 0x2d9   :  { %7073 = vmatprep.subr.bf16.mxu0 %v8765_v58  ;;  %7401 = vmatprep.subr.bf16.mxu1 %v8767_v19  ;;  %v415_v58 = vld [vmem:[#allocation5 + $0x9b8] sm:$0xff]  ;;  %v8812_v19 = vcombine.low %v402_v42, %v406_v43  ;;  %v8821_v62 = vcombine.high %v410_v52, %v414_v54 }
 0x2da   :  { %v8823_v63 = vcombine.high %v411_v56, %v415_v58  ;;  %v8822_v5 = vcombine.low %v411_v56, %v415_v58  ;;  %v466_v58 = vld [vmem:[#allocation5 + $0xb50] sm:$0xff] }
 0x2dc   :  { %7074 = vmatpush1.bf16.msra.mxu0 %v8764_v1  ;;  %7402 = vmatpush1.bf16.msra.mxu1 %v8766_v39  ;;  %v422_v1 = vld [vmem:[#allocation5 + $0x9f0] sm:$0xff]  ;;  %v419_v39 = vld [vmem:[#allocation5 + $0x9d8] sm:$0xff] }
 0x2dd   :  { %7084 = vmatprep.subr.bf16.mxu0 %v8773_v3  ;;  %7412 = vmatprep.subr.bf16.mxu1 %v8775_v4  ;;  %v423_v3 = vld [vmem:[#allocation5 + $0x9f8] sm:$0xff]  ;;  %v8820_v4 = vcombine.low %v410_v52, %v414_v54  ;;  %v8829_v6 = vcombine.high %v418_v12, %v422_v1 }
 0x2de   :  { %v8831_v7 = vcombine.high %v419_v39, %v423_v3  ;;  %v8830_v11 = vcombine.low %v419_v39, %v423_v3  ;;  %v474_v3 = vld [vmem:[#allocation5 + $0xb90] sm:$0xff] }
 0x2df   :  { %7076 = vmatmul.mubr.bf16.vlgmr.msra.gmra.mrb[4].mxu0 %v10188_v25  ;;  %7404 = vmatmul.mubr.bf16.vlgmr.msra.gmra.mrb[4].mxu1 %v10188_v25  ;;  %v8790_v25 = vcombine.low %v379_v14, %v383_v17  ;;  %v434_v17 = vld [vmem:[#allocation5 + $0xa50] sm:$0xff] }
 0x2e0   :  { %7085 = vmatpush1.bf16.msra.mxu0 %v8772_v9  ;;  %7413 = vmatpush1.bf16.msra.mxu1 %v8774_v53  ;;  %v430_v9 = vld [vmem:[#allocation5 + $0xa30] sm:$0xff]  ;;  %v427_v53 = vld [vmem:[#allocation5 + $0xa18] sm:$0xff] }
 0x2e1   :  { %7086 = vmatprep.subr.bf16.mxu0 %v8781_v10  ;;  %7414 = vmatprep.subr.bf16.mxu1 %v8783_v23  ;;  %v431_v10 = vld [vmem:[#allocation5 + $0xa38] sm:$0xff]  ;;  %v8828_v23 = vcombine.low %v418_v12, %v422_v1  ;;  %v8837_v13 = vcombine.high %v426_v8, %v430_v9 }
 0x2e2   :  { %7116 = vmatprep.mubr.bf16.mxu0 %v10192_v32  ;;  %7444 = vmatprep.mubr.bf16.mxu1 %v10192_v32  ;;  %v8807_v32 = vcombine.high %v395_v37, %v399_v57  ;;  %v8839_v14 = vcombine.high %v427_v53, %v431_v10  ;;  %v8838_v27 = vcombine.low %v427_v53, %v431_v10  ;;  %v450_v57 = vld [vmem:[#allocation5 + $0xad0] sm:$0xff] }
 0x2e3   :  { %v482_v10 = vld [vmem:[#allocation5 + $0xbd0] sm:$0xff] }
 0x2e4   :  { %7087 = vmatpush1.bf16.msra.mxu0 %v8780_v18  ;;  %7415 = vmatpush1.bf16.msra.mxu1 %v8782_v21  ;;  %v438_v18 = vld [vmem:[#allocation5 + $0xa70] sm:$0xff]  ;;  %v435_v21 = vld [vmem:[#allocation5 + $0xa58] sm:$0xff] }
 0x2e5   :  { %7088 = vmatprep.subr.bf16.mxu0 %v8789_v22  ;;  %7416 = vmatprep.subr.bf16.mxu1 %v8791_v26  ;;  %v439_v22 = vld [vmem:[#allocation5 + $0xa78] sm:$0xff]  ;;  %v8836_v26 = vcombine.low %v426_v8, %v430_v9  ;;  %v8845_v59 = vcombine.high %v434_v17, %v438_v18 }
 0x2e6   :  { %v8847_v29 = vcombine.high %v435_v21, %v439_v22  ;;  %v8846_v15 = vcombine.low %v435_v21, %v439_v22  ;;  %v490_v22 = vld [vmem:[#allocation5 + $0xc10] sm:$0xff] }
 0x2e8   :  { %7089 = vmatpush1.bf16.msra.mxu0 %v8788_v31  ;;  %7417 = vmatpush1.bf16.msra.mxu1 %v8790_v25  ;;  %v446_v31 = vld [vmem:[#allocation5 + $0xab0] sm:$0xff]  ;;  %v443_v25 = vld [vmem:[#allocation5 + $0xa98] sm:$0xff] }
 0x2e9   :  { %7090 = vmatprep.subr.bf16.mxu0 %v8797_v49  ;;  %7418 = vmatprep.subr.bf16.mxu1 %v8799_v34  ;;  %v447_v49 = vld [vmem:[#allocation5 + $0xab8] sm:$0xff]  ;;  %v8844_v34 = vcombine.low %v434_v17, %v438_v18  ;;  %v8853_v35 = vcombine.high %v442_v30, %v446_v31 }
 0x2ea   :  { %v8855_v37 = vcombine.high %v443_v25, %v447_v49  ;;  %v8854_v42 = vcombine.low %v443_v25, %v447_v49  ;;  %v498_v49 = vld [vmem:[#allocation5 + $0xc50] sm:$0xff] }
 0x2ec   :  { %7091 = vmatpush1.bf16.msra.mxu0 %v8796_v38  ;;  %7419 = vmatpush1.bf16.msra.mxu1 %v8798_v40  ;;  %v454_v38 = vld [vmem:[#allocation5 + $0xaf0] sm:$0xff]  ;;  %v451_v40 = vld [vmem:[#allocation5 + $0xad8] sm:$0xff] }
 0x2ed   :  { %7092 = vmatprep.subr.bf16.mxu0 %v8805_v41  ;;  %7420 = vmatprep.subr.bf16.mxu1 %v8807_v32  ;;  %v455_v41 = vld [vmem:[#allocation5 + $0xaf8] sm:$0xff]  ;;  %v8852_v32 = vcombine.low %v442_v30, %v446_v31  ;;  %v8861_v43 = vcombine.high %v450_v57, %v454_v38 }
 0x2ee   :  { %v8863_v44 = vcombine.high %v451_v40, %v455_v41  ;;  %v8862_v52 = vcombine.low %v451_v40, %v455_v41  ;;  %v506_v41 = vld [vmem:[#allocation5 + $0xc90] sm:$0xff] }
 0x2f0   :  { %7093 = vmatpush1.bf16.msra.mxu0 %v8804_v47  ;;  %7421 = vmatpush1.bf16.msra.mxu1 %v8806_v48  ;;  %v462_v47 = vld [vmem:[#allocation5 + $0xb30] sm:$0xff]  ;;  %v459_v48 = vld [vmem:[#allocation5 + $0xb18] sm:$0xff] }
 0x2f1   :  { %7094 = vmatprep.subr.bf16.mxu0 %v8813_v50  ;;  %7422 = vmatprep.subr.bf16.mxu1 %v8815_v51  ;;  %v463_v50 = vld [vmem:[#allocation5 + $0xb38] sm:$0xff]  ;;  %v8860_v51 = vcombine.low %v450_v57, %v454_v38  ;;  %v8869_v54 = vcombine.high %v458_v45, %v462_v47 }
 0x2f2   :  { %v8871_v56 = vcombine.high %v459_v48, %v463_v50  ;;  %v8870_v12 = vcombine.low %v459_v48, %v463_v50  ;;  %v514_v50 = vld [vmem:[#allocation5 + $0xcd0] sm:$0xff] }
 0x2f4   :  { %7095 = vmatpush1.bf16.msra.mxu0 %v8812_v19  ;;  %7423 = vmatpush1.bf16.msra.mxu1 %v8814_v61  ;;  %v470_v19 = vld [vmem:[#allocation5 + $0xb70] sm:$0xff]  ;;  %v467_v61 = vld [vmem:[#allocation5 + $0xb58] sm:$0xff] }
 0x2f5   :  { %7096 = vmatprep.subr.bf16.mxu0 %v8821_v62  ;;  %7424 = vmatprep.subr.bf16.mxu1 %v8823_v63  ;;  %v471_v62 = vld [vmem:[#allocation5 + $0xb78] sm:$0xff]  ;;  %v8868_v63 = vcombine.low %v458_v45, %v462_v47  ;;  %v8877_v1 = vcombine.high %v466_v58, %v470_v19 }
 0x2f6   :  { %v8879_v39 = vcombine.high %v467_v61, %v471_v62  ;;  %v8878_v8 = vcombine.low %v467_v61, %v471_v62  ;;  %v522_v61 = vld [vmem:[#allocation5 + $0xd10] sm:$0xff] }
 0x2f7   :  { %v526_v62 = vld [vmem:[#allocation5 + $0xd30] sm:$0xff] }
 0x2f8   :  { %7097 = vmatpush1.bf16.msra.mxu0 %v8820_v4  ;;  %7425 = vmatpush1.bf16.msra.mxu1 %v8822_v5  ;;  %v478_v4 = vld [vmem:[#allocation5 + $0xbb0] sm:$0xff]  ;;  %v475_v5 = vld [vmem:[#allocation5 + $0xb98] sm:$0xff] }
 0x2f9   :  { %7098 = vmatprep.subr.bf16.mxu0 %v8829_v6  ;;  %7426 = vmatprep.subr.bf16.mxu1 %v8831_v7  ;;  %v479_v6 = vld [vmem:[#allocation5 + $0xbb8] sm:$0xff]  ;;  %v8876_v7 = vcombine.low %v466_v58, %v470_v19  ;;  %v8885_v9 = vcombine.high %v474_v3, %v478_v4 }
 0x2fa   :  { %v8887_v53 = vcombine.high %v475_v5, %v479_v6  ;;  %v8886_v17 = vcombine.low %v475_v5, %v479_v6  ;;  %v534_v5 = vld [vmem:[#allocation5 + $0xd70] sm:$0xff]  ;;  %v531_v6 = vld [vmem:[#allocation5 + $0xd58] sm:$0xff] }
 0x2fc   :  { %7099 = vmatpush1.bf16.msra.mxu0 %v8828_v23  ;;  %7427 = vmatpush1.bf16.msra.mxu1 %v8830_v11  ;;  %v486_v23 = vld [vmem:[#allocation5 + $0xbf0] sm:$0xff]  ;;  %v483_v11 = vld [vmem:[#allocation5 + $0xbd8] sm:$0xff] }
 0x2fd   :  { %7100 = vmatprep.subr.bf16.mxu0 %v8837_v13  ;;  %7428 = vmatprep.subr.bf16.mxu1 %v8839_v14  ;;  %v487_v13 = vld [vmem:[#allocation5 + $0xbf8] sm:$0xff]  ;;  %v8884_v14 = vcombine.low %v474_v3, %v478_v4  ;;  %v8893_v18 = vcombine.high %v482_v10, %v486_v23  ;;  %v8933_v3 = vcombine.high %v522_v61, %v526_v62  ;;  %v530_v4 = vld [vmem:[#allocation5 + $0xd50] sm:$0xff] }
 0x2fe   :  { %v8895_v21 = vcombine.high %v483_v11, %v487_v13  ;;  %v8894_v30 = vcombine.low %v483_v11, %v487_v13  ;;  %v542_v11 = vld [vmem:[#allocation5 + $0xdb0] sm:$0xff]  ;;  %v539_v13 = vld [vmem:[#allocation5 + $0xd98] sm:$0xff] }
 0x300   :  { %7101 = vmatpush1.bf16.msra.mxu0 %v8836_v26  ;;  %7429 = vmatpush1.bf16.msra.mxu1 %v8838_v27  ;;  %v494_v26 = vld [vmem:[#allocation5 + $0xc30] sm:$0xff]  ;;  %v491_v27 = vld [vmem:[#allocation5 + $0xc18] sm:$0xff] }
 0x301   :  { %7102 = vmatprep.subr.bf16.mxu0 %v8845_v59  ;;  %7430 = vmatprep.subr.bf16.mxu1 %v8847_v29  ;;  %v495_v59 = vld [vmem:[#allocation5 + $0xc38] sm:$0xff]  ;;  %v8892_v29 = vcombine.low %v482_v10, %v486_v23  ;;  %v8901_v31 = vcombine.high %v490_v22, %v494_v26  ;;  %v538_v23 = vld [vmem:[#allocation5 + $0xd90] sm:$0xff] }
 0x302   :  { %v8903_v25 = vcombine.high %v491_v27, %v495_v59  ;;  %v8902_v57 = vcombine.low %v491_v27, %v495_v59  ;;  %v546_v27 = vld [vmem:[#allocation5 + $0xdd0] sm:$0xff] }
 0x303   :  { %v550_v59 = vld [vmem:[#allocation5 + $0xdf0] sm:$0xff] }
 0x304   :  { %7103 = vmatpush1.bf16.msra.mxu0 %v8844_v34  ;;  %7431 = vmatpush1.bf16.msra.mxu1 %v8846_v15  ;;  %v502_v34 = vld [vmem:[#allocation5 + $0xc70] sm:$0xff]  ;;  %v499_v15 = vld [vmem:[#allocation5 + $0xc58] sm:$0xff] }
 0x305   :  { %7104 = vmatprep.subr.bf16.mxu0 %v8853_v35  ;;  %7432 = vmatprep.subr.bf16.mxu1 %v8855_v37  ;;  %v503_v35 = vld [vmem:[#allocation5 + $0xc78] sm:$0xff]  ;;  %v8900_v37 = vcombine.low %v490_v22, %v494_v26  ;;  %v8909_v38 = vcombine.high %v498_v49, %v502_v34 }
 0x306   :  { %v8911_v40 = vcombine.high %v499_v15, %v503_v35  ;;  %v8910_v45 = vcombine.low %v499_v15, %v503_v35  ;;  %v8948_v15 = vcombine.low %v538_v23, %v542_v11 }
 0x308   :  { %7105 = vmatpush1.bf16.msra.mxu0 %v8852_v32  ;;  %7433 = vmatpush1.bf16.msra.mxu1 %v8854_v42  ;;  %v510_v32 = vld [vmem:[#allocation5 + $0xcb0] sm:$0xff]  ;;  %v507_v42 = vld [vmem:[#allocation5 + $0xc98] sm:$0xff] }
 0x309   :  { %7106 = vmatprep.subr.bf16.mxu0 %v8861_v43  ;;  %7434 = vmatprep.subr.bf16.mxu1 %v8863_v44  ;;  %v511_v43 = vld [vmem:[#allocation5 + $0xcb8] sm:$0xff]  ;;  %v8908_v44 = vcombine.low %v498_v49, %v502_v34  ;;  %v8917_v47 = vcombine.high %v506_v41, %v510_v32 }
 0x30a   :  { %v8919_v48 = vcombine.high %v507_v42, %v511_v43 }
 0x30c   :  { %7107 = vmatpush1.bf16.msra.mxu0 %v8860_v51  ;;  %7435 = vmatpush1.bf16.msra.mxu1 %v8862_v52  ;;  %v518_v51 = vld [vmem:[#allocation5 + $0xcf0] sm:$0xff]  ;;  %v515_v52 = vld [vmem:[#allocation5 + $0xcd8] sm:$0xff] }
 0x30d   :  { %7108 = vmatprep.subr.bf16.mxu0 %v8869_v54  ;;  %7436 = vmatprep.subr.bf16.mxu1 %v8871_v56  ;;  %v519_v54 = vld [vmem:[#allocation5 + $0xcf8] sm:$0xff]  ;;  %v8916_v56 = vcombine.low %v506_v41, %v510_v32  ;;  %v8925_v58 = vcombine.high %v514_v50, %v518_v51  ;;  %v554_v32 = vld [vmem:[#allocation5 + $0xe10] sm:$0xff] }
 0x30e   :  { %v8927_v19 = vcombine.high %v515_v52, %v519_v54 }
 0x310   :  { %7109 = vmatpush1.bf16.msra.mxu0 %v8868_v63  ;;  %7437 = vmatpush1.bf16.msra.mxu1 %v8870_v12  ;;  %v523_v63 = vld [vmem:[#allocation5 + $0xd18] sm:$0xff] }
 0x311   :  { %7110 = vmatprep.subr.bf16.mxu0 %v8877_v1  ;;  %7438 = vmatprep.subr.bf16.mxu1 %v8879_v39  ;;  %v527_v12 = vld [vmem:[#allocation5 + $0xd38] sm:$0xff]  ;;  %v8924_v1 = vcombine.low %v514_v50, %v518_v51  ;;  %v8926_v39 = vcombine.low %v515_v52, %v519_v54  ;;  %v562_v51 = vld [vmem:[#allocation5 + $0xe50] sm:$0xff] }
 0x312   :  { %v566_v52 = vld [vmem:[#allocation5 + $0xe70] sm:$0xff]  ;;  %v563_v54 = vld [vmem:[#allocation5 + $0xe58] sm:$0xff] }
 0x314   :  { %7111 = vmatpush1.bf16.msra.mxu0 %v8876_v7  ;;  %7439 = vmatpush1.bf16.msra.mxu1 %v8878_v8  ;;  %v535_v7 = vld [vmem:[#allocation5 + $0xd78] sm:$0xff]  ;;  %v8932_v8 = vcombine.low %v522_v61, %v526_v62  ;;  %v570_v62 = vld [vmem:[#allocation5 + $0xe90] sm:$0xff] }
 0x315   :  { %7112 = vmatprep.subr.bf16.mxu0 %v8885_v9  ;;  %7440 = vmatprep.subr.bf16.mxu1 %v8887_v53  ;;  %v8934_v9 = vcombine.low %v523_v63, %v527_v12  ;;  %v8941_v53 = vcombine.high %v530_v4, %v534_v5  ;;  %v8943_v10 = vcombine.high %v531_v6, %v535_v7 }
 0x318   :  { %7113 = vmatpush1.bf16.msra.mxu0 %v8884_v14  ;;  %7441 = vmatpush1.bf16.msra.mxu1 %v8886_v17  ;;  %v543_v14 = vld [vmem:[#allocation5 + $0xdb8] sm:$0xff]  ;;  %v8940_v17 = vcombine.low %v530_v4, %v534_v5  ;;  %v578_v5 = vld [vmem:[#allocation5 + $0xed0] sm:$0xff] }
 0x319   :  { %7114 = vmatprep.subr.bf16.mxu0 %v8893_v18  ;;  %7442 = vmatprep.subr.bf16.mxu1 %v8895_v21  ;;  %v8942_v18 = vcombine.low %v531_v6, %v535_v7  ;;  %v8949_v21 = vcombine.high %v538_v23, %v542_v11  ;;  %v8951_v26 = vcombine.high %v539_v13, %v543_v14  ;;  %v582_v6 = vld [vmem:[#allocation5 + $0xef0] sm:$0xff]  ;;  %v579_v7 = vld [vmem:[#allocation5 + $0xed8] sm:$0xff] }
 0x31a   :  { %v586_v11 = vld [vmem:[#allocation5 + $0xf10] sm:$0xff] }
 0x31c   :  { %7115 = vmatpush1.bf16.msra.mxu0 %v8892_v29  ;;  %7443 = vmatpush1.bf16.msra.mxu1 %v8894_v30 }
 0x31d   :  { %7125 = vmatprep.subr.bf16.mxu0 %v8901_v31  ;;  %7453 = vmatprep.subr.bf16.mxu1 %v8903_v25  ;;  %v547_v31 = vld [vmem:[#allocation5 + $0xdd8] sm:$0xff] }
 0x31e   :  { %v551_v25 = vld [vmem:[#allocation5 + $0xdf8] sm:$0xff] }
 0x31f   :  { %7117 = vmatmul.mubr.bf16.vlgmr.msra.gmra.mrb[4].mxu0 %v10200_v36  ;;  %7445 = vmatmul.mubr.bf16.vlgmr.msra.gmra.mrb[4].mxu1 %v10200_v36  ;;  %v8918_v36 = vcombine.low %v507_v42, %v511_v43  ;;  %v8959_v41 = vcombine.high %v547_v31, %v551_v25  ;;  %v558_v42 = vld [vmem:[#allocation5 + $0xe30] sm:$0xff]  ;;  %v555_v43 = vld [vmem:[#allocation5 + $0xe18] sm:$0xff] }
 0x320   :  { %7126 = vmatpush1.bf16.msra.mxu0 %v8900_v37  ;;  %7454 = vmatpush1.bf16.msra.mxu1 %v8902_v57  ;;  %v8950_v57 = vcombine.low %v539_v13, %v543_v14  ;;  %v590_v13 = vld [vmem:[#allocation5 + $0xf30] sm:$0xff]  ;;  %v587_v14 = vld [vmem:[#allocation5 + $0xf18] sm:$0xff] }
 0x321   :  { %7127 = vmatprep.subr.bf16.mxu0 %v8909_v38  ;;  %7455 = vmatprep.subr.bf16.mxu1 %v8911_v40  ;;  %v8957_v38 = vcombine.high %v546_v27, %v550_v59 }
 0x322   :  { %7157 = vmatprep.mubr.bf16.mxu0 %v10206_v46  ;;  %7485 = vmatprep.mubr.bf16.mxu1 %v10206_v46  ;;  %v8935_v46 = vcombine.high %v523_v63, %v527_v12  ;;  %v574_v63 = vld [vmem:[#allocation5 + $0xeb0] sm:$0xff]  ;;  %v571_v12 = vld [vmem:[#allocation5 + $0xe98] sm:$0xff] }
 0x324   :  { %7128 = vmatpush1.bf16.msra.mxu0 %v8908_v44  ;;  %7456 = vmatpush1.bf16.msra.mxu1 %v8910_v45  ;;  %v559_v44 = vld [vmem:[#allocation5 + $0xe38] sm:$0xff]  ;;  %v8956_v45 = vcombine.low %v546_v27, %v550_v59  ;;  %v594_v59 = vld [vmem:[#allocation5 + $0xf50] sm:$0xff] }
 0x325   :  { %7129 = vmatprep.subr.bf16.mxu0 %v8917_v47  ;;  %7457 = vmatprep.subr.bf16.mxu1 %v8919_v48  ;;  %v8958_v47 = vcombine.low %v547_v31, %v551_v25  ;;  %v8965_v48 = vcombine.high %v554_v32, %v558_v42  ;;  %v8967_v50 = vcombine.high %v555_v43, %v559_v44  ;;  %v598_v31 = vld [vmem:[#allocation5 + $0xf70] sm:$0xff]  ;;  %v595_v25 = vld [vmem:[#allocation5 + $0xf58] sm:$0xff] }
 0x328   :  { %7130 = vmatpush1.bf16.msra.mxu0 %v8916_v56  ;;  %7458 = vmatpush1.bf16.msra.mxu1 %v8918_v36  ;;  %v567_v56 = vld [vmem:[#allocation5 + $0xe78] sm:$0xff]  ;;  %v8964_v36 = vcombine.low %v554_v32, %v558_v42  ;;  %v9004_v42 = vcombine.low %v594_v59, %v598_v31 }
 0x329   :  { %7131 = vmatprep.subr.bf16.mxu0 %v8925_v58  ;;  %7459 = vmatprep.subr.bf16.mxu1 %v8927_v19  ;;  %v8966_v58 = vcombine.low %v555_v43, %v559_v44  ;;  %v8973_v19 = vcombine.high %v562_v51, %v566_v52  ;;  %v8975_v61 = vcombine.high %v563_v54, %v567_v56  ;;  %v607_v32 = vld [vmem:[#allocation5 + $0xfb8] sm:$0xff] }
 0x32c   :  { %7132 = vmatpush1.bf16.msra.mxu0 %v8924_v1  ;;  %7460 = vmatpush1.bf16.msra.mxu1 %v8926_v39  ;;  %v575_v1 = vld [vmem:[#allocation5 + $0xeb8] sm:$0xff]  ;;  %v8972_v39 = vcombine.low %v562_v51, %v566_v52 }
 0x32d   :  { %7133 = vmatprep.subr.bf16.mxu0 %v8933_v3  ;;  %7461 = vmatprep.subr.bf16.mxu1 %v8935_v46  ;;  %v8974_v3 = vcombine.low %v563_v54, %v567_v56  ;;  %v8981_v46 = vcombine.high %v570_v62, %v574_v63  ;;  %v8983_v4 = vcombine.high %v571_v12, %v575_v1  ;;  %v615_v51 = vld [vmem:[#allocation5 + $0xff8] sm:$0xff] }
 0x330   :  { %7134 = vmatpush1.bf16.msra.mxu0 %v8932_v8  ;;  %7462 = vmatpush1.bf16.msra.mxu1 %v8934_v9  ;;  %v583_v8 = vld [vmem:[#allocation5 + $0xef8] sm:$0xff]  ;;  %v8980_v9 = vcombine.low %v570_v62, %v574_v63 }
 0x331   :  { %7135 = vmatprep.subr.bf16.mxu0 %v8941_v53  ;;  %7463 = vmatprep.subr.bf16.mxu1 %v8943_v10  ;;  %v8982_v53 = vcombine.low %v571_v12, %v575_v1  ;;  %v8989_v10 = vcombine.high %v578_v5, %v582_v6  ;;  %v8991_v23 = vcombine.high %v579_v7, %v583_v8  ;;  %v623_v62 = vld [vmem:[#allocation5 + $0x1038] sm:$0xff] }
 0x332   :  { %v10288_v22 = vpop.f32.mrb[0].mxu0  ;;  %v10290_v29 = vpop.f32.mrb[0].mxu1 }
 0x333   :  { %v10292_v30 = vpop.f32.mrb[1].mxu0  ;;  %v10294_v49 = vpop.f32.mrb[1].mxu1 }
 0x334   :  { %v6671_v34 = vpop.f32.mrb[2].mxu0  ;;  %7136 = vmatpush1.bf16.msra.mxu0 %v8940_v17  ;;  %v6999_v35 = vpop.f32.mrb[2].mxu1  ;;  %7464 = vmatpush1.bf16.msra.mxu1 %v8942_v18  ;;  %v591_v17 = vld [vmem:[#allocation5 + $0xf38] sm:$0xff]  ;;  %v8988_v18 = vcombine.low %v578_v5, %v582_v6 }
 0x335   :  { %v6672_v37 = vpop.f32.mrb[3].mxu0  ;;  %7137 = vmatprep.subr.bf16.mxu0 %v8949_v21  ;;  %v7000_v40 = vpop.f32.mrb[3].mxu1  ;;  %7465 = vmatprep.subr.bf16.mxu1 %v8951_v26  ;;  %v8990_v21 = vcombine.low %v579_v7, %v583_v8  ;;  %v8997_v26 = vcombine.high %v586_v11, %v590_v13  ;;  %v8999_v27 = vcombine.high %v587_v14, %v591_v17  ;;  %v599_v34 = vld [vmem:[#allocation5 + $0xf78] sm:$0xff] }
 0x336   :  { %v8998_v35 = vcombine.low %v587_v14, %v591_v17  ;;  %v9005_v37 = vcombine.high %v594_v59, %v598_v31  ;;  %v606_v40 = vld [vmem:[#allocation5 + $0xfb0] sm:$0xff]  ;;  %v9006_v43 = vcombine.low %v595_v25, %v599_v34  ;;  %v631_v5 = vld [vmem:[#allocation5 + $0x1078] sm:$0xff] }
 0x337   :  { %v647_v59 = vld [vmem:[#allocation5 + $0x10f8] sm:$0xff] }
 0x338   :  { %7138 = vmatpush1.bf16.msra.mxu0 %v8948_v15  ;;  %7466 = vmatpush1.bf16.msra.mxu1 %v8950_v57  ;;  %v8996_v15 = vcombine.low %v586_v11, %v590_v13  ;;  %v9007_v57 = vcombine.high %v595_v25, %v599_v34  ;;  %v639_v11 = vld [vmem:[#allocation5 + $0x10b8] sm:$0xff] }
 0x339   :  { %7139 = vmatprep.subr.bf16.mxu0 %v8957_v38  ;;  %7467 = vmatprep.subr.bf16.mxu1 %v8959_v41  ;;  %v602_v38 = vld [vmem:[#allocation5 + $0xf90] sm:$0xff]  ;;  %v603_v41 = vld [vmem:[#allocation5 + $0xf98] sm:$0xff] }
 0x33a   :  { %v9013_v44 = vcombine.high %v602_v38, %v606_v40  ;;  %v9012_v52 = vcombine.low %v602_v38, %v606_v40  ;;  %v9014_v54 = vcombine.low %v603_v41, %v607_v32 }
 0x33c   :  { %7140 = vmatpush1.bf16.msra.mxu0 %v8956_v45  ;;  %7468 = vmatpush1.bf16.msra.mxu1 %v8958_v47  ;;  %v9015_v45 = vcombine.high %v603_v41, %v607_v32  ;;  %v610_v47 = vld [vmem:[#allocation5 + $0xfd0] sm:$0xff] }
 0x33d   :  { %7141 = vmatprep.subr.bf16.mxu0 %v8965_v48  ;;  %7469 = vmatprep.subr.bf16.mxu1 %v8967_v50  ;;  %v614_v48 = vld [vmem:[#allocation5 + $0xff0] sm:$0xff]  ;;  %v611_v50 = vld [vmem:[#allocation5 + $0xfd8] sm:$0xff] }
 0x33e   :  { %v9021_v56 = vcombine.high %v610_v47, %v614_v48  ;;  %v9020_v63 = vcombine.low %v610_v47, %v614_v48  ;;  %v9022_v12 = vcombine.low %v611_v50, %v615_v51  ;;  %v658_v32 = vld [vmem:[#allocation5 + $0x1150] sm:$0xff] }
 0x340   :  { %7142 = vmatpush1.bf16.msra.mxu0 %v8964_v36  ;;  %7470 = vmatpush1.bf16.msra.mxu1 %v8966_v58  ;;  %v9023_v36 = vcombine.high %v611_v50, %v615_v51  ;;  %v618_v58 = vld [vmem:[#allocation5 + $0x1010] sm:$0xff] }
 0x341   :  { %7143 = vmatprep.subr.bf16.mxu0 %v8973_v19  ;;  %7471 = vmatprep.subr.bf16.mxu1 %v8975_v61  ;;  %v622_v19 = vld [vmem:[#allocation5 + $0x1030] sm:$0xff]  ;;  %v619_v61 = vld [vmem:[#allocation5 + $0x1018] sm:$0xff] }
 0x342   :  { %v9029_v1 = vcombine.high %v618_v58, %v622_v19  ;;  %v9028_v6 = vcombine.low %v618_v58, %v622_v19  ;;  %v9030_v7 = vcombine.low %v619_v61, %v623_v62  ;;  %v666_v51 = vld [vmem:[#allocation5 + $0x1190] sm:$0xff] }
 0x344   :  { %7144 = vmatpush1.bf16.msra.mxu0 %v8972_v39  ;;  %7472 = vmatpush1.bf16.msra.mxu1 %v8974_v3  ;;  %v9031_v39 = vcombine.high %v619_v61, %v623_v62  ;;  %v626_v3 = vld [vmem:[#allocation5 + $0x1050] sm:$0xff] }
 0x345   :  { %7145 = vmatprep.subr.bf16.mxu0 %v8981_v46  ;;  %7473 = vmatprep.subr.bf16.mxu1 %v8983_v4  ;;  %v630_v46 = vld [vmem:[#allocation5 + $0x1070] sm:$0xff]  ;;  %v627_v4 = vld [vmem:[#allocation5 + $0x1058] sm:$0xff] }
 0x346   :  { %v9037_v8 = vcombine.high %v626_v3, %v630_v46  ;;  %v9036_v13 = vcombine.low %v626_v3, %v630_v46  ;;  %v9038_v14 = vcombine.low %v627_v4, %v631_v5  ;;  %v674_v62 = vld [vmem:[#allocation5 + $0x11d0] sm:$0xff] }
 0x348   :  { %7146 = vmatpush1.bf16.msra.mxu0 %v8980_v9  ;;  %7474 = vmatpush1.bf16.msra.mxu1 %v8982_v53  ;;  %v9039_v9 = vcombine.high %v627_v4, %v631_v5  ;;  %v634_v53 = vld [vmem:[#allocation5 + $0x1090] sm:$0xff] }
 0x349   :  { %7147 = vmatprep.subr.bf16.mxu0 %v8989_v10  ;;  %7475 = vmatprep.subr.bf16.mxu1 %v8991_v23  ;;  %v638_v10 = vld [vmem:[#allocation5 + $0x10b0] sm:$0xff]  ;;  %v635_v23 = vld [vmem:[#allocation5 + $0x1098] sm:$0xff] }
 0x34a   :  { %v9045_v17 = vcombine.high %v634_v53, %v638_v10  ;;  %v9044_v31 = vcombine.low %v634_v53, %v638_v10  ;;  %v682_v5 = vld [vmem:[#allocation5 + $0x1210] sm:$0xff] }
 0x34c   :  { %7148 = vmatpush1.bf16.msra.mxu0 %v8988_v18  ;;  %7476 = vmatpush1.bf16.msra.mxu1 %v8990_v21  ;;  %v9047_v18 = vcombine.high %v635_v23, %v639_v11  ;;  %v642_v21 = vld [vmem:[#allocation5 + $0x10d0] sm:$0xff] }
 0x34d   :  { %7149 = vmatprep.subr.bf16.mxu0 %v8997_v26  ;;  %7477 = vmatprep.subr.bf16.mxu1 %v8999_v27  ;;  %v646_v26 = vld [vmem:[#allocation5 + $0x10f0] sm:$0xff]  ;;  %v643_v27 = vld [vmem:[#allocation5 + $0x10d8] sm:$0xff] }
 0x34e   :  { %v9053_v25 = vcombine.high %v642_v21, %v646_v26  ;;  %v9055_v34 = vcombine.high %v643_v27, %v647_v59  ;;  %v9052_v38 = vcombine.low %v642_v21, %v646_v26  ;;  %v9054_v40 = vcombine.low %v643_v27, %v647_v59  ;;  %v698_v59 = vld [vmem:[#allocation5 + $0x1290] sm:$0xff] }
 0x350   :  { %7150 = vmatpush1.bf16.msra.mxu0 %v8996_v15  ;;  %7478 = vmatpush1.bf16.msra.mxu1 %v8998_v35  ;;  %v650_v15 = vld [vmem:[#allocation5 + $0x1110] sm:$0xff] }
 0x351   :  { %7151 = vmatprep.subr.bf16.mxu0 %v9005_v37  ;;  %7479 = vmatprep.subr.bf16.mxu1 %v9007_v57  ;;  %v654_v35 = vld [vmem:[#allocation5 + $0x1130] sm:$0xff]  ;;  %v651_v37 = vld [vmem:[#allocation5 + $0x1118] sm:$0xff] }
 0x352   :  { %v655_v57 = vld [vmem:[#allocation5 + $0x1138] sm:$0xff]  ;;  %v9061_v41 = vcombine.high %v650_v15, %v654_v35 }
 0x353   :  { %v9062_v47 = vcombine.low %v651_v37, %v655_v57 }
 0x354   :  { %7152 = vmatpush1.bf16.msra.mxu0 %v9004_v42  ;;  %7480 = vmatpush1.bf16.msra.mxu1 %v9006_v43  ;;  %v662_v42 = vld [vmem:[#allocation5 + $0x1170] sm:$0xff]  ;;  %v659_v43 = vld [vmem:[#allocation5 + $0x1158] sm:$0xff] }
 0x355   :  { %7153 = vmatprep.subr.bf16.mxu0 %v9013_v44  ;;  %7481 = vmatprep.subr.bf16.mxu1 %v9015_v45  ;;  %v663_v44 = vld [vmem:[#allocation5 + $0x1178] sm:$0xff]  ;;  %v9060_v45 = vcombine.low %v650_v15, %v654_v35  ;;  %v9069_v48 = vcombine.high %v658_v32, %v662_v42 }
 0x356   :  { %v9071_v50 = vcombine.high %v659_v43, %v663_v44  ;;  %v9070_v58 = vcombine.low %v659_v43, %v663_v44  ;;  %v714_v44 = vld [vmem:[#allocation5 + $0x1310] sm:$0xff] }
 0x358   :  { %7154 = vmatpush1.bf16.msra.mxu0 %v9012_v52  ;;  %7482 = vmatpush1.bf16.msra.mxu1 %v9014_v54  ;;  %v670_v52 = vld [vmem:[#allocation5 + $0x11b0] sm:$0xff]  ;;  %v667_v54 = vld [vmem:[#allocation5 + $0x1198] sm:$0xff] }
 0x359   :  { %7155 = vmatprep.subr.bf16.mxu0 %v9021_v56  ;;  %7483 = vmatprep.subr.bf16.mxu1 %v9023_v36  ;;  %v671_v56 = vld [vmem:[#allocation5 + $0x11b8] sm:$0xff]  ;;  %v9068_v36 = vcombine.low %v658_v32, %v662_v42  ;;  %v9077_v19 = vcombine.high %v666_v51, %v670_v52 }
 0x35a   :  { %v9079_v61 = vcombine.high %v667_v54, %v671_v56  ;;  %v9078_v3 = vcombine.low %v667_v54, %v671_v56  ;;  %v722_v56 = vld [vmem:[#allocation5 + $0x1350] sm:$0xff] }
 0x35c   :  { %7156 = vmatpush1.bf16.msra.mxu0 %v9020_v63  ;;  %7484 = vmatpush1.bf16.msra.mxu1 %v9022_v12  ;;  %v678_v63 = vld [vmem:[#allocation5 + $0x11f0] sm:$0xff]  ;;  %v675_v12 = vld [vmem:[#allocation5 + $0x11d8] sm:$0xff] }
 0x35d   :  { %7166 = vmatprep.subr.bf16.mxu0 %v9029_v1  ;;  %7494 = vmatprep.subr.bf16.mxu1 %v9031_v39  ;;  %v679_v1 = vld [vmem:[#allocation5 + $0x11f8] sm:$0xff]  ;;  %v9076_v39 = vcombine.low %v666_v51, %v670_v52  ;;  %v9085_v46 = vcombine.high %v674_v62, %v678_v63 }
 0x35e   :  { %v9087_v4 = vcombine.high %v675_v12, %v679_v1  ;;  %v9086_v53 = vcombine.low %v675_v12, %v679_v1  ;;  %v730_v1 = vld [vmem:[#allocation5 + $0x1390] sm:$0xff] }
 0x35f   :  { %7158 = vmatmul.mubr.bf16.vlgmr.msra.gmra.mrb[4].mxu0 %v10214_v55  ;;  %7486 = vmatmul.mubr.bf16.vlgmr.msra.gmra.mrb[4].mxu1 %v10214_v55  ;;  %v9046_v55 = vcombine.low %v635_v23, %v639_v11  ;;  %v690_v11 = vld [vmem:[#allocation5 + $0x1250] sm:$0xff] }
 0x360   :  { %7167 = vmatpush1.bf16.msra.mxu0 %v9028_v6  ;;  %7495 = vmatpush1.bf16.msra.mxu1 %v9030_v7  ;;  %v686_v6 = vld [vmem:[#allocation5 + $0x1230] sm:$0xff]  ;;  %v683_v7 = vld [vmem:[#allocation5 + $0x1218] sm:$0xff] }
 0x361   :  { %7168 = vmatprep.subr.bf16.mxu0 %v9037_v8  ;;  %7496 = vmatprep.subr.bf16.mxu1 %v9039_v9  ;;  %v687_v8 = vld [vmem:[#allocation5 + $0x1238] sm:$0xff]  ;;  %v9084_v9 = vcombine.low %v674_v62, %v678_v63  ;;  %v9093_v10 = vcombine.high %v682_v5, %v686_v6 }
 0x362   :  { %7198 = vmatprep.mubr.bf16.mxu0 %v10220_v2  ;;  %7526 = vmatprep.mubr.bf16.mxu1 %v10220_v2  ;;  %v9063_v2 = vcombine.high %v651_v37, %v655_v57  ;;  %v9095_v23 = vcombine.high %v683_v7, %v687_v8  ;;  %v9094_v21 = vcombine.low %v683_v7, %v687_v8  ;;  %v706_v57 = vld [vmem:[#allocation5 + $0x12d0] sm:$0xff] }
 0x363   :  { %v738_v8 = vld [vmem:[#allocation5 + $0x13d0] sm:$0xff] }
 0x364   :  { %7169 = vmatpush1.bf16.msra.mxu0 %v9036_v13  ;;  %7497 = vmatpush1.bf16.msra.mxu1 %v9038_v14  ;;  %v694_v13 = vld [vmem:[#allocation5 + $0x1270] sm:$0xff]  ;;  %v691_v14 = vld [vmem:[#allocation5 + $0x1258] sm:$0xff] }
 0x365   :  { %7170 = vmatprep.subr.bf16.mxu0 %v9045_v17  ;;  %7498 = vmatprep.subr.bf16.mxu1 %v9047_v18  ;;  %v695_v17 = vld [vmem:[#allocation5 + $0x1278] sm:$0xff]  ;;  %v9092_v18 = vcombine.low %v682_v5, %v686_v6  ;;  %v9101_v26 = vcombine.high %v690_v11, %v694_v13 }
 0x366   :  { %v9103_v27 = vcombine.high %v691_v14, %v695_v17  ;;  %v9102_v15 = vcombine.low %v691_v14, %v695_v17  ;;  %v746_v17 = vld [vmem:[#allocation5 + $0x1410] sm:$0xff] }
 0x368   :  { %7171 = vmatpush1.bf16.msra.mxu0 %v9044_v31  ;;  %7499 = vmatpush1.bf16.msra.mxu1 %v9046_v55  ;;  %v702_v31 = vld [vmem:[#allocation5 + $0x12b0] sm:$0xff]  ;;  %v699_v55 = vld [vmem:[#allocation5 + $0x1298] sm:$0xff] }
 0x369   :  { %7172 = vmatprep.subr.bf16.mxu0 %v9053_v25  ;;  %7500 = vmatprep.subr.bf16.mxu1 %v9055_v34  ;;  %v703_v25 = vld [vmem:[#allocation5 + $0x12b8] sm:$0xff]  ;;  %v9100_v34 = vcombine.low %v690_v11, %v694_v13  ;;  %v9109_v35 = vcombine.high %v698_v59, %v702_v31 }
 0x36a   :  { %v9111_v37 = vcombine.high %v699_v55, %v703_v25  ;;  %v9110_v32 = vcombine.low %v699_v55, %v703_v25  ;;  %v754_v25 = vld [vmem:[#allocation5 + $0x1450] sm:$0xff] }
 0x36c   :  { %7173 = vmatpush1.bf16.msra.mxu0 %v9052_v38  ;;  %7501 = vmatpush1.bf16.msra.mxu1 %v9054_v40  ;;  %v710_v38 = vld [vmem:[#allocation5 + $0x12f0] sm:$0xff]  ;;  %v707_v40 = vld [vmem:[#allocation5 + $0x12d8] sm:$0xff] }
 0x36d   :  { %7174 = vmatprep.subr.bf16.mxu0 %v9061_v41  ;;  %7502 = vmatprep.subr.bf16.mxu1 %v9063_v2  ;;  %v711_v41 = vld [vmem:[#allocation5 + $0x12f8] sm:$0xff]  ;;  %v9108_v2 = vcombine.low %v698_v59, %v702_v31  ;;  %v9117_v42 = vcombine.high %v706_v57, %v710_v38 }
 0x36e   :  { %v9119_v43 = vcombine.high %v707_v40, %v711_v41  ;;  %v9118_v51 = vcombine.low %v707_v40, %v711_v41  ;;  %v762_v41 = vld [vmem:[#allocation5 + $0x1490] sm:$0xff] }
 0x370   :  { %7175 = vmatpush1.bf16.msra.mxu0 %v9060_v45  ;;  %7503 = vmatpush1.bf16.msra.mxu1 %v9062_v47  ;;  %v718_v45 = vld [vmem:[#allocation5 + $0x1330] sm:$0xff]  ;;  %v715_v47 = vld [vmem:[#allocation5 + $0x1318] sm:$0xff] }
 0x371   :  { %7176 = vmatprep.subr.bf16.mxu0 %v9069_v48  ;;  %7504 = vmatprep.subr.bf16.mxu1 %v9071_v50  ;;  %v719_v48 = vld [vmem:[#allocation5 + $0x1338] sm:$0xff]  ;;  %v9116_v50 = vcombine.low %v706_v57, %v710_v38  ;;  %v9125_v52 = vcombine.high %v714_v44, %v718_v45 }
 0x372   :  { %v9127_v54 = vcombine.high %v715_v47, %v719_v48  ;;  %v9126_v62 = vcombine.low %v715_v47, %v719_v48  ;;  %v770_v48 = vld [vmem:[#allocation5 + $0x14d0] sm:$0xff] }
 0x374   :  { %7177 = vmatpush1.bf16.msra.mxu0 %v9068_v36  ;;  %7505 = vmatpush1.bf16.msra.mxu1 %v9070_v58  ;;  %v726_v36 = vld [vmem:[#allocation5 + $0x1370] sm:$0xff]  ;;  %v723_v58 = vld [vmem:[#allocation5 + $0x1358] sm:$0xff] }
 0x375   :  { %7178 = vmatprep.subr.bf16.mxu0 %v9077_v19  ;;  %7506 = vmatprep.subr.bf16.mxu1 %v9079_v61  ;;  %v727_v19 = vld [vmem:[#allocation5 + $0x1378] sm:$0xff]  ;;  %v9124_v61 = vcombine.low %v714_v44, %v718_v45  ;;  %v9133_v63 = vcombine.high %v722_v56, %v726_v36 }
 0x376   :  { %v9135_v12 = vcombine.high %v723_v58, %v727_v19  ;;  %v9134_v5 = vcombine.low %v723_v58, %v727_v19  ;;  %v778_v58 = vld [vmem:[#allocation5 + $0x1510] sm:$0xff] }
 0x377   :  { %v782_v19 = vld [vmem:[#allocation5 + $0x1530] sm:$0xff] }
 0x378   :  { %7179 = vmatpush1.bf16.msra.mxu0 %v9076_v39  ;;  %7507 = vmatpush1.bf16.msra.mxu1 %v9078_v3  ;;  %v734_v39 = vld [vmem:[#allocation5 + $0x13b0] sm:$0xff]  ;;  %v731_v3 = vld [vmem:[#allocation5 + $0x1398] sm:$0xff] }
 0x379   :  { %7180 = vmatprep.subr.bf16.mxu0 %v9085_v46  ;;  %7508 = vmatprep.subr.bf16.mxu1 %v9087_v4  ;;  %v735_v46 = vld [vmem:[#allocation5 + $0x13b8] sm:$0xff]  ;;  %v9132_v4 = vcombine.low %v722_v56, %v726_v36  ;;  %v9141_v6 = vcombine.high %v730_v1, %v734_v39 }
 0x37a   :  { %v9143_v7 = vcombine.high %v731_v3, %v735_v46  ;;  %v9142_v11 = vcombine.low %v731_v3, %v735_v46  ;;  %v790_v3 = vld [vmem:[#allocation5 + $0x1570] sm:$0xff]  ;;  %v787_v46 = vld [vmem:[#allocation5 + $0x1558] sm:$0xff] }
 0x37c   :  { %7181 = vmatpush1.bf16.msra.mxu0 %v9084_v9  ;;  %7509 = vmatpush1.bf16.msra.mxu1 %v9086_v53  ;;  %v742_v9 = vld [vmem:[#allocation5 + $0x13f0] sm:$0xff]  ;;  %v739_v53 = vld [vmem:[#allocation5 + $0x13d8] sm:$0xff] }
 0x37d   :  { %7182 = vmatprep.subr.bf16.mxu0 %v9093_v10  ;;  %7510 = vmatprep.subr.bf16.mxu1 %v9095_v23  ;;  %v743_v10 = vld [vmem:[#allocation5 + $0x13f8] sm:$0xff]  ;;  %v9140_v23 = vcombine.low %v730_v1, %v734_v39  ;;  %v9149_v13 = vcombine.high %v738_v8, %v742_v9  ;;  %v9189_v1 = vcombine.high %v778_v58, %v782_v19  ;;  %v786_v39 = vld [vmem:[#allocation5 + $0x1550] sm:$0xff] }
 0x37e   :  { %v9151_v14 = vcombine.high %v739_v53, %v743_v10  ;;  %v9150_v59 = vcombine.low %v739_v53, %v743_v10  ;;  %v798_v53 = vld [vmem:[#allocation5 + $0x15b0] sm:$0xff]  ;;  %v795_v10 = vld [vmem:[#allocation5 + $0x1598] sm:$0xff] }
 0x380   :  { %7183 = vmatpush1.bf16.msra.mxu0 %v9092_v18  ;;  %7511 = vmatpush1.bf16.msra.mxu1 %v9094_v21  ;;  %v750_v18 = vld [vmem:[#allocation5 + $0x1430] sm:$0xff]  ;;  %v747_v21 = vld [vmem:[#allocation5 + $0x1418] sm:$0xff] }
 0x381   :  { %7184 = vmatprep.subr.bf16.mxu0 %v9101_v26  ;;  %7512 = vmatprep.subr.bf16.mxu1 %v9103_v27  ;;  %v751_v26 = vld [vmem:[#allocation5 + $0x1438] sm:$0xff]  ;;  %v9148_v27 = vcombine.low %v738_v8, %v742_v9  ;;  %v9157_v31 = vcombine.high %v746_v17, %v750_v18  ;;  %v794_v9 = vld [vmem:[#allocation5 + $0x1590] sm:$0xff] }
 0x382   :  { %v9159_v55 = vcombine.high %v747_v21, %v751_v26  ;;  %v9158_v57 = vcombine.low %v747_v21, %v751_v26  ;;  %v806_v21 = vld [vmem:[#allocation5 + $0x15f0] sm:$0xff]  ;;  %v803_v26 = vld [vmem:[#allocation5 + $0x15d8] sm:$0xff] }
 0x384   :  { %7185 = vmatpush1.bf16.msra.mxu0 %v9100_v34  ;;  %7513 = vmatpush1.bf16.msra.mxu1 %v9102_v15  ;;  %v758_v34 = vld [vmem:[#allocation5 + $0x1470] sm:$0xff]  ;;  %v755_v15 = vld [vmem:[#allocation5 + $0x1458] sm:$0xff] }
 0x385   :  { %7186 = vmatprep.subr.bf16.mxu0 %v9109_v35  ;;  %7514 = vmatprep.subr.bf16.mxu1 %v9111_v37  ;;  %v759_v35 = vld [vmem:[#allocation5 + $0x1478] sm:$0xff]  ;;  %v9156_v37 = vcombine.low %v746_v17, %v750_v18  ;;  %v9165_v38 = vcombine.high %v754_v25, %v758_v34  ;;  %v802_v18 = vld [vmem:[#allocation5 + $0x15d0] sm:$0xff] }
 0x386   :  { %v9167_v40 = vcombine.high %v755_v15, %v759_v35  ;;  %v9166_v44 = vcombine.low %v755_v15, %v759_v35  ;;  %v814_v15 = vld [vmem:[#allocation5 + $0x1630] sm:$0xff]  ;;  %v811_v35 = vld [vmem:[#allocation5 + $0x1618] sm:$0xff] }
 0x388   :  { %7187 = vmatpush1.bf16.msra.mxu0 %v9108_v2  ;;  %7515 = vmatpush1.bf16.msra.mxu1 %v9110_v32  ;;  %v766_v2 = vld [vmem:[#allocation5 + $0x14b0] sm:$0xff]  ;;  %v763_v32 = vld [vmem:[#allocation5 + $0x1498] sm:$0xff] }
 0x389   :  { %7188 = vmatprep.subr.bf16.mxu0 %v9117_v42  ;;  %7516 = vmatprep.subr.bf16.mxu1 %v9119_v43  ;;  %v767_v42 = vld [vmem:[#allocation5 + $0x14b8] sm:$0xff]  ;;  %v9164_v43 = vcombine.low %v754_v25, %v758_v34  ;;  %v9173_v45 = vcombine.high %v762_v41, %v766_v2  ;;  %v810_v34 = vld [vmem:[#allocation5 + $0x1610] sm:$0xff] }
 0x38a   :  { %v9175_v47 = vcombine.high %v763_v32, %v767_v42 }
 0x38c   :  { %7189 = vmatpush1.bf16.msra.mxu0 %v9116_v50  ;;  %7517 = vmatpush1.bf16.msra.mxu1 %v9118_v51  ;;  %v774_v50 = vld [vmem:[#allocation5 + $0x14f0] sm:$0xff]  ;;  %v771_v51 = vld [vmem:[#allocation5 + $0x14d8] sm:$0xff] }
 0x38d   :  { %7190 = vmatprep.subr.bf16.mxu0 %v9125_v52  ;;  %7518 = vmatprep.subr.bf16.mxu1 %v9127_v54  ;;  %v775_v52 = vld [vmem:[#allocation5 + $0x14f8] sm:$0xff]  ;;  %v9172_v54 = vcombine.low %v762_v41, %v766_v2  ;;  %v9181_v56 = vcombine.high %v770_v48, %v774_v50  ;;  %v818_v2 = vld [vmem:[#allocation5 + $0x1650] sm:$0xff] }
 0x38e   :  { %v9183_v36 = vcombine.high %v771_v51, %v775_v52 }
 0x390   :  { %7191 = vmatpush1.bf16.msra.mxu0 %v9124_v61  ;;  %7519 = vmatpush1.bf16.msra.mxu1 %v9126_v62  ;;  %v779_v61 = vld [vmem:[#allocation5 + $0x1518] sm:$0xff] }
 0x391   :  { %7192 = vmatprep.subr.bf16.mxu0 %v9133_v63  ;;  %7520 = vmatprep.subr.bf16.mxu1 %v9135_v12  ;;  %v783_v62 = vld [vmem:[#allocation5 + $0x1538] sm:$0xff]  ;;  %v9180_v63 = vcombine.low %v770_v48, %v774_v50  ;;  %v9182_v12 = vcombine.low %v771_v51, %v775_v52  ;;  %v826_v50 = vld [vmem:[#allocation5 + $0x1690] sm:$0xff] }
 0x392   :  { %v830_v51 = vld [vmem:[#allocation5 + $0x16b0] sm:$0xff]  ;;  %v827_v52 = vld [vmem:[#allocation5 + $0x1698] sm:$0xff] }
 0x394   :  { %7193 = vmatpush1.bf16.msra.mxu0 %v9132_v4  ;;  %7521 = vmatpush1.bf16.msra.mxu1 %v9134_v5  ;;  %v791_v4 = vld [vmem:[#allocation5 + $0x1578] sm:$0xff]  ;;  %v9188_v5 = vcombine.low %v778_v58, %v782_v19  ;;  %v834_v19 = vld [vmem:[#allocation5 + $0x16d0] sm:$0xff] }
 0x395   :  { %7194 = vmatprep.subr.bf16.mxu0 %v9141_v6  ;;  %7522 = vmatprep.subr.bf16.mxu1 %v9143_v7  ;;  %v9190_v6 = vcombine.low %v779_v61, %v783_v62  ;;  %v9197_v7 = vcombine.high %v786_v39, %v790_v3  ;;  %v9199_v8 = vcombine.high %v787_v46, %v791_v4 }
 0x398   :  { %7195 = vmatpush1.bf16.msra.mxu0 %v9140_v23  ;;  %7523 = vmatpush1.bf16.msra.mxu1 %v9142_v11  ;;  %v799_v23 = vld [vmem:[#allocation5 + $0x15b8] sm:$0xff]  ;;  %v9196_v11 = vcombine.low %v786_v39, %v790_v3  ;;  %v842_v3 = vld [vmem:[#allocation5 + $0x1710] sm:$0xff] }
 0x399   :  { %7196 = vmatprep.subr.bf16.mxu0 %v9149_v13  ;;  %7524 = vmatprep.subr.bf16.mxu1 %v9151_v14  ;;  %v9198_v13 = vcombine.low %v787_v46, %v791_v4  ;;  %v9205_v14 = vcombine.high %v794_v9, %v798_v53  ;;  %v9207_v17 = vcombine.high %v795_v10, %v799_v23  ;;  %v846_v46 = vld [vmem:[#allocation5 + $0x1730] sm:$0xff]  ;;  %v843_v4 = vld [vmem:[#allocation5 + $0x1718] sm:$0xff] }
 0x39c   :  { %7197 = vmatpush1.bf16.msra.mxu0 %v9148_v27  ;;  %7525 = vmatpush1.bf16.msra.mxu1 %v9150_v59  ;;  %v807_v27 = vld [vmem:[#allocation5 + $0x15f8] sm:$0xff]  ;;  %v9204_v59 = vcombine.low %v794_v9, %v798_v53  ;;  %v850_v53 = vld [vmem:[#allocation5 + $0x1750] sm:$0xff] }
 0x39d   :  { %7207 = vmatprep.subr.bf16.mxu0 %v9157_v31  ;;  %7535 = vmatprep.subr.bf16.mxu1 %v9159_v55  ;;  %v9206_v31 = vcombine.low %v795_v10, %v799_v23  ;;  %v9213_v55 = vcombine.high %v802_v18, %v806_v21  ;;  %v9215_v25 = vcombine.high %v803_v26, %v807_v27  ;;  %v854_v10 = vld [vmem:[#allocation5 + $0x1770] sm:$0xff]  ;;  %v851_v23 = vld [vmem:[#allocation5 + $0x1758] sm:$0xff] }
 0x39f   :  { %7199 = vmatmul.mubr.bf16.vlgmr.msra.gmra.mrb[4].mxu0 %v10228_v16  ;;  %7527 = vmatmul.mubr.bf16.vlgmr.msra.gmra.mrb[4].mxu1 %v10228_v16  ;;  %v9174_v16 = vcombine.low %v763_v32, %v767_v42  ;;  %v822_v32 = vld [vmem:[#allocation5 + $0x1670] sm:$0xff]  ;;  %v819_v42 = vld [vmem:[#allocation5 + $0x1658] sm:$0xff] }
 0x3a0   :  { %7208 = vmatpush1.bf16.msra.mxu0 %v9156_v37  ;;  %7536 = vmatpush1.bf16.msra.mxu1 %v9158_v57  ;;  %v815_v37 = vld [vmem:[#allocation5 + $0x1638] sm:$0xff]  ;;  %v9212_v57 = vcombine.low %v802_v18, %v806_v21  ;;  %v858_v21 = vld [vmem:[#allocation5 + $0x1790] sm:$0xff] }
 0x3a1   :  { %7209 = vmatprep.subr.bf16.mxu0 %v9165_v38  ;;  %7537 = vmatprep.subr.bf16.mxu1 %v9167_v40  ;;  %v9214_v38 = vcombine.low %v803_v26, %v807_v27  ;;  %v9221_v40 = vcombine.high %v810_v34, %v814_v15  ;;  %v9223_v41 = vcombine.high %v811_v35, %v815_v37  ;;  %v862_v26 = vld [vmem:[#allocation5 + $0x17b0] sm:$0xff]  ;;  %v859_v27 = vld [vmem:[#allocation5 + $0x1798] sm:$0xff] }
 0x3a2   :  { %7239 = vmatprep.mubr.bf16.mxu0 %v10234_v28  ;;  %7567 = vmatprep.mubr.bf16.mxu1 %v10234_v28  ;;  %v9191_v28 = vcombine.high %v779_v61, %v783_v62  ;;  %v838_v61 = vld [vmem:[#allocation5 + $0x16f0] sm:$0xff]  ;;  %v835_v62 = vld [vmem:[#allocation5 + $0x16d8] sm:$0xff] }
 0x3a4   :  { %7210 = vmatpush1.bf16.msra.mxu0 %v9164_v43  ;;  %7538 = vmatpush1.bf16.msra.mxu1 %v9166_v44  ;;  %v823_v43 = vld [vmem:[#allocation5 + $0x1678] sm:$0xff]  ;;  %v9220_v44 = vcombine.low %v810_v34, %v814_v15  ;;  %v866_v15 = vld [vmem:[#allocation5 + $0x17d0] sm:$0xff] }
 0x3a5   :  { %7211 = vmatprep.subr.bf16.mxu0 %v9173_v45  ;;  %7539 = vmatprep.subr.bf16.mxu1 %v9175_v47  ;;  %v9222_v45 = vcombine.low %v811_v35, %v815_v37  ;;  %v9229_v47 = vcombine.high %v818_v2, %v822_v32  ;;  %v9231_v48 = vcombine.high %v819_v42, %v823_v43  ;;  %v870_v35 = vld [vmem:[#allocation5 + $0x17f0] sm:$0xff]  ;;  %v867_v37 = vld [vmem:[#allocation5 + $0x17d8] sm:$0xff] }
 0x3a8   :  { %7212 = vmatpush1.bf16.msra.mxu0 %v9172_v54  ;;  %7540 = vmatpush1.bf16.msra.mxu1 %v9174_v16  ;;  %v831_v54 = vld [vmem:[#allocation5 + $0x16b8] sm:$0xff]  ;;  %v9228_v16 = vcombine.low %v818_v2, %v822_v32  ;;  %v874_v32 = vld [vmem:[#allocation5 + $0x1810] sm:$0xff] }
 0x3a9   :  { %7213 = vmatprep.subr.bf16.mxu0 %v9181_v56  ;;  %7541 = vmatprep.subr.bf16.mxu1 %v9183_v36  ;;  %v9230_v56 = vcombine.low %v819_v42, %v823_v43  ;;  %v9237_v36 = vcombine.high %v826_v50, %v830_v51  ;;  %v9239_v58 = vcombine.high %v827_v52, %v831_v54  ;;  %v878_v42 = vld [vmem:[#allocation5 + $0x1830] sm:$0xff]  ;;  %v875_v43 = vld [vmem:[#allocation5 + $0x1818] sm:$0xff] }
 0x3ac   :  { %7214 = vmatpush1.bf16.msra.mxu0 %v9180_v63  ;;  %7542 = vmatpush1.bf16.msra.mxu1 %v9182_v12  ;;  %v839_v63 = vld [vmem:[#allocation5 + $0x16f8] sm:$0xff]  ;;  %v9236_v12 = vcombine.low %v826_v50, %v830_v51  ;;  %v882_v51 = vld [vmem:[#allocation5 + $0x1850] sm:$0xff] }
 0x3ad   :  { %7215 = vmatprep.subr.bf16.mxu0 %v9189_v1  ;;  %7543 = vmatprep.subr.bf16.mxu1 %v9191_v28  ;;  %v9238_v1 = vcombine.low %v827_v52, %v831_v54  ;;  %v9245_v28 = vcombine.high %v834_v19, %v838_v61  ;;  %v9247_v39 = vcombine.high %v835_v62, %v839_v63  ;;  %v886_v52 = vld [vmem:[#allocation5 + $0x1870] sm:$0xff]  ;;  %v883_v54 = vld [vmem:[#allocation5 + $0x1858] sm:$0xff] }
 0x3b0   :  { %7216 = vmatpush1.bf16.msra.mxu0 %v9188_v5  ;;  %7544 = vmatpush1.bf16.msra.mxu1 %v9190_v6  ;;  %v847_v5 = vld [vmem:[#allocation5 + $0x1738] sm:$0xff]  ;;  %v9244_v6 = vcombine.low %v834_v19, %v838_v61  ;;  %v890_v61 = vld [vmem:[#allocation5 + $0x1890] sm:$0xff] }
 0x3b1   :  { %7217 = vmatprep.subr.bf16.mxu0 %v9197_v7  ;;  %7545 = vmatprep.subr.bf16.mxu1 %v9199_v8  ;;  %v9246_v7 = vcombine.low %v835_v62, %v839_v63  ;;  %v9253_v8 = vcombine.high %v842_v3, %v846_v46  ;;  %v9255_v9 = vcombine.high %v843_v4, %v847_v5  ;;  %v894_v62 = vld [vmem:[#allocation5 + $0x18b0] sm:$0xff]  ;;  %v891_v63 = vld [vmem:[#allocation5 + $0x1898] sm:$0xff] }
 0x3b4   :  { %7218 = vmatpush1.bf16.msra.mxu0 %v9196_v11  ;;  %7546 = vmatpush1.bf16.msra.mxu1 %v9198_v13  ;;  %v855_v11 = vld [vmem:[#allocation5 + $0x1778] sm:$0xff]  ;;  %v9252_v13 = vcombine.low %v842_v3, %v846_v46  ;;  %v898_v46 = vld [vmem:[#allocation5 + $0x18d0] sm:$0xff] }
 0x3b5   :  { %7219 = vmatprep.subr.bf16.mxu0 %v9205_v14  ;;  %7547 = vmatprep.subr.bf16.mxu1 %v9207_v17  ;;  %v9254_v14 = vcombine.low %v843_v4, %v847_v5  ;;  %v9261_v17 = vcombine.high %v850_v53, %v854_v10  ;;  %v9263_v18 = vcombine.high %v851_v23, %v855_v11  ;;  %v902_v4 = vld [vmem:[#allocation5 + $0x18f0] sm:$0xff]  ;;  %v899_v5 = vld [vmem:[#allocation5 + $0x18d8] sm:$0xff] }
 0x3b8   :  { %7220 = vmatpush1.bf16.msra.mxu0 %v9204_v59  ;;  %7548 = vmatpush1.bf16.msra.mxu1 %v9206_v31  ;;  %v863_v59 = vld [vmem:[#allocation5 + $0x17b8] sm:$0xff]  ;;  %v9260_v31 = vcombine.low %v850_v53, %v854_v10  ;;  %v906_v53 = vld [vmem:[#allocation5 + $0x1910] sm:$0xff] }
 0x3b9   :  { %7221 = vmatprep.subr.bf16.mxu0 %v9213_v55  ;;  %7549 = vmatprep.subr.bf16.mxu1 %v9215_v25  ;;  %v9262_v55 = vcombine.low %v851_v23, %v855_v11  ;;  %v9269_v25 = vcombine.high %v858_v21, %v862_v26  ;;  %v9271_v34 = vcombine.high %v859_v27, %v863_v59  ;;  %v910_v10 = vld [vmem:[#allocation5 + $0x1930] sm:$0xff]  ;;  %v907_v23 = vld [vmem:[#allocation5 + $0x1918] sm:$0xff] }
 0x3ba   :  { %v911_v11 = vld [vmem:[#allocation5 + $0x1938] sm:$0xff] }
 0x3bc   :  { %7222 = vmatpush1.bf16.msra.mxu0 %v9212_v57  ;;  %7550 = vmatpush1.bf16.msra.mxu1 %v9214_v38  ;;  %v871_v57 = vld [vmem:[#allocation5 + $0x17f8] sm:$0xff]  ;;  %v9268_v38 = vcombine.low %v858_v21, %v862_v26  ;;  %v918_v21 = vld [vmem:[#allocation5 + $0x1970] sm:$0xff] }
 0x3bd   :  { %7223 = vmatprep.subr.bf16.mxu0 %v9221_v40  ;;  %7551 = vmatprep.subr.bf16.mxu1 %v9223_v41  ;;  %v9270_v40 = vcombine.low %v859_v27, %v863_v59  ;;  %v9277_v41 = vcombine.high %v866_v15, %v870_v35  ;;  %v9279_v2 = vcombine.high %v867_v37, %v871_v57  ;;  %v915_v26 = vld [vmem:[#allocation5 + $0x1958] sm:$0xff] }
 0x3be   :  { %v919_v27 = vld [vmem:[#allocation5 + $0x1978] sm:$0xff]  ;;  %v9316_v59 = vcombine.low %v906_v53, %v910_v10 }
 0x3c0   :  { %7224 = vmatpush1.bf16.msra.mxu0 %v9220_v44  ;;  %7552 = vmatpush1.bf16.msra.mxu1 %v9222_v45  ;;  %v879_v44 = vld [vmem:[#allocation5 + $0x1838] sm:$0xff]  ;;  %v9276_v45 = vcombine.low %v866_v15, %v870_v35  ;;  %v926_v15 = vld [vmem:[#allocation5 + $0x19b0] sm:$0xff] }
 0x3c1   :  { %7225 = vmatprep.subr.bf16.mxu0 %v9229_v47  ;;  %7553 = vmatprep.subr.bf16.mxu1 %v9231_v48  ;;  %v9278_v47 = vcombine.low %v867_v37, %v871_v57  ;;  %v9285_v48 = vcombine.high %v874_v32, %v878_v42  ;;  %v9287_v50 = vcombine.high %v875_v43, %v879_v44  ;;  %v923_v35 = vld [vmem:[#allocation5 + $0x1998] sm:$0xff] }
 0x3c2   :  { %v927_v37 = vld [vmem:[#allocation5 + $0x19b8] sm:$0xff] }
 0x3c4   :  { %7226 = vmatpush1.bf16.msra.mxu0 %v9228_v16  ;;  %7554 = vmatpush1.bf16.msra.mxu1 %v9230_v56  ;;  %v887_v16 = vld [vmem:[#allocation5 + $0x1878] sm:$0xff]  ;;  %v9284_v56 = vcombine.low %v874_v32, %v878_v42  ;;  %v934_v32 = vld [vmem:[#allocation5 + $0x19f0] sm:$0xff] }
 0x3c5   :  { %7227 = vmatprep.subr.bf16.mxu0 %v9237_v36  ;;  %7555 = vmatprep.subr.bf16.mxu1 %v9239_v58  ;;  %v9286_v36 = vcombine.low %v875_v43, %v879_v44  ;;  %v9293_v58 = vcombine.high %v882_v51, %v886_v52  ;;  %v9295_v19 = vcombine.high %v883_v54, %v887_v16  ;;  %v931_v42 = vld [vmem:[#allocation5 + $0x19d8] sm:$0xff] }
 0x3c6   :  { %v935_v43 = vld [vmem:[#allocation5 + $0x19f8] sm:$0xff] }
 0x3c8   :  { %7228 = vmatpush1.bf16.msra.mxu0 %v9236_v12  ;;  %7556 = vmatpush1.bf16.msra.mxu1 %v9238_v1  ;;  %v895_v12 = vld [vmem:[#allocation5 + $0x18b8] sm:$0xff]  ;;  %v9292_v1 = vcombine.low %v882_v51, %v886_v52  ;;  %v942_v51 = vld [vmem:[#allocation5 + $0x1a30] sm:$0xff] }
 0x3c9   :  { %7229 = vmatprep.subr.bf16.mxu0 %v9245_v28  ;;  %7557 = vmatprep.subr.bf16.mxu1 %v9247_v39  ;;  %v9294_v28 = vcombine.low %v883_v54, %v887_v16  ;;  %v9301_v39 = vcombine.high %v890_v61, %v894_v62  ;;  %v9303_v3 = vcombine.high %v891_v63, %v895_v12  ;;  %v939_v52 = vld [vmem:[#allocation5 + $0x1a18] sm:$0xff] }
 0x3ca   :  { %v943_v54 = vld [vmem:[#allocation5 + $0x1a38] sm:$0xff] }
 0x3cc   :  { %7230 = vmatpush1.bf16.msra.mxu0 %v9244_v6  ;;  %7558 = vmatpush1.bf16.msra.mxu1 %v9246_v7  ;;  %v903_v6 = vld [vmem:[#allocation5 + $0x18f8] sm:$0xff]  ;;  %v9300_v7 = vcombine.low %v890_v61, %v894_v62  ;;  %v950_v61 = vld [vmem:[#allocation5 + $0x1a70] sm:$0xff] }
 0x3cd   :  { %7231 = vmatprep.subr.bf16.mxu0 %v9253_v8  ;;  %7559 = vmatprep.subr.bf16.mxu1 %v9255_v9  ;;  %v9309_v8 = vcombine.high %v898_v46, %v902_v4  ;;  %v9311_v9 = vcombine.high %v899_v5, %v903_v6  ;;  %v947_v62 = vld [vmem:[#allocation5 + $0x1a58] sm:$0xff] }
 0x3d0   :  { %7232 = vmatpush1.bf16.msra.mxu0 %v9252_v13  ;;  %7560 = vmatpush1.bf16.msra.mxu1 %v9254_v14  ;;  %v9308_v13 = vcombine.low %v898_v46, %v902_v4  ;;  %v9310_v14 = vcombine.low %v899_v5, %v903_v6  ;;  %v958_v46 = vld [vmem:[#allocation5 + $0x1ab0] sm:$0xff]  ;;  %v955_v4 = vld [vmem:[#allocation5 + $0x1a98] sm:$0xff] }
 0x3d1   :  { %7233 = vmatprep.subr.bf16.mxu0 %v9261_v17  ;;  %7561 = vmatprep.subr.bf16.mxu1 %v9263_v18  ;;  %v9317_v17 = vcombine.high %v906_v53, %v910_v10  ;;  %v914_v18 = vld [vmem:[#allocation5 + $0x1950] sm:$0xff]  ;;  %v959_v5 = vld [vmem:[#allocation5 + $0x1ab8] sm:$0xff] }
 0x3d2   :  { %v9324_v57 = vcombine.low %v914_v18, %v918_v21  ;;  %v966_v53 = vld [vmem:[#allocation5 + $0x1af0] sm:$0xff]  ;;  %v963_v10 = vld [vmem:[#allocation5 + $0x1ad8] sm:$0xff] }
 0x3d4   :  { %7234 = vmatpush1.bf16.msra.mxu0 %v9260_v31  ;;  %7562 = vmatpush1.bf16.msra.mxu1 %v9262_v55  ;;  %v9318_v31 = vcombine.low %v907_v23, %v911_v11  ;;  %v9325_v55 = vcombine.high %v914_v18, %v918_v21  ;;  %v974_v18 = vld [vmem:[#allocation5 + $0x1b30] sm:$0xff]  ;;  %v971_v21 = vld [vmem:[#allocation5 + $0x1b18] sm:$0xff] }
 0x3d5   :  { %7235 = vmatprep.subr.bf16.mxu0 %v9269_v25  ;;  %7563 = vmatprep.subr.bf16.mxu1 %v9271_v34  ;;  %v9327_v25 = vcombine.high %v915_v26, %v919_v27  ;;  %v922_v34 = vld [vmem:[#allocation5 + $0x1990] sm:$0xff] }
 0x3d6   :  { %v9332_v44 = vcombine.low %v922_v34, %v926_v15 }
 0x3d8   :  { %7236 = vmatpush1.bf16.msra.mxu0 %v9268_v38  ;;  %7564 = vmatpush1.bf16.msra.mxu1 %v9270_v40  ;;  %v9326_v38 = vcombine.low %v915_v26, %v919_v27  ;;  %v9333_v40 = vcombine.high %v922_v34, %v926_v15  ;;  %v975_v26 = vld [vmem:[#allocation5 + $0x1b38] sm:$0xff]  ;;  %v982_v34 = vld [vmem:[#allocation5 + $0x1b70] sm:$0xff] }
 0x3d9   :  { %7237 = vmatprep.subr.bf16.mxu0 %v9277_v41  ;;  %7565 = vmatprep.subr.bf16.mxu1 %v9279_v2  ;;  %v9335_v41 = vcombine.high %v923_v35, %v927_v37  ;;  %v930_v2 = vld [vmem:[#allocation5 + $0x19d0] sm:$0xff]  ;;  %v979_v15 = vld [vmem:[#allocation5 + $0x1b58] sm:$0xff] }
 0x3da   :  { %v9340_v16 = vcombine.low %v930_v2, %v934_v32 }
 0x3dc   :  { %7238 = vmatpush1.bf16.msra.mxu0 %v9276_v45  ;;  %7566 = vmatpush1.bf16.msra.mxu1 %v9278_v47  ;;  %v9334_v45 = vcombine.low %v923_v35, %v927_v37  ;;  %v9341_v47 = vcombine.high %v930_v2, %v934_v32  ;;  %v983_v35 = vld [vmem:[#allocation5 + $0x1b78] sm:$0xff]  ;;  %v990_v2 = vld [vmem:[#allocation5 + $0x1bb0] sm:$0xff] }
 0x3dd   :  { %7248 = vmatprep.subr.bf16.mxu0 %v9285_v48  ;;  %7576 = vmatprep.subr.bf16.mxu1 %v9287_v50  ;;  %v9343_v48 = vcombine.high %v931_v42, %v935_v43  ;;  %v938_v50 = vld [vmem:[#allocation5 + $0x1a10] sm:$0xff]  ;;  %v987_v32 = vld [vmem:[#allocation5 + $0x1b98] sm:$0xff] }
 0x3df   :  { %7240 = vmatmul.mubr.bf16.vlgmr.msra.gmra.mrb[4].mxu0 %v10242_v24  ;;  %7568 = vmatmul.mubr.bf16.vlgmr.msra.gmra.mrb[4].mxu1 %v10242_v24  ;;  %v9302_v24 = vcombine.low %v891_v63, %v895_v12  ;;  %v951_v63 = vld [vmem:[#allocation5 + $0x1a78] sm:$0xff]  ;;  %v9348_v12 = vcombine.low %v938_v50, %v942_v51 }
 0x3e0   :  { %7249 = vmatpush1.bf16.msra.mxu0 %v9284_v56  ;;  %7577 = vmatpush1.bf16.msra.mxu1 %v9286_v36  ;;  %v9342_v56 = vcombine.low %v931_v42, %v935_v43  ;;  %v9349_v36 = vcombine.high %v938_v50, %v942_v51  ;;  %v991_v42 = vld [vmem:[#allocation5 + $0x1bb8] sm:$0xff]  ;;  %v998_v50 = vld [vmem:[#allocation5 + $0x1bf0] sm:$0xff] }
 0x3e1   :  { %7250 = vmatprep.subr.bf16.mxu0 %v9293_v58  ;;  %7578 = vmatprep.subr.bf16.mxu1 %v9295_v19  ;;  %v9351_v58 = vcombine.high %v939_v52, %v943_v54  ;;  %v946_v19 = vld [vmem:[#allocation5 + $0x1a50] sm:$0xff]  ;;  %v995_v51 = vld [vmem:[#allocation5 + $0x1bd8] sm:$0xff] }
 0x3e2   :  { %7280 = vmatprep.mubr.bf16.mxu0 %v10248_v60  ;;  %7608 = vmatprep.mubr.bf16.mxu1 %v10248_v60  ;;  %v9319_v60 = vcombine.high %v907_v23, %v911_v11  ;;  %v9356_v6 = vcombine.low %v946_v19, %v950_v61  ;;  %v967_v23 = vld [vmem:[#allocation5 + $0x1af8] sm:$0xff] }
 0x3e4   :  { %7251 = vmatpush1.bf16.msra.mxu0 %v9292_v1  ;;  %7579 = vmatpush1.bf16.msra.mxu1 %v9294_v28  ;;  %v9350_v1 = vcombine.low %v939_v52, %v943_v54  ;;  %v9357_v28 = vcombine.high %v946_v19, %v950_v61  ;;  %v999_v52 = vld [vmem:[#allocation5 + $0x1bf8] sm:$0xff]  ;;  %v1006_v19 = vld [vmem:[#allocation5 + $0x1c30] sm:$0xff] }
 0x3e5   :  { %7252 = vmatprep.subr.bf16.mxu0 %v9301_v39  ;;  %7580 = vmatprep.subr.bf16.mxu1 %v9303_v3  ;;  %v9359_v39 = vcombine.high %v947_v62, %v951_v63  ;;  %v954_v3 = vld [vmem:[#allocation5 + $0x1a90] sm:$0xff]  ;;  %v1003_v61 = vld [vmem:[#allocation5 + $0x1c18] sm:$0xff] }
 0x3e6   :  { %v9364_v11 = vcombine.low %v954_v3, %v958_v46 }
 0x3e8   :  { %7253 = vmatpush1.bf16.msra.mxu0 %v9300_v7  ;;  %7581 = vmatpush1.bf16.msra.mxu1 %v9302_v24  ;;  %v9358_v7 = vcombine.low %v947_v62, %v951_v63  ;;  %v9365_v24 = vcombine.high %v954_v3, %v958_v46  ;;  %v1007_v62 = vld [vmem:[#allocation5 + $0x1c38] sm:$0xff]  ;;  %v1014_v3 = vld [vmem:[#allocation5 + $0x1c70] sm:$0xff] }
 0x3e9   :  { %7254 = vmatprep.subr.bf16.mxu0 %v9309_v8  ;;  %7582 = vmatprep.subr.bf16.mxu1 %v9311_v9  ;;  %v9367_v8 = vcombine.high %v955_v4, %v959_v5  ;;  %v962_v9 = vld [vmem:[#allocation5 + $0x1ad0] sm:$0xff]  ;;  %v1011_v46 = vld [vmem:[#allocation5 + $0x1c58] sm:$0xff] }
 0x3ea   :  { %v9372_v27 = vcombine.low %v962_v9, %v966_v53 }
 0x3ec   :  { %7255 = vmatpush1.bf16.msra.mxu0 %v9308_v13  ;;  %7583 = vmatpush1.bf16.msra.mxu1 %v9310_v14  ;;  %v9366_v13 = vcombine.low %v955_v4, %v959_v5  ;;  %v9373_v14 = vcombine.high %v962_v9, %v966_v53  ;;  %v1015_v4 = vld [vmem:[#allocation5 + $0x1c78] sm:$0xff]  ;;  %v1022_v9 = vld [vmem:[#allocation5 + $0x1cb0] sm:$0xff] }
 0x3ed   :  { %7256 = vmatprep.subr.bf16.mxu0 %v9317_v17  ;;  %7584 = vmatprep.subr.bf16.mxu1 %v9319_v60  ;;  %v9375_v17 = vcombine.high %v963_v10, %v967_v23  ;;  %v970_v60 = vld [vmem:[#allocation5 + $0x1b10] sm:$0xff]  ;;  %v1019_v53 = vld [vmem:[#allocation5 + $0x1c98] sm:$0xff] }
 0x3ee   :  { %v9380_v37 = vcombine.low %v970_v60, %v974_v18 }
 0x3f0   :  { %7257 = vmatpush1.bf16.msra.mxu0 %v9316_v59  ;;  %7585 = vmatpush1.bf16.msra.mxu1 %v9318_v31  ;;  %v9374_v59 = vcombine.low %v963_v10, %v967_v23  ;;  %v9381_v31 = vcombine.high %v970_v60, %v974_v18  ;;  %v1023_v10 = vld [vmem:[#allocation5 + $0x1cb8] sm:$0xff]  ;;  %v1030_v60 = vld [vmem:[#allocation5 + $0x1cf0] sm:$0xff] }
 0x3f1   :  { %7258 = vmatprep.subr.bf16.mxu0 %v9325_v55  ;;  %7586 = vmatprep.subr.bf16.mxu1 %v9327_v25  ;;  %v9383_v55 = vcombine.high %v971_v21, %v975_v26  ;;  %v978_v25 = vld [vmem:[#allocation5 + $0x1b50] sm:$0xff]  ;;  %v1027_v18 = vld [vmem:[#allocation5 + $0x1cd8] sm:$0xff] }
 0x3f2   :  { %v9388_v43 = vcombine.low %v978_v25, %v982_v34 }
 0x3f4   :  { %7259 = vmatpush1.bf16.msra.mxu0 %v9324_v57  ;;  %7587 = vmatpush1.bf16.msra.mxu1 %v9326_v38  ;;  %v9382_v57 = vcombine.low %v971_v21, %v975_v26  ;;  %v9389_v38 = vcombine.high %v978_v25, %v982_v34  ;;  %v1031_v21 = vld [vmem:[#allocation5 + $0x1cf8] sm:$0xff] }
 0x3f5   :  { %7260 = vmatprep.subr.bf16.mxu0 %v9333_v40  ;;  %7588 = vmatprep.subr.bf16.mxu1 %v9335_v41  ;;  %v9391_v40 = vcombine.high %v979_v15, %v983_v35  ;;  %v986_v41 = vld [vmem:[#allocation5 + $0x1b90] sm:$0xff]  ;;  %v1035_v25 = vld [vmem:[#allocation5 + $0x1d18] sm:$0xff] }
 0x3f6   :  { %v9396_v54 = vcombine.low %v986_v41, %v990_v2  ;;  %v1039_v34 = vld [vmem:[#allocation5 + $0x1d38] sm:$0xff] }
 0x3f8   :  { %7261 = vmatpush1.bf16.msra.mxu0 %v9332_v44  ;;  %7589 = vmatpush1.bf16.msra.mxu1 %v9334_v45  ;;  %v9390_v44 = vcombine.low %v979_v15, %v983_v35  ;;  %v9397_v45 = vcombine.high %v986_v41, %v990_v2  ;;  %v9438_v35 = vcombine.low %v1027_v18, %v1031_v21  ;;  %v1043_v41 = vld [vmem:[#allocation5 + $0x1d58] sm:$0xff] }
 0x3f9   :  { %7262 = vmatprep.subr.bf16.mxu0 %v9341_v47  ;;  %7590 = vmatprep.subr.bf16.mxu1 %v9343_v48  ;;  %v9399_v47 = vcombine.high %v987_v32, %v991_v42  ;;  %v994_v48 = vld [vmem:[#allocation5 + $0x1bd0] sm:$0xff]  ;;  %v1047_v2 = vld [vmem:[#allocation5 + $0x1d78] sm:$0xff] }
 0x3fa   :  { %v9404_v63 = vcombine.low %v994_v48, %v998_v50 }
 0x3fc   :  { %7263 = vmatpush1.bf16.msra.mxu0 %v9340_v16  ;;  %7591 = vmatpush1.bf16.msra.mxu1 %v9342_v56  ;;  %v9398_v16 = vcombine.low %v987_v32, %v991_v42  ;;  %v9405_v56 = vcombine.high %v994_v48, %v998_v50  ;;  %v9446_v42 = vcombine.low %v1035_v25, %v1039_v34  ;;  %v1051_v50 = vld [vmem:[#allocation5 + $0x1d98] sm:$0xff] }
 0x3fd   :  { %7264 = vmatprep.subr.bf16.mxu0 %v9349_v36  ;;  %7592 = vmatprep.subr.bf16.mxu1 %v9351_v58  ;;  %v9407_v36 = vcombine.high %v995_v51, %v999_v52  ;;  %v1002_v58 = vld [vmem:[#allocation5 + $0x1c10] sm:$0xff] }
 0x3fe   :  { %v9412_v5 = vcombine.low %v1002_v58, %v1006_v19 }
 0x400   :  { %7265 = vmatpush1.bf16.msra.mxu0 %v9348_v12  ;;  %7593 = vmatpush1.bf16.msra.mxu1 %v9350_v1  ;;  %v9406_v12 = vcombine.low %v995_v51, %v999_v52  ;;  %v9413_v1 = vcombine.high %v1002_v58, %v1006_v19  ;;  %v1055_v51 = vld [vmem:[#allocation5 + $0x1db8] sm:$0xff]  ;;  %v1062_v58 = vld [vmem:[#allocation5 + $0x1df0] sm:$0xff] }
 0x401   :  { %7266 = vmatprep.subr.bf16.mxu0 %v9357_v28  ;;  %7594 = vmatprep.subr.bf16.mxu1 %v9359_v39  ;;  %v9415_v28 = vcombine.high %v1003_v61, %v1007_v62  ;;  %v1010_v39 = vld [vmem:[#allocation5 + $0x1c50] sm:$0xff] }
 0x402   :  { %v9420_v23 = vcombine.low %v1010_v39, %v1014_v3 }
 0x404   :  { %7267 = vmatpush1.bf16.msra.mxu0 %v9356_v6  ;;  %7595 = vmatpush1.bf16.msra.mxu1 %v9358_v7  ;;  %v9414_v6 = vcombine.low %v1003_v61, %v1007_v62  ;;  %v9421_v7 = vcombine.high %v1010_v39, %v1014_v3  ;;  %v1059_v61 = vld [vmem:[#allocation5 + $0x1dd8] sm:$0xff] }
 0x405   :  { %7268 = vmatprep.subr.bf16.mxu0 %v9365_v24  ;;  %7596 = vmatprep.subr.bf16.mxu1 %v9367_v8  ;;  %v9423_v24 = vcombine.high %v1011_v46, %v1015_v4  ;;  %v1018_v8 = vld [vmem:[#allocation5 + $0x1c90] sm:$0xff]  ;;  %v1063_v62 = vld [vmem:[#allocation5 + $0x1df8] sm:$0xff] }
 0x406   :  { %v9428_v26 = vcombine.low %v1018_v8, %v1022_v9  ;;  %v9471_v3 = vcombine.high %v1059_v61, %v1063_v62 }
 0x408   :  { %7269 = vmatpush1.bf16.msra.mxu0 %v9364_v11  ;;  %7597 = vmatpush1.bf16.msra.mxu1 %v9366_v13  ;;  %v9422_v11 = vcombine.low %v1011_v46, %v1015_v4  ;;  %v9429_v13 = vcombine.high %v1018_v8, %v1022_v9  ;;  %v1066_v46 = vld [vmem:[#allocation5 + $0x1e10] sm:$0xff]  ;;  %v9470_v9 = vcombine.low %v1059_v61, %v1063_v62 }
 0x409   :  { %7270 = vmatprep.subr.bf16.mxu0 %v9373_v14  ;;  %7598 = vmatprep.subr.bf16.mxu1 %v9375_v17  ;;  %v9431_v14 = vcombine.high %v1019_v53, %v1023_v10  ;;  %v1026_v17 = vld [vmem:[#allocation5 + $0x1cd0] sm:$0xff] }
 0x40a   :  { %v9436_v15 = vcombine.low %v1026_v17, %v1030_v60  ;;  %v1070_v4 = vld [vmem:[#allocation5 + $0x1e30] sm:$0xff] }
 0x40b   :  { %v1106_v61 = vld [vmem:[#allocation5 + $0x1f50] sm:$0xff] }
 0x40c   :  { %7271 = vmatpush1.bf16.msra.mxu0 %v9372_v27  ;;  %7599 = vmatpush1.bf16.msra.mxu1 %v9374_v59  ;;  %v9437_v27 = vcombine.high %v1026_v17, %v1030_v60  ;;  %v9439_v59 = vcombine.high %v1027_v18, %v1031_v21  ;;  %v1079_v17 = vld [vmem:[#allocation5 + $0x1e78] sm:$0xff]  ;;  %v9476_v18 = vcombine.low %v1066_v46, %v1070_v4  ;;  %v1110_v62 = vld [vmem:[#allocation5 + $0x1f70] sm:$0xff] }
 0x40d   :  { %7272 = vmatprep.subr.bf16.mxu0 %v9381_v31  ;;  %7600 = vmatprep.subr.bf16.mxu1 %v9383_v55  ;;  %v1034_v31 = vld [vmem:[#allocation5 + $0x1d10] sm:$0xff] }
 0x40e   :  { %v1038_v55 = vld [vmem:[#allocation5 + $0x1d30] sm:$0xff] }
 0x40f   :  { %v9444_v32 = vcombine.low %v1034_v31, %v1038_v55 }
 0x410   :  { %7273 = vmatpush1.bf16.msra.mxu0 %v9380_v37  ;;  %7601 = vmatpush1.bf16.msra.mxu1 %v9382_v57  ;;  %v9445_v37 = vcombine.high %v1034_v31, %v1038_v55  ;;  %v1042_v57 = vld [vmem:[#allocation5 + $0x1d50] sm:$0xff]  ;;  %v1083_v55 = vld [vmem:[#allocation5 + $0x1e98] sm:$0xff] }
 0x411   :  { %7274 = vmatprep.subr.bf16.mxu0 %v9389_v38  ;;  %7602 = vmatprep.subr.bf16.mxu1 %v9391_v40  ;;  %v1046_v38 = vld [vmem:[#allocation5 + $0x1d70] sm:$0xff]  ;;  %v1130_v40 = vlaneseq }
 0x412   :  { %v9452_v52 = vcombine.low %v1042_v57, %v1046_v38 }
 0x413   :  { %v10312_v48 = vshrl.u32 %v1130_v40, 7  ;;  %v1095_v40 = vld [vmem:[#allocation5 + $0x1ef8] sm:$0xff] }
 0x414   :  { %7275 = vmatpush1.bf16.msra.mxu0 %v9388_v43  ;;  %7603 = vmatpush1.bf16.msra.mxu1 %v9390_v44  ;;  %v9453_v43 = vcombine.high %v1042_v57, %v1046_v38  ;;  %v9455_v44 = vcombine.high %v1043_v41, %v1047_v2  ;;  %v1091_v38 = vld [vmem:[#allocation5 + $0x1ed8] sm:$0xff] }
 0x415   :  { %7276 = vmatprep.subr.bf16.mxu0 %v9397_v45  ;;  %7604 = vmatprep.subr.bf16.mxu1 %v9399_v47  ;;  %v1050_v45 = vld [vmem:[#allocation5 + $0x1d90] sm:$0xff]  ;;  %v1136_v19 = vsub.s32 1, %v10312_v48 }
 0x416   :  { %v1054_v47 = vld [vmem:[#allocation5 + $0x1db0] sm:$0xff] }
 0x418   :  { %7277 = vmatpush1.bf16.msra.mxu0 %v9396_v54  ;;  %7605 = vmatpush1.bf16.msra.mxu1 %v9398_v16  ;;  %v9454_v54 = vcombine.low %v1043_v41, %v1047_v2  ;;  %v9461_v16 = vcombine.high %v1050_v45, %v1054_v47 }
 0x419   :  { %7278 = vmatprep.subr.bf16.mxu0 %v9405_v56  ;;  %7606 = vmatprep.subr.bf16.mxu1 %v9407_v36  ;;  %v9463_v56 = vcombine.high %v1051_v50, %v1055_v51  ;;  %v1058_v36 = vld [vmem:[#allocation5 + $0x1dd0] sm:$0xff] }
 0x41a   :  { %v9469_v39 = vcombine.high %v1058_v36, %v1062_v58  ;;  %v9468_v8 = vcombine.low %v1058_v36, %v1062_v58 }
 0x41c   :  { %7279 = vmatpush1.bf16.msra.mxu0 %v9404_v63  ;;  %7607 = vmatpush1.bf16.msra.mxu1 %v9406_v12  ;;  %v10315_v63 = vld [vmem:[#allocation7] sm:$0xff]  ;;  %v1144_v12 = vsub.s32 3, %v10312_v48 }
 0x41d   :  { %7289 = vmatprep.subr.bf16.mxu0 %v9413_v1  ;;  %7617 = vmatprep.subr.bf16.mxu1 %v9415_v28  ;;  %v9460_v1 = vcombine.low %v1050_v45, %v1054_v47  ;;  %v9462_v28 = vcombine.low %v1051_v50, %v1055_v51  ;;  %v1102_v45 = vld [vmem:[#allocation5 + $0x1f30] sm:$0xff]  ;;  %v1099_v50 = vld [vmem:[#allocation5 + $0x1f18] sm:$0xff] }
 0x41e   :  { %v1103_v51 = vld [vmem:[#allocation5 + $0x1f38] sm:$0xff] }
 0x41f   :  { %7281 = vmatmul.mubr.bf16.vlgmr.msra.gmra.mrb[4].mxu0 %v10256_v20  ;;  %7609 = vmatmul.mubr.bf16.vlgmr.msra.gmra.mrb[4].mxu1 %v10256_v20  ;;  %v9430_v20 = vcombine.low %v1019_v53, %v1023_v10  ;;  %v9477_v53 = vcombine.high %v1066_v46, %v1070_v4  ;;  %v9510_v4 = vcombine.low %v1099_v50, %v1103_v51 }
 0x420   :  { %7290 = vmatpush1.bf16.msra.mxu0 %v9412_v5  ;;  %7618 = vmatpush1.bf16.msra.mxu1 %v9414_v6  ;;  %v1137_v5 = vrot.slane %v10315_v63, %v1136_v19  ;;  %v1067_v6 = vld [vmem:[#allocation5 + $0x1e18] sm:$0xff]  ;;  %v9511_v19 = vcombine.high %v1099_v50, %v1103_v51  ;;  %v9862_v50 = vld [vmem:[#allocation8 + $0x48] sm:$0xff]  }
 0x421   :  { %7291 = vmatprep.subr.bf16.mxu0 %v9421_v7  ;;  %7619 = vmatprep.subr.bf16.mxu1 %v9423_v24  ;;  %v1071_v7 = vld [vmem:[#allocation5 + $0x1e38] sm:$0xff]  ;;  %v1145_v24 = vrot.slane %v10315_v63, %v1144_v12  ;;  %v9863_v51 = vld [vmem:[#allocation8 + $0xc8] sm:$0xff]  }
 0x422   :  { %7321 = vmatprep.mubr.bf16.mxu0 %v10262_v33  ;;  %7649 = vmatprep.mubr.bf16.mxu1 %v10262_v33  ;;  %v9447_v33 = vcombine.high %v1035_v25, %v1039_v34  ;;  %v9479_v10 = vcombine.high %v1067_v6, %v1071_v7  ;;  %v9478_v21 = vcombine.low %v1067_v6, %v1071_v7  ;;  %v1087_v25 = vld [vmem:[#allocation5 + $0x1eb8] sm:$0xff] }
 0x423   :  { %v9715_v60 = vadd.f32 %v10294_v49, %v1145_v24  ;;  %v1114_v24 = vld [vmem:[#allocation5 + $0x1f90] sm:$0xff] }
 0x424   :  { %7292 = vmatpush1.bf16.msra.mxu0 %v9420_v23  ;;  %7620 = vmatpush1.bf16.msra.mxu1 %v9422_v11  ;;  %v1074_v23 = vld [vmem:[#allocation5 + $0x1e50] sm:$0xff] }
 0x425   :  { %7293 = vmatprep.subr.bf16.mxu0 %v9429_v13  ;;  %7621 = vmatprep.subr.bf16.mxu1 %v9431_v14  ;;  %v1078_v11 = vld [vmem:[#allocation5 + $0x1e70] sm:$0xff]  ;;  %v9713_v13 = vadd.f32 %v10292_v30, %v1137_v5  ;;  %v1075_v14 = vld [vmem:[#allocation5 + $0x1e58] sm:$0xff]  ;;  %v10324_v34 = vmax.f32 %v9715_v60, 0.0  ;;  %v9517_v5 = vcombine.high %v1106_v61, %v1110_v62  ;;  %v1140_v60 = vsub.s32 2, %v10312_v48 }
 0x426   :  { %v9484_v30 = vcombine.low %v1074_v23, %v1078_v11  ;;  %v9486_v49 = vcombine.low %v1075_v14, %v1079_v17 }
 0x427   :  { %v10322_v31 = vmax.f32 %v9713_v13, 0.0  ;;  %v7677_v41 = vrot.slane %v10324_v34, 1  ;;  %v7701_v58 = vrot.slane %v10324_v34, 2  ;;  %v7725_v6 = vrot.slane %v10324_v34, 3 }
 0x428   :  { %7294 = vmatpush1.bf16.msra.mxu0 %v9428_v26  ;;  %7622 = vmatpush1.bf16.msra.mxu1 %v9430_v20  ;;  %v9485_v26 = vcombine.high %v1074_v23, %v1078_v11  ;;  %v9487_v20 = vcombine.high %v1075_v14, %v1079_v17  ;;  %v9516_v23 = vcombine.low %v1106_v61, %v1110_v62  ;;  %v1132_v13 = vsub.s32 0, %v10312_v48  ;;  %v9868_v61 = vld [vmem:[#allocation8 + $0x10] sm:$0xff]  }
 0x429   :  { %7295 = vmatprep.subr.bf16.mxu0 %v9437_v27  ;;  %7623 = vmatprep.subr.bf16.mxu1 %v9439_v59  ;;  %v1082_v27 = vld [vmem:[#allocation5 + $0x1e90] sm:$0xff]  ;;  %v7675_v57 = vrot.slane %v10322_v31, 1  ;;  %v7723_v46 = vrot.slane %v10322_v31, 3  ;;  %v9869_v62 = vld [vmem:[#allocation8 + $0x90] sm:$0xff]  }
 0x42a   :  { %v1086_v59 = vld [vmem:[#allocation5 + $0x1eb0] sm:$0xff] }
 0x42b   :  { %v9492_v2 = vcombine.low %v1082_v27, %v1086_v59  ;;  %v7691_v47 = vmax.f32 %v10322_v31, %v7675_v57 }
 0x42c   :  { %7296 = vmatpush1.bf16.msra.mxu0 %v9436_v15  ;;  %7624 = vmatpush1.bf16.msra.mxu1 %v9438_v35  ;;  %v9493_v15 = vcombine.high %v1082_v27, %v1086_v59  ;;  %v9495_v35 = vcombine.high %v1083_v55, %v1087_v25  ;;  %v1127_v27 = vld [vmem:[#allocation5 + $0x1ff8] sm:$0xff] }
 0x42d   :  { %7297 = vmatprep.subr.bf16.mxu0 %v9445_v37  ;;  %7625 = vmatprep.subr.bf16.mxu1 %v9447_v33  ;;  %v1090_v37 = vld [vmem:[#allocation5 + $0x1ed0] sm:$0xff] }
 0x42e   :  { %v1094_v33 = vld [vmem:[#allocation5 + $0x1ef0] sm:$0xff] }
 0x430   :  { %7298 = vmatpush1.bf16.msra.mxu0 %v9444_v32  ;;  %7626 = vmatpush1.bf16.msra.mxu1 %v9446_v42  ;;  %v9494_v32 = vcombine.low %v1083_v55, %v1087_v25  ;;  %v9501_v42 = vcombine.high %v1090_v37, %v1094_v33  ;;  %v1133_v25 = vrot.slane %v10315_v63, %v1132_v13 }
 0x431   :  { %7299 = vmatprep.subr.bf16.mxu0 %v9453_v43  ;;  %7627 = vmatprep.subr.bf16.mxu1 %v9455_v44  ;;  %v9503_v43 = vcombine.high %v1091_v38, %v1095_v40  ;;  %v1098_v44 = vld [vmem:[#allocation5 + $0x1f10] sm:$0xff] }
 0x432   :  { %v9509_v36 = vcombine.high %v1098_v44, %v1102_v45  ;;  %v9712_v57 = vadd.f32 %v10288_v22, %v1133_v25  ;;  %v9887_v25 = vld [vmem:[#allocation8 + $0xf8] sm:$0xff]  }
 0x434   :  { %7300 = vmatpush1.bf16.msra.mxu0 %v9452_v52  ;;  %7628 = vmatpush1.bf16.msra.mxu1 %v9454_v54  ;;  %v7693_v52 = vmax.f32 %v10324_v34, %v7677_v41  ;;  %v9500_v54 = vcombine.low %v1090_v37, %v1094_v33 }
 0x435   :  { %7301 = vmatprep.subr.bf16.mxu0 %v9461_v16  ;;  %7629 = vmatprep.subr.bf16.mxu1 %v9463_v56  ;;  %v7699_v16 = vrot.slane %v10322_v31, 2  ;;  %v9502_v56 = vcombine.low %v1091_v38, %v1095_v40  ;;  %v9858_v40 = vld [vmem:[#allocation8 + $0x40] sm:$0xff]  }
 0x437   :  { %v7715_v12 = vmax.f32 %v7691_v47, %v7699_v16 }
 0x438   :  { %7302 = vmatpush1.bf16.msra.mxu0 %v9460_v1  ;;  %7630 = vmatpush1.bf16.msra.mxu1 %v9462_v28  ;;  %v1107_v1 = vld [vmem:[#allocation5 + $0x1f58] sm:$0xff] }
 0x439   :  { %7303 = vmatprep.subr.bf16.mxu0 %v9469_v39  ;;  %7631 = vmatprep.subr.bf16.mxu1 %v9471_v3  ;;  %v1111_v28 = vld [vmem:[#allocation5 + $0x1f78] sm:$0xff]  ;;  %v7717_v39 = vmax.f32 %v7693_v52, %v7701_v58  ;;  %v9508_v3 = vcombine.low %v1098_v44, %v1102_v45  ;;  %v7658_v44 = vmax.f32 %v9712_v57, 0.0  ;;  %v9861_v45 = vld [vmem:[#allocation8 + $0x80] sm:$0xff]  }
 0x43a   :  { %v9519_v7 = vcombine.high %v1107_v1, %v1111_v28  ;;  %v9518_v14 = vcombine.low %v1107_v1, %v1111_v28  ;;  %v9871_v28 = vld [vmem:[#allocation8 + $0xd8] sm:$0xff]   ;;  %v9892_v57 = vld [vmem:[#allocation8 + $0x100] sm:$0xff]  }
 0x43b   :  { %v7741_v11 = vmax.f32 %v7717_v39, %v7725_v6  ;;  %v7674_v16 = vrot.slane %v7658_v44, 1  ;;  %v7698_v39 = vrot.slane %v7658_v44, 2  ;;  %v9874_v6 = vld [vmem:[#allocation8 + $0x60] sm:$0xff]  }
 0x43c   :  { %7304 = vmatpush1.bf16.msra.mxu0 %v9468_v8  ;;  %7632 = vmatpush1.bf16.msra.mxu1 %v9470_v9  ;;  %v1118_v8 = vld [vmem:[#allocation5 + $0x1fb0] sm:$0xff]  ;;  %v1115_v9 = vld [vmem:[#allocation5 + $0x1f98] sm:$0xff] }
 0x43d   :  { %7305 = vmatprep.subr.bf16.mxu0 %v9477_v53  ;;  %7633 = vmatprep.subr.bf16.mxu1 %v9479_v10  ;;  %v1119_v53 = vld [vmem:[#allocation5 + $0x1fb8] sm:$0xff]  ;;  %v7739_v10 = vmax.f32 %v7715_v12, %v7723_v46  ;;  %v9525_v17 = vcombine.high %v1114_v24, %v1118_v8  ;;  %v9524_v31 = vcombine.low %v1114_v24, %v1118_v8  ;;  %v7757_v55 = vrot.slane %v7741_v11, 4  ;;  %v9870_v12 = vld [vmem:[#allocation8 + $0x58] sm:$0xff]   ;;  %v9875_v24 = vld [vmem:[#allocation8 + $0xe0] sm:$0xff]  }
 0x43e   :  { %v9526_v34 = vcombine.low %v1115_v9, %v1119_v53  ;;  %v9872_v46 = vld [vmem:[#allocation8 + $0x18] sm:$0xff]   ;;  %v7722_v8 = vrot.slane %v7658_v44, 3 }
 0x43f   :  { %v7755_v59 = vrot.slane %v7739_v10, 4  ;;  %v7773_v33 = vadd.f32 %v7757_v55, %v7741_v11  ;;  %v9878_v11 = vld [vmem:[#allocation8 + $0x68] sm:$0xff]  }
 0x440   :  { %7306 = vmatpush1.bf16.msra.mxu0 %v9476_v18  ;;  %7634 = vmatpush1.bf16.msra.mxu1 %v9478_v21  ;;  %v9527_v18 = vcombine.high %v1115_v9, %v1119_v53  ;;  %v1122_v21 = vld [vmem:[#allocation5 + $0x1fd0] sm:$0xff]  ;;  %v9876_v53 = vld [vmem:[#allocation8 + $0x20] sm:$0xff]  }
 0x441   :  { %7307 = vmatprep.subr.bf16.mxu0 %v9485_v26  ;;  %7635 = vmatprep.subr.bf16.mxu1 %v9487_v20  ;;  %v1126_v26 = vld [vmem:[#allocation5 + $0x1ff0] sm:$0xff]  ;;  %v1123_v20 = vld [vmem:[#allocation5 + $0x1fd8] sm:$0xff] }
 0x442   :  { %v9532_v37 = vcombine.low %v1122_v21, %v1126_v26  ;;  %v9534_v38 = vcombine.low %v1123_v20, %v1127_v27 }
 0x444   :  { %7308 = vmatpush1.bf16.msra.mxu0 %v9484_v30  ;;  %7636 = vmatpush1.bf16.msra.mxu1 %v9486_v49  ;;  %v9533_v30 = vcombine.high %v1122_v21, %v1126_v26  ;;  %v1141_v49 = vrot.slane %v10315_v63, %v1140_v60  ;;  %v9882_v21 = vld [vmem:[#allocation8 + $0x70] sm:$0xff]  }
 0x445   :  { %7309 = vmatprep.subr.bf16.mxu0 %v9493_v15  ;;  %7637 = vmatprep.subr.bf16.mxu1 %v9495_v35  ;;  %v9535_v15 = vcombine.high %v1123_v20, %v1127_v27  ;;  %v7771_v35 = vadd.f32 %v7755_v59, %v7739_v10  ;;  %v9883_v20 = vld [vmem:[#allocation8 + $0xf0] sm:$0xff]  }
 0x446   :  { %v9714_v41 = vadd.f32 %v10290_v29, %v1141_v49  ;;  %v9884_v27 = vld [vmem:[#allocation8 + $0x30] sm:$0xff]   ;;  %v9889_v49 = vld [vmem:[#allocation8 + $0xb8] sm:$0xff]  }
 0x447   :  { %v9885_v59 = vld [vmem:[#allocation8 + $0xb0] sm:$0xff]  }
 0x448   :  { %7310 = vmatpush1.bf16.msra.mxu0 %v9492_v2  ;;  %7638 = vmatpush1.bf16.msra.mxu1 %v9494_v32  ;;  %v9859_v2 = vld [vmem:[#allocation8 + $0xc0] sm:$0xff]   ;;  %v7779_v32 = vmul.f32 0.5, %v7771_v35  ;;  %v7660_v47 = vmax.f32 %v9714_v41, 0.0  ;;  %v9894_v41 = vld [vmem:[#allocation8 + $0x148] sm:$0xff]  }
 0x449   :  { %7311 = vmatprep.subr.bf16.mxu0 %v9501_v42  ;;  %7639 = vmatprep.subr.bf16.mxu1 %v9503_v43  ;;  %v9860_v42 = vld [vmem:[#allocation8] sm:$0xff]   ;;  %v7781_v43 = vmul.f32 0.5, %v7773_v33 }
 0x44a   :  { %v9601_v29 = vpack.c.bf16 %v7779_v32, %v7779_v32  ;;  %v7676_v58 = vrot.slane %v7660_v47, 1  ;;  %v7724_v9 = vrot.slane %v7660_v47, 3  ;;  %v9890_v35 = vld [vmem:[#allocation8 + $0x140] sm:$0xff]   ;;  %v9895_v32 = vld [vmem:[#allocation8 + $0x1c8] sm:$0xff]  }
 0x44b   :  { %v9607_v52 = vpack.c.bf16 %v7781_v43, %v7781_v43  ;;  %v9891_v33 = vld [vmem:[#allocation8 + $0x1c0] sm:$0xff]   ;;  %v9897_v43 = vld [vmem:[#allocation8 + $0x188] sm:$0xff]  }
 0x44c   :  { %7312 = vmatpush1.bf16.msra.mxu0 %v9500_v54  ;;  %7640 = vmatpush1.bf16.msra.mxu1 %v9502_v56  ;;  %v9864_v54 = vld [vmem:[#allocation8 + $0x8] sm:$0xff]   ;;  %v7692_v1 = vmax.f32 %v7660_v47, %v7676_v58  ;;  %v9909_v58 = vld [vmem:[#allocation8 + $0x1a0] sm:$0xff]  }
 0x44d   :  { %7313 = vmatprep.subr.bf16.mxu0 %v9509_v36  ;;  %7641 = vmatprep.subr.bf16.mxu1 %v9511_v19  ;;  %v9865_v56 = vld [vmem:[#allocation8 + $0x88] sm:$0xff]   ;;  %v9866_v36 = vld [vmem:[#allocation8 + $0x50] sm:$0xff]  }
 0x44e   :  { %v9867_v19 = vld [vmem:[#allocation8 + $0xd0] sm:$0xff]  }
 0x450   :  { %7314 = vmatpush1.bf16.msra.mxu0 %v9508_v3  ;;  %7642 = vmatpush1.bf16.msra.mxu1 %v9510_v4  ;;  %v7700_v3 = vrot.slane %v7660_v47, 2  ;;  %v9900_v47 = vld [vmem:[#allocation8 + $0x110] sm:$0xff]  }
 0x451   :  { %7315 = vmatprep.subr.bf16.mxu0 %v9517_v5  ;;  %7643 = vmatprep.subr.bf16.mxu1 %v9519_v7  ;;  %v9873_v5 = vld [vmem:[#allocation8 + $0x98] sm:$0xff]  }
 0x452   :  { %v7716_v7 = vmax.f32 %v7692_v1, %v7700_v3  ;;  %v9915_v1 = vld [vmem:[#allocation8 + $0x1f0] sm:$0xff]   ;;  %v9918_v3 = vld [vmem:[#allocation8 + $0x178] sm:$0xff]  }
 0x454   :  { %7316 = vmatpush1.bf16.msra.mxu0 %v9516_v23  ;;  %7644 = vmatpush1.bf16.msra.mxu1 %v9518_v14  ;;  %v9877_v23 = vld [vmem:[#allocation8 + $0xa0] sm:$0xff]   ;;  %v7740_v13 = vmax.f32 %v7716_v7, %v7724_v9  ;;  %v9879_v14 = vld [vmem:[#allocation8 + $0xe8] sm:$0xff]   ;;  %v1156_v7 = vsub.s32 6, %v10312_v48 }
 0x455   :  { %7317 = vmatprep.subr.bf16.mxu0 %v9525_v17  ;;  %7645 = vmatprep.subr.bf16.mxu1 %v9527_v18  ;;  %v9880_v17 = vld [vmem:[#allocation8 + $0x28] sm:$0xff]  }
 0x456   :  { %v9881_v18 = vld [vmem:[#allocation8 + $0xa8] sm:$0xff]   ;;  %v7756_v26 = vrot.slane %v7740_v13, 4 }
 0x458   :  { %7318 = vmatpush1.bf16.msra.mxu0 %v9524_v31  ;;  %7646 = vmatpush1.bf16.msra.mxu1 %v9526_v34  ;;  %v9886_v31 = vld [vmem:[#allocation8 + $0x78] sm:$0xff]   ;;  %v7772_v34 = vadd.f32 %v7756_v26, %v7740_v13 }
 0x459   :  { %7319 = vmatprep.subr.bf16.mxu0 %v9533_v30  ;;  %7647 = vmatprep.subr.bf16.mxu1 %v9535_v15  ;;  %v9888_v30 = vld [vmem:[#allocation8 + $0x38] sm:$0xff]  }
 0x45c   :  { %7320 = vmatpush1.bf16.msra.mxu0 %v9532_v37  ;;  %7648 = vmatpush1.bf16.msra.mxu1 %v9534_v38  ;;  %v7780_v37 = vmul.f32 0.5, %v7772_v34 }
 0x45d   :  { %9624 = vmatprep.subr.bf16.mxu0 %v9858_v40  ;;  %9646 = vmatprep.subr.bf16.mxu1 %v9859_v2  ;;  %v9893_v40 = vld [vmem:[#allocation8 + $0x180] sm:$0xff]  }
 0x45e   :  { %v9610_v2 = vpack.c.bf16 %v7780_v37, %v7780_v37 }
 0x45f   :  { %7322 = vmatmul.mubr.bf16.vlgmr.msra.gmra.mrb[4].mxu0 %v10270_v0  ;;  %7650 = vmatmul.mubr.bf16.vlgmr.msra.gmra.mrb[4].mxu1 %v10270_v0  ;;  %v7690_v0 = vmax.f32 %v7658_v44, %v7674_v16  ;;  %v9898_v44 = vld [vmem:[#allocation8 + $0x150] sm:$0xff]   ;;  %v9906_v16 = vld [vmem:[#allocation8 + $0x160] sm:$0xff]  }
 0x460   :  { %9625 = vmatpush3.bf16.msra.mxu0 %v9860_v42  ;;  %9602 = vmatprep.mubr.msk.bf16.mxu0 %vm10340_vm1, %v9601_v29  ;;  %v9896_v42 = vld [vmem:[#allocation8 + $0x108] sm:$0xff]   ;;  %v9902_v29 = vld [vmem:[#allocation8 + $0x158] sm:$0xff]  }
 0x461   :  { %9647 = vmatpush3.bf16.msra.mxu1 %v9861_v45  ;;  %9608 = vmatprep.mubr.msk.bf16.mxu1 %vm10340_vm1, %v9607_v52  ;;  %v7714_v4 = vmax.f32 %v7690_v0, %v7698_v39  ;;  %v9899_v45 = vld [vmem:[#allocation8 + $0x1d0] sm:$0xff]   ;;  %v9904_v52 = vld [vmem:[#allocation8 + $0x118] sm:$0xff]   ;;  %v9912_v0 = vld [vmem:[#allocation8 + $0x128] sm:$0xff]  }
 0x462   :  { %9626 = vmatprep.subr.bf16.mxu0 %v9862_v50  ;;  %9648 = vmatprep.subr.bf16.mxu1 %v9863_v51  ;;  %v9901_v50 = vld [vmem:[#allocation8 + $0x190] sm:$0xff]   ;;  %v9903_v51 = vld [vmem:[#allocation8 + $0x1d8] sm:$0xff]  }
 0x463   :  { %v7738_v10 = vmax.f32 %v7714_v4, %v7722_v8  ;;  %v9917_v39 = vld [vmem:[#allocation8 + $0x1b0] sm:$0xff]   ;;  %v9920_v4 = vld [vmem:[#allocation8 + $0x138] sm:$0xff]   ;;  %v1160_v8 = vsub.s32 7, %v10312_v48 }
 0x464   :  { %9627 = vmatpush3.bf16.msra.mxu0 %v9864_v54  ;;  %v9905_v54 = vld [vmem:[#allocation8 + $0x198] sm:$0xff]  }
 0x465   :  { %9649 = vmatpush3.bf16.msra.mxu1 %v9865_v56  ;;  %9628 = vmatprep.subr.bf16.mxu0 %v9866_v36  ;;  %v7754_v60 = vrot.slane %v7738_v10, 4  ;;  %v9907_v56 = vld [vmem:[#allocation8 + $0x1e0] sm:$0xff]  }
 0x466   :  { %9650 = vmatprep.subr.bf16.mxu1 %v9867_v19  ;;  %v9908_v36 = vld [vmem:[#allocation8 + $0x120] sm:$0xff]   ;;  %v9910_v19 = vld [vmem:[#allocation8 + $0x168] sm:$0xff]  }
 0x467   :  { %v7770_v55 = vadd.f32 %v7754_v60, %v7738_v10 }
 0x468   :  { %9629 = vmatpush3.bf16.msra.mxu0 %v9868_v61  ;;  %v9911_v61 = vld [vmem:[#allocation8 + $0x1e8] sm:$0xff]  }
 0x469   :  { %9651 = vmatpush3.bf16.msra.mxu1 %v9869_v62  ;;  %9630 = vmatprep.subr.bf16.mxu0 %v9870_v12  ;;  %v7778_v15 = vmul.f32 0.5, %v7770_v55  ;;  %v9913_v62 = vld [vmem:[#allocation8 + $0x1a8] sm:$0xff]   ;;  %v9914_v12 = vld [vmem:[#allocation8 + $0x170] sm:$0xff]  }
 0x46a   :  { %9652 = vmatprep.subr.bf16.mxu1 %v9871_v28  ;;  %v9916_v28 = vld [vmem:[#allocation8 + $0x130] sm:$0xff]  }
 0x46b   :  { %v9604_v38 = vpack.c.bf16 %v7778_v15, %v7778_v15 }
 0x46c   :  { %9631 = vmatpush3.bf16.msra.mxu0 %v9872_v46  ;;  %v9919_v46 = vld [vmem:[#allocation8 + $0x1f8] sm:$0xff]  }
 0x46d   :  { %9653 = vmatpush3.bf16.msra.mxu1 %v9873_v5  ;;  %9632 = vmatprep.subr.bf16.mxu0 %v9874_v6  ;;  %v9921_v5 = vld [vmem:[#allocation8 + $0x1b8] sm:$0xff]   ;;  %v1148_v6 = vsub.s32 4, %v10312_v48 }
 0x46e   :  { %9654 = vmatprep.subr.bf16.mxu1 %v9875_v24  ;;  %v1152_v24 = vsub.s32 5, %v10312_v48 }
 0x46f   :  { %v1149_v9 = vrot.slane %v10315_v63, %v1148_v6 }
 0x470   :  { %9633 = vmatpush3.bf16.msra.mxu0 %v9876_v53  ;;  %v1157_v53 = vrot.slane %v10315_v63, %v1156_v7  ;;  %v1153_v10 = vrot.slane %v10315_v63, %v1152_v24 }
 0x471   :  { %9655 = vmatpush3.bf16.msra.mxu1 %v9877_v23  ;;  %9634 = vmatprep.subr.bf16.mxu0 %v9878_v11  ;;  %v1161_v23 = vrot.slane %v10315_v63, %v1160_v8 }
 0x472   :  { %9656 = vmatprep.subr.bf16.mxu1 %v9879_v14 }
 0x474   :  { %9635 = vmatpush3.bf16.msra.mxu0 %v9880_v17 }
 0x475   :  { %9657 = vmatpush3.bf16.msra.mxu1 %v9881_v18  ;;  %9636 = vmatprep.subr.bf16.mxu0 %v9882_v21 }
 0x476   :  { %9658 = vmatprep.subr.bf16.mxu1 %v9883_v20 }
 0x478   :  { %9637 = vmatpush3.bf16.msra.mxu0 %v9884_v27 }
 0x479   :  { %9659 = vmatpush3.bf16.msra.mxu1 %v9885_v59  ;;  %9638 = vmatprep.subr.bf16.mxu0 %v9886_v31 }
 0x47a   :  { %9660 = vmatprep.subr.bf16.mxu1 %v9887_v25 }
 0x47c   :  { %9639 = vmatpush3.bf16.msra.mxu0 %v9888_v30 }
 0x47d   :  { %9661 = vmatpush3.bf16.msra.mxu1 %v9889_v49  ;;  %9668 = vmatprep.subr.bf16.mxu0 %v9890_v35 }
 0x47e   :  { %9690 = vmatprep.subr.bf16.mxu1 %v9891_v33 }
 0x47f   :  { %9605 = vmatmul.mubr.msk.bf16.vlgmr.msra.gmra.mrb[8].mxu0 %vm10340_vm1, %v9604_v38 }
 0x480   :  { %9611 = vmatmul.mubr.msk.bf16.vlgmr.msra.gmra.mrb[8].mxu1 %vm10340_vm1, %v9610_v2  ;;  %9669 = vmatpush3.bf16.msra.mxu0 %v9892_v57 }
 0x481   :  { %9691 = vmatpush3.bf16.msra.mxu1 %v9893_v40  ;;  %9670 = vmatprep.subr.bf16.mxu0 %v9894_v41 }
 0x482   :  { %9692 = vmatprep.subr.bf16.mxu1 %v9895_v32 }
 0x484   :  { %9671 = vmatpush3.bf16.msra.mxu0 %v9896_v42 }
 0x485   :  { %9693 = vmatpush3.bf16.msra.mxu1 %v9897_v43  ;;  %9672 = vmatprep.subr.bf16.mxu0 %v9898_v44 }
 0x486   :  { %9694 = vmatprep.subr.bf16.mxu1 %v9899_v45 }
 0x488   :  { %9673 = vmatpush3.bf16.msra.mxu0 %v9900_v47 }
 0x489   :  { %9695 = vmatpush3.bf16.msra.mxu1 %v9901_v50  ;;  %9674 = vmatprep.subr.bf16.mxu0 %v9902_v29 }
 0x48a   :  { %9696 = vmatprep.subr.bf16.mxu1 %v9903_v51 }
 0x48c   :  { %9675 = vmatpush3.bf16.msra.mxu0 %v9904_v52 }
 0x48d   :  { %9697 = vmatpush3.bf16.msra.mxu1 %v9905_v54  ;;  %9676 = vmatprep.subr.bf16.mxu0 %v9906_v16 }
 0x48e   :  { %9698 = vmatprep.subr.bf16.mxu1 %v9907_v56 }
 0x490   :  { %9677 = vmatpush3.bf16.msra.mxu0 %v9908_v36 }
 0x491   :  { %9699 = vmatpush3.bf16.msra.mxu1 %v9909_v58  ;;  %9678 = vmatprep.subr.bf16.mxu0 %v9910_v19 }
 0x492   :  { %9700 = vmatprep.subr.bf16.mxu1 %v9911_v61 }
 0x494   :  { %9679 = vmatpush3.bf16.msra.mxu0 %v9912_v0 }
 0x495   :  { %9701 = vmatpush3.bf16.msra.mxu1 %v9913_v62  ;;  %9680 = vmatprep.subr.bf16.mxu0 %v9914_v12 }
 0x496   :  { %9702 = vmatprep.subr.bf16.mxu1 %v9915_v1 }
 0x498   :  { %9681 = vmatpush3.bf16.msra.mxu0 %v9916_v28 }
 0x499   :  { %9703 = vmatpush3.bf16.msra.mxu1 %v9917_v39  ;;  %9682 = vmatprep.subr.bf16.mxu0 %v9918_v3 }
 0x49a   :  { %9704 = vmatprep.subr.bf16.mxu1 %v9919_v46 }
 0x49c   :  { %9683 = vmatpush3.bf16.msra.mxu0 %v9920_v4 }
 0x49d   :  { %9705 = vmatpush3.bf16.msra.mxu1 %v9921_v5 }
 0x532   :  { %v7323_v11 = vpop.f32.mrb[4].mxu0  ;;  %v7651_v14 = vpop.f32.mrb[4].mxu1 }
 0x533   :  { %v9716_v13 = vadd.f32 %v7323_v11, %v1149_v9  ;;  %v7325_v17 = vpop.f32.mrb[5].mxu0  ;;  %v9718_v60 = vadd.f32 %v7651_v14, %v1157_v53  ;;  %v7653_v21 = vpop.f32.mrb[5].mxu1 }
 0x534   :  { %v9717_v18 = vadd.f32 %v7325_v17, %v1153_v10  ;;  %v7327_v26 = vpop.f32.mrb[6].mxu0  ;;  %v9719_v27 = vadd.f32 %v7653_v21, %v1161_v23  ;;  %v7655_v59 = vpop.f32.mrb[6].mxu1 }
 0x535   :  { %v7662_v20 = vmax.f32 %v9716_v13, 0.0  ;;  %v7328_v48 = vpop.f32.mrb[7].mxu0  ;;  %v7664_v31 = vmax.f32 %v9718_v60, 0.0  ;;  %v7656_v25 = vpop.f32.mrb[7].mxu1 }
 0x536   :  { %v7663_v55 = vmax.f32 %v9717_v18, 0.0  ;;  %v7665_v30 = vmax.f32 %v9719_v27, 0.0  ;;  %v8495_v25 = vld [vmem:[#allocation10] ss:$0 sm:$0xff] }
 0x537   :  { %v7678_v34 = vrot.slane %v7662_v20, 1  ;;  %v7680_v49 = vrot.slane %v7664_v31, 1  ;;  %v7702_v35 = vrot.slane %v7662_v20, 2  ;;  %v7704_v57 = vrot.slane %v7664_v31, 2 }
 0x538   :  { %v7679_v15 = vrot.slane %v7663_v55, 1  ;;  %v7681_v37 = vrot.slane %v7665_v30, 1  ;;  %v7703_v40 = vrot.slane %v7663_v55, 2  ;;  %v7726_v2 = vrot.slane %v7662_v20, 3 }
 0x539   :  { %v7694_v63 = vmax.f32 %v7662_v20, %v7678_v34  ;;  %v7696_v33 = vmax.f32 %v7664_v31, %v7680_v49  ;;  %v7705_v42 = vrot.slane %v7665_v30, 2  ;;  %v7728_v44 = vrot.slane %v7664_v31, 3 }
 0x53a   :  { %v7695_v38 = vmax.f32 %v7663_v55, %v7679_v15  ;;  %v7697_v32 = vmax.f32 %v7665_v30, %v7681_v37  ;;  %v7727_v47 = vrot.slane %v7663_v55, 3  ;;  %v7729_v51 = vrot.slane %v7665_v30, 3 }
 0x53b   :  { %v7718_v41 = vmax.f32 %v7694_v63, %v7702_v35  ;;  %v7720_v43 = vmax.f32 %v7696_v33, %v7704_v57 }
 0x53c   :  { %v7719_v45 = vmax.f32 %v7695_v38, %v7703_v40  ;;  %v7721_v29 = vmax.f32 %v7697_v32, %v7705_v42 }
 0x53d   :  { %v7742_v50 = vmax.f32 %v7718_v41, %v7726_v2  ;;  %v7744_v52 = vmax.f32 %v7720_v43, %v7728_v44 }
 0x53e   :  { %v7743_v54 = vmax.f32 %v7719_v45, %v7727_v47  ;;  %v7745_v56 = vmax.f32 %v7721_v29, %v7729_v51 }
 0x53f   :  { %v7758_v16 = vrot.slane %v7742_v50, 4  ;;  %v7760_v36 = vrot.slane %v7744_v52, 4 }
 0x540   :  { %v7759_v58 = vrot.slane %v7743_v54, 4  ;;  %v7761_v19 = vrot.slane %v7745_v56, 4 }
 0x541   :  { %v7774_v61 = vadd.f32 %v7758_v16, %v7742_v50  ;;  %v7776_v62 = vadd.f32 %v7760_v36, %v7744_v52 }
 0x542   :  { %v7775_v0 = vadd.f32 %v7759_v58, %v7743_v54  ;;  %v7777_v12 = vadd.f32 %v7761_v19, %v7745_v56 }
 0x543   :  { %v7782_v1 = vmul.f32 0.5, %v7774_v61  ;;  %v7784_v39 = vmul.f32 0.5, %v7776_v62 }
 0x544   :  { %v7783_v28 = vmul.f32 0.5, %v7775_v0  ;;  %v7785_v3 = vmul.f32 0.5, %v7777_v12 }
 0x545   :  { %v9616_v5 = vpack.c.bf16 %v7782_v1, %v7782_v1  ;;  %v9622_v6 = vpack.c.bf16 %v7784_v39, %v7784_v39 }
 0x546   :  { %v9613_v46 = vpack.c.bf16 %v7783_v28, %v7783_v28  ;;  %v9619_v4 = vpack.c.bf16 %v7785_v3, %v7785_v3 }
 0x548   :  { %9614 = vmatprep.mubr.msk.bf16.mxu0 %vm10340_vm1, %v9613_v46  ;;  %9620 = vmatprep.mubr.msk.bf16.mxu1 %vm10340_vm1, %v9619_v4 }
 0x549   :  { %9617 = vmatmul.mubr.msk.bf16.vlgmr.msra.gmra.mrb[12].mxu0 %vm10340_vm1, %v9616_v5  ;;  %9623 = vmatmul.mubr.msk.bf16.vlgmr.msra.gmra.mrb[12].mxu1 %vm10340_vm1, %v9622_v6 }
 0x552   :  { %v9640_v7 = vpop.f32.mrb[8].mxu0 }
 0x553   :  { %v9662_v24 = vpop.f32.mrb[8].mxu1  ;;  %v9641_v8 = vpop.f32.mrb[9].mxu0 }
 0x554   :  { %v9642_v9 = vadd.f32 %v9641_v8, %v9640_v7  ;;  %v9663_v53 = vpop.f32.mrb[9].mxu1  ;;  %v9643_v10 = vpop.f32.mrb[10].mxu0 }
 0x555   :  { %v9664_v23 = vadd.f32 %v9663_v53, %v9662_v24  ;;  %v9665_v11 = vpop.f32.mrb[10].mxu1  ;;  %v9644_v13 = vpop.f32.mrb[11].mxu0 }
 0x556   :  { %v9666_v14 = vpop.f32.mrb[11].mxu1 }
 0x557   :  { %v8391_v17 = vadd.f32 %v9664_v23, %v9642_v9 }
 0x61c   :  { %v9684_v60 = vpop.f32.mrb[12].mxu0  ;;  %v9706_v18 = vpop.f32.mrb[12].mxu1 }
 0x61d   :  { %v9685_v21 = vpop.f32.mrb[13].mxu0  ;;  %v9707_v20 = vpop.f32.mrb[13].mxu1 }
 0x61e   :  { %v9686_v26 = vadd.f32 %v9685_v21, %v9684_v60  ;;  %v9687_v27 = vpop.f32.mrb[14].mxu0  ;;  %v9708_v59 = vadd.f32 %v9707_v20, %v9706_v18  ;;  %v9709_v22 = vpop.f32.mrb[14].mxu1 }
 0x61f   :  { %v9688_v48 = vpop.f32.mrb[15].mxu0  ;;  %v9710_v55 = vpop.f32.mrb[15].mxu1 }
 0x620   :  { %v8431_v31 = vadd.f32 %v9686_v26, %v8391_v17 }
 0x622   :  { %v8471_v34 = vadd.f32 %v9708_v59, %v8431_v31 }
 0x624   :  { %v8476_v30 = vadd.f32 %v8495_v25, %v8471_v34 }
 0x626   :  { %8477 = vst [vmem:[#allocation11] sm:$0xff] %v8476_v30 }
 0x627   :  { %10043 = shalt.err (!%p10040_p2)
}
 0x628   :  { %s10044_s6 = scalar_lea.hbm %s10387_s5, 128 }
 0x629   :  { %p10045_p3 = scmp.ne.s32.totalorder %s10387_s5, %s10044_s6  ;;  %p10048_p4 = scmp.lt.u32.totalorder %s10044_s6, %s10387_s5 }
 0x62b   :  { %p10050_p5 = pnand %p10048_p4, %p10045_p3 }
 0x62d   :  { %10053 = shalt.err (!%p10050_p5)
}
 0x62e   :  { %8487 = dma.vmem_to_hbm [thread:$0]  %s8485_s28, 128, %s10387_s5, [#allocation4]  }
 0x62f   :  { %10060 = dma.done.wait [#allocation4], 128  }
 0x630   :  { %10061 = vsyncadd [#allocation4], 4294967168 }
 0x631   :  { %8491 = vsyncpa [#allocation3], 1 }
 0x632   :  { %8492 = vsyncpa [#allocation6], 1 }
 0x633   :  { %8493 = vsyncpa [#allocation9], 1 }
 0x634   :  { %8494 = vsyncpa [#allocation4], 1 }

</bundles_post_ra>
